<compile_context>
chip_gen: v6e
topology: v6e:2x2x1
jax: 0.10.0
libtpu: 0.0.40
codegen_flags: <defaults>
</compile_context>

<pallas_src>
import jax
import jax.numpy as jnp
from jax.experimental import pallas as pl
from jax.experimental.pallas import tpu as pltpu

TB = 8          # images per grid step (batch tile)
NEG = -1e30     # logit padding for unused softmax lanes


# ------------------------------ fused kernel --------------------------------

def _cnn_fused_kernel(x_ref, w1e_ref, b1e_ref, w2e_ref, b2e_ref,
                      wf1_ref, bf1_ref, wf2_ref, bf2_ref, out_ref):
    tb = x_ref.shape[1]

    # ---- conv1 (1 -> 10, k=5) as banded matmuls over W; the 2x2 pool's column
    #      parity is folded into the two weight banks w1e[0]/w1e[1]. ----
    x2 = x_ref[...].reshape(32 * tb, 28).astype(jnp.bfloat16)      # rows = (h, b)
    s_e = jnp.zeros((24, tb, 120), jnp.float32)
    s_o = jnp.zeros((24, tb, 120), jnp.float32)
    for dy in range(5):
        pe = jnp.dot(x2, w1e_ref[0, dy], preferred_element_type=jnp.float32)
        po = jnp.dot(x2, w1e_ref[1, dy], preferred_element_type=jnp.float32)
        pe = pe.reshape(32, tb, 120)
        po = po.reshape(32, tb, 120)
        s_e = s_e + pe[dy:dy + 24]
        s_o = s_o + po[dy:dy + 24]
    # 2x2 max-pool: rows via a major-dim reshape + max, columns via e/o banks.
    he = jnp.max(s_e.reshape(12, 2, tb, 120), axis=1)
    ho = jnp.max(s_o.reshape(12, 2, tb, 120), axis=1)
    p1 = jnp.maximum(jnp.maximum(he, ho) + b1e_ref[...], 0.0)      # (12, tb, 120)

    # ---- conv2 (10 -> 20, k=5): same banded-matmul scheme. ----
    # TODO(synk): nn.Dropout2d is identity in eval mode; no channel drop applied.
    p1b = p1.reshape(12 * tb, 120).astype(jnp.bfloat16)
    s2e = jnp.zeros((8, tb, 80), jnp.float32)
    s2o = jnp.zeros((8, tb, 80), jnp.float32)
    for dy in range(5):
        qe = jnp.dot(p1b, w2e_ref[0, dy], preferred_element_type=jnp.float32)
        qo = jnp.dot(p1b, w2e_ref[1, dy], preferred_element_type=jnp.float32)
        qe = qe.reshape(12, tb, 80)
        qo = qo.reshape(12, tb, 80)
        s2e = s2e + qe[dy:dy + 8]
        s2o = s2o + qo[dy:dy + 8]
    h2e = jnp.max(s2e.reshape(4, 2, tb, 80), axis=1)
    h2o = jnp.max(s2o.reshape(4, 2, tb, 80), axis=1)
    p2 = jnp.maximum(jnp.maximum(h2e, h2o) + b2e_ref[...], 0.0)    # (4, tb, 80)

    # ---- fc1 (320 -> 50) + ReLU; PyTorch NCHW flatten order is baked into the
    #      pre-permuted per-row weight banks wf1[h2]. ----
    h1 = jnp.zeros((tb, 50), jnp.float32)
    for r in range(4):
        h1 = h1 + jnp.dot(p2[r].astype(jnp.bfloat16), wf1_ref[r],
                          preferred_element_type=jnp.float32)
    h1 = jnp.maximum(h1 + bf1_ref[...], 0.0)
    # TODO(synk): F.dropout is identity in eval mode; no dropout applied.

    # ---- fc2 (50 -> 10, zero-padded to 128 lanes) + log_softmax. ----
    logits = jnp.dot(h1.astype(jnp.bfloat16), wf2_ref[...],
                     preferred_element_type=jnp.float32) + bf2_ref[...]
    m = jnp.max(logits, axis=-1, keepdims=True)
    z = logits - m
    lse = jnp.log(jnp.sum(jnp.exp(z), axis=-1, keepdims=True))
    out_ref[...] = z - lse                                          # (tb, 128)


# --------------------------- one-time weight prep ----------------------------

def _banded_conv_bank(wk, in_w, out_w):
    """wk: (Cout, Cin, 5, 5) -> (2, 5, Cin*in_w, Cout*out_w).

    bank[par, dy, cin*in_w + w, c*out_w + r] =
        wk[c, cin, dy, w - (2*r + par)]   if 0 <= w - (2*r + par) < 5 else 0
    so act2d @ bank[par, dy] gives the dx-summed VALID-conv contribution at
    output column j = 2*r + par for every output channel c.
    """
    cout, cin, _, k = wk.shape
    w_idx = jnp.arange(in_w)[:, None]
    r_idx = jnp.arange(out_w)[None, :]
    banks = []
    for par in range(2):
        dx = w_idx - (2 * r_idx + par)                  # (in_w, out_w)
        valid = (dx >= 0) & (dx < k)
        dxc = jnp.clip(dx, 0, k - 1)
        per_dy = []
        for dy in range(5):
            t = jnp.transpose(wk[:, :, dy, :], (2, 1, 0))     # (k, Cin, Cout)
            tap = t[dxc]                                      # (in_w, out_w, Cin, Cout)
            tap = jnp.where(valid[:, :, None, None], tap, 0.0)
            tap = jnp.transpose(tap, (2, 0, 3, 1))            # (Cin, in_w, Cout, out_w)
            per_dy.append(tap.reshape(cin * in_w, cout * out_w))
        banks.append(jnp.stack(per_dy, axis=0))
    return jnp.stack(banks, axis=0)


def prepare_params(params):
    """One-time re-layout of PyTorch-style parameters for the fused kernel."""
    f32, bf16 = jnp.float32, jnp.bfloat16
    w1 = params["w1"].astype(f32)        # (10, 1, 5, 5)
    w2 = params["w2"].astype(f32)        # (20, 10, 5, 5)
    wf1 = params["w_fc1"].astype(f32)    # (50, 320)
    wf2 = params["w_fc2"].astype(f32)    # (10, 50)

    # fc1: reorder rows to the kernel's (h2-major, c2*4 + w2) activation layout.
    wf1e = jnp.transpose(wf1.reshape(50, 20, 4, 4), (2, 1, 3, 0)).reshape(4, 80, 50)

    # fc2: pad 10 classes -> 128 lanes (lane-dense store); padded lanes get
    # bias -1e30 so they vanish in the log_softmax.
    wf2p = jnp.zeros((50, 128), f32).at[:, :10].set(wf2.T)
    bf2p = jnp.full((1, 128), NEG, f32).at[0, :10].set(params["b_fc2"].astype(f32))

    return {
        "w1e": _banded_conv_bank(w1, 28, 12).astype(bf16),              # (2,5,28,120)
        "b1e": jnp.repeat(params["b1"].astype(f32), 12)[None, :],       # (1,120)
        "w2e": _banded_conv_bank(w2, 12, 4).astype(bf16),               # (2,5,120,80)
        "b2e": jnp.repeat(params["b2"].astype(f32), 4)[None, :],        # (1,80)
        "wf1e": wf1e.astype(bf16),                                      # (4,80,50)
        "bf1": params["b_fc1"].astype(f32)[None, :],                    # (1,50)
        "wf2": wf2p.astype(bf16),                                       # (50,128)
        "bf2": bf2p,                                                    # (1,128)
    }


# --------------------------------- wrapper -----------------------------------

@jax.jit
def cnn_forward(x_nchw, prep):
    n = x_nchw.shape[0]
    npad = -(-n // TB) * TB
    x = x_nchw[:, 0, :, :].astype(jnp.float32)                  # (N, 28, 28)
    x = jnp.pad(x, ((0, npad - n), (0, 0), (0, 0)))
    xhbw = jnp.transpose(x, (1, 0, 2))                          # (28, Npad, 28)
    xhbw = jnp.pad(xhbw, ((0, 4), (0, 0), (0, 0)))              # (32, Npad, 28)

    out = pl.pallas_call(
        _cnn_fused_kernel,
        out_shape=jax.ShapeDtypeStruct((npad, 128), jnp.float32),
        grid=(npad // TB,),
        in_specs=[
            pl.BlockSpec((32, TB, 28), lambda t: (0, t, 0)),
            pl.BlockSpec((2, 5, 28, 120), lambda t: (0, 0, 0, 0)),
            pl.BlockSpec((1, 120), lambda t: (0, 0)),
            pl.BlockSpec((2, 5, 120, 80), lambda t: (0, 0, 0, 0)),
            pl.BlockSpec((1, 80), lambda t: (0, 0)),
            pl.BlockSpec((4, 80, 50), lambda t: (0, 0, 0)),
            pl.BlockSpec((1, 50), lambda t: (0, 0)),
            pl.BlockSpec((50, 128), lambda t: (0, 0)),
            pl.BlockSpec((1, 128), lambda t: (0, 0)),
        ],
        out_specs=pl.BlockSpec((TB, 128), lambda t: (t, 0)),
        compiler_params=pltpu.CompilerParams(
            dimension_semantics=("parallel",),
            vmem_limit_bytes=32 * 1024 * 1024),
    )(xhbw, prep["w1e"], prep["b1e"], prep["w2e"], prep["b2e"],
      prep["wf1e"], prep["bf1"], prep["wf2"], prep["bf2"])

    return out[:n, :10]


# ------------------------------ reference & init -----------------------------

def init_params(key):
    ks = jax.random.split(key, 8)

    def rn(k, shape, fan_in):
        return jax.random.normal(k, shape, jnp.float32) / jnp.sqrt(fan_in)

    return {
        "w1": rn(ks[0], (10, 1, 5, 5), 25.0),      # conv1.weight
        "b1": rn(ks[1], (10,), 25.0),              # conv1.bias
        "w2": rn(ks[2], (20, 10, 5, 5), 250.0),    # conv2.weight
        "b2": rn(ks[3], (20,), 250.0),             # conv2.bias
        "w_fc1": rn(ks[4], (50, 320), 320.0),      # fc1.weight (out, in)
        "b_fc1": rn(ks[5], (50,), 320.0),          # fc1.bias
        "w_fc2": rn(ks[6], (10, 50), 50.0),        # fc2.weight (out, in)
        "b_fc2": rn(ks[7], (10,), 50.0),           # fc2.bias
    }


def reference_forward(x, params):
    """Plain-JAX (XLA) forward matching the PyTorch module, for verification."""
    dn = ("NCHW", "OIHW", "NCHW")
    y = jax.lax.conv_general_dilated(x, params["w1"], (1, 1), "VALID",
                                     dimension_numbers=dn)
    y = y + params["b1"][None, :, None, None]
    y = jax.lax.reduce_window(y, -jnp.inf, jax.lax.max,
                              (1, 1, 2, 2), (1, 1, 2, 2), "VALID")
    y = jnp.maximum(y, 0.0)
    y = jax.lax.conv_general_dilated(y, params["w2"], (1, 1), "VALID",
                                     dimension_numbers=dn)
    y = y + params["b2"][None, :, None, None]
    y = jax.lax.reduce_window(y, -jnp.inf, jax.lax.max,
                              (1, 1, 2, 2), (1, 1, 2, 2), "VALID")
    y = jnp.maximum(y, 0.0)
    flat = y.reshape(y.shape[0], 320)
    h = jnp.maximum(flat @ params["w_fc1"].T + params["b_fc1"], 0.0)
    logits = h @ params["w_fc2"].T + params["b_fc2"]
    return jax.nn.log_softmax(logits, axis=1)


if __name__ == "__main__":
    key = jax.random.PRNGKey(0)
    k_x, k_p = jax.random.split(key)
    # MNIST-like input: batch=2, 1 channel, 28x28 (required so flatten -> 320)
    x = jax.random.normal(k_x, (2, 1, 28, 28), jnp.float32)
    params = init_params(k_p)

    prep = prepare_params(params)          # one-time weight re-layout (hoisted)
    out = jax.block_until_ready(cnn_forward(x, prep))

    assert out.shape == (2, 10), out.shape
    # rows are valid log-probabilities
    assert jnp.allclose(jnp.exp(out).sum(axis=1), 1.0, atol=1e-4)
    # matches the plain-JAX reference of the PyTorch module (bf16-matmul tolerance)
    ref = reference_forward(x, params)
    assert jnp.allclose(out, ref, atol=0.15), float(jnp.max(jnp.abs(out - ref)))
    print("KERNEL_OK")
</pallas_src>

<mosaic_0001>
module attributes {stable_mosaic.version = 11 : i64} {
  func.func @_cnn_fused_kernel(%arg0: i32, %arg1: memref<32x8x28xf32, #tpu.memory_space<vmem>>, %arg2: memref<2x5x28x120xbf16, #tpu.memory_space<vmem>>, %arg3: memref<1x120xf32, #tpu.memory_space<vmem>>, %arg4: memref<2x5x120x80xbf16, #tpu.memory_space<vmem>>, %arg5: memref<1x80xf32, #tpu.memory_space<vmem>>, %arg6: memref<4x80x50xbf16, #tpu.memory_space<vmem>>, %arg7: memref<1x50xf32, #tpu.memory_space<vmem>>, %arg8: memref<50x128xbf16, #tpu.memory_space<vmem>>, %arg9: memref<1x128xf32, #tpu.memory_space<vmem>>, %arg10: memref<8x128xf32, #tpu.memory_space<vmem>>) attributes {dimension_semantics = [#tpu.dimension_semantics<parallel>], iteration_bounds = array<i64: 1>, scalar_prefetch = 0 : i64, scratch_operands = 0 : i64, tpu.core_type = #tpu.core_type<tc>, window_params = [{transform_indices = @transform_0, window_bounds = array<i64: 32, 8, 28>}, {pipeline_mode = #tpu.pipeline_mode<synchronous>, transform_indices = @transform_1, window_bounds = array<i64: 2, 5, 28, 120>}, {pipeline_mode = #tpu.pipeline_mode<synchronous>, transform_indices = @transform_2, window_bounds = array<i64: 1, 120>}, {pipeline_mode = #tpu.pipeline_mode<synchronous>, transform_indices = @transform_3, window_bounds = array<i64: 2, 5, 120, 80>}, {pipeline_mode = #tpu.pipeline_mode<synchronous>, transform_indices = @transform_4, window_bounds = array<i64: 1, 80>}, {pipeline_mode = #tpu.pipeline_mode<synchronous>, transform_indices = @transform_5, window_bounds = array<i64: 4, 80, 50>}, {pipeline_mode = #tpu.pipeline_mode<synchronous>, transform_indices = @transform_6, window_bounds = array<i64: 1, 50>}, {pipeline_mode = #tpu.pipeline_mode<synchronous>, transform_indices = @transform_7, window_bounds = array<i64: 50, 128>}, {pipeline_mode = #tpu.pipeline_mode<synchronous>, transform_indices = @transform_8, window_bounds = array<i64: 1, 128>}, {transform_indices = @transform_9, window_bounds = array<i64: 8, 128>}]} {
    %c0 = arith.constant 0 : index
    %c0_0 = arith.constant 0 : index
    %c0_1 = arith.constant 0 : index
    %0 = vector.load %arg1[%c0, %c0_0, %c0_1] : memref<32x8x28xf32, #tpu.memory_space<vmem>>, vector<32x8x28xf32>
    %1 = vector.shape_cast %0 : vector<32x8x28xf32> to vector<256x28xf32>
    %2 = arith.truncf %1 : vector<256x28xf32> to vector<256x28xbf16>
    %cst = arith.constant 0.000000e+00 : f32
    %3 = vector.broadcast %cst : f32 to vector<24x8x120xf32>
    %cst_2 = arith.constant 0.000000e+00 : f32
    %4 = vector.broadcast %cst_2 : f32 to vector<24x8x120xf32>
    %c0_3 = arith.constant 0 : index
    %c0_4 = arith.constant 0 : index
    %c0_5 = arith.constant 0 : index
    %c0_6 = arith.constant 0 : index
    %5 = vector.load %arg2[%c0_3, %c0_4, %c0_5, %c0_6] : memref<2x5x28x120xbf16, #tpu.memory_space<vmem>>, vector<1x1x28x120xbf16>
    %6 = vector.shape_cast %5 : vector<1x1x28x120xbf16> to vector<28x120xbf16>
    %cst_7 = arith.constant dense<0.000000e+00> : vector<256x120xf32>
    %7 = tpu.matmul %2, %6, %cst_7 {dimension_numbers = #tpu.dot_dimension_numbers<[1], [0], [0], [1], [0, 0, 1, 1], [], []>} : vector<256x28xbf16>, vector<28x120xbf16>, vector<256x120xf32> -> vector<256x120xf32>
    %c1 = arith.constant 1 : index
    %c0_8 = arith.constant 0 : index
    %c0_9 = arith.constant 0 : index
    %c0_10 = arith.constant 0 : index
    %8 = vector.load %arg2[%c1, %c0_8, %c0_9, %c0_10] : memref<2x5x28x120xbf16, #tpu.memory_space<vmem>>, vector<1x1x28x120xbf16>
    %9 = vector.shape_cast %8 : vector<1x1x28x120xbf16> to vector<28x120xbf16>
    %cst_11 = arith.constant dense<0.000000e+00> : vector<256x120xf32>
    %10 = tpu.matmul %2, %9, %cst_11 {dimension_numbers = #tpu.dot_dimension_numbers<[1], [0], [0], [1], [0, 0, 1, 1], [], []>} : vector<256x28xbf16>, vector<28x120xbf16>, vector<256x120xf32> -> vector<256x120xf32>
    %11 = vector.shape_cast %7 : vector<256x120xf32> to vector<32x8x120xf32>
    %12 = vector.shape_cast %10 : vector<256x120xf32> to vector<32x8x120xf32>
    %13 = vector.extract_strided_slice %11 {offsets = [0, 0, 0], sizes = [24, 8, 120], strides = [1, 1, 1]} : vector<32x8x120xf32> to vector<24x8x120xf32>
    %14 = arith.addf %3, %13 : vector<24x8x120xf32>
    %15 = vector.extract_strided_slice %12 {offsets = [0, 0, 0], sizes = [24, 8, 120], strides = [1, 1, 1]} : vector<32x8x120xf32> to vector<24x8x120xf32>
    %16 = arith.addf %4, %15 : vector<24x8x120xf32>
    %c0_12 = arith.constant 0 : index
    %c1_13 = arith.constant 1 : index
    %c0_14 = arith.constant 0 : index
    %c0_15 = arith.constant 0 : index
    %17 = vector.load %arg2[%c0_12, %c1_13, %c0_14, %c0_15] : memref<2x5x28x120xbf16, #tpu.memory_space<vmem>>, vector<1x1x28x120xbf16>
    %18 = vector.shape_cast %17 : vector<1x1x28x120xbf16> to vector<28x120xbf16>
    %cst_16 = arith.constant dense<0.000000e+00> : vector<256x120xf32>
    %19 = tpu.matmul %2, %18, %cst_16 {dimension_numbers = #tpu.dot_dimension_numbers<[1], [0], [0], [1], [0, 0, 1, 1], [], []>} : vector<256x28xbf16>, vector<28x120xbf16>, vector<256x120xf32> -> vector<256x120xf32>
    %c1_17 = arith.constant 1 : index
    %c1_18 = arith.constant 1 : index
    %c0_19 = arith.constant 0 : index
    %c0_20 = arith.constant 0 : index
    %20 = vector.load %arg2[%c1_17, %c1_18, %c0_19, %c0_20] : memref<2x5x28x120xbf16, #tpu.memory_space<vmem>>, vector<1x1x28x120xbf16>
    %21 = vector.shape_cast %20 : vector<1x1x28x120xbf16> to vector<28x120xbf16>
    %cst_21 = arith.constant dense<0.000000e+00> : vector<256x120xf32>
    %22 = tpu.matmul %2, %21, %cst_21 {dimension_numbers = #tpu.dot_dimension_numbers<[1], [0], [0], [1], [0, 0, 1, 1], [], []>} : vector<256x28xbf16>, vector<28x120xbf16>, vector<256x120xf32> -> vector<256x120xf32>
    %23 = vector.shape_cast %19 : vector<256x120xf32> to vector<32x8x120xf32>
    %24 = vector.shape_cast %22 : vector<256x120xf32> to vector<32x8x120xf32>
    %25 = vector.extract_strided_slice %23 {offsets = [1, 0, 0], sizes = [24, 8, 120], strides = [1, 1, 1]} : vector<32x8x120xf32> to vector<24x8x120xf32>
    %26 = arith.addf %14, %25 : vector<24x8x120xf32>
    %27 = vector.extract_strided_slice %24 {offsets = [1, 0, 0], sizes = [24, 8, 120], strides = [1, 1, 1]} : vector<32x8x120xf32> to vector<24x8x120xf32>
    %28 = arith.addf %16, %27 : vector<24x8x120xf32>
    %c0_22 = arith.constant 0 : index
    %c2 = arith.constant 2 : index
    %c0_23 = arith.constant 0 : index
    %c0_24 = arith.constant 0 : index
    %29 = vector.load %arg2[%c0_22, %c2, %c0_23, %c0_24] : memref<2x5x28x120xbf16, #tpu.memory_space<vmem>>, vector<1x1x28x120xbf16>
    %30 = vector.shape_cast %29 : vector<1x1x28x120xbf16> to vector<28x120xbf16>
    %cst_25 = arith.constant dense<0.000000e+00> : vector<256x120xf32>
    %31 = tpu.matmul %2, %30, %cst_25 {dimension_numbers = #tpu.dot_dimension_numbers<[1], [0], [0], [1], [0, 0, 1, 1], [], []>} : vector<256x28xbf16>, vector<28x120xbf16>, vector<256x120xf32> -> vector<256x120xf32>
    %c1_26 = arith.constant 1 : index
    %c2_27 = arith.constant 2 : index
    %c0_28 = arith.constant 0 : index
    %c0_29 = arith.constant 0 : index
    %32 = vector.load %arg2[%c1_26, %c2_27, %c0_28, %c0_29] : memref<2x5x28x120xbf16, #tpu.memory_space<vmem>>, vector<1x1x28x120xbf16>
    %33 = vector.shape_cast %32 : vector<1x1x28x120xbf16> to vector<28x120xbf16>
    %cst_30 = arith.constant dense<0.000000e+00> : vector<256x120xf32>
    %34 = tpu.matmul %2, %33, %cst_30 {dimension_numbers = #tpu.dot_dimension_numbers<[1], [0], [0], [1], [0, 0, 1, 1], [], []>} : vector<256x28xbf16>, vector<28x120xbf16>, vector<256x120xf32> -> vector<256x120xf32>
    %35 = vector.shape_cast %31 : vector<256x120xf32> to vector<32x8x120xf32>
    %36 = vector.shape_cast %34 : vector<256x120xf32> to vector<32x8x120xf32>
    %37 = vector.extract_strided_slice %35 {offsets = [2, 0, 0], sizes = [24, 8, 120], strides = [1, 1, 1]} : vector<32x8x120xf32> to vector<24x8x120xf32>
    %38 = arith.addf %26, %37 : vector<24x8x120xf32>
    %39 = vector.extract_strided_slice %36 {offsets = [2, 0, 0], sizes = [24, 8, 120], strides = [1, 1, 1]} : vector<32x8x120xf32> to vector<24x8x120xf32>
    %40 = arith.addf %28, %39 : vector<24x8x120xf32>
    %c0_31 = arith.constant 0 : index
    %c3 = arith.constant 3 : index
    %c0_32 = arith.constant 0 : index
    %c0_33 = arith.constant 0 : index
    %41 = vector.load %arg2[%c0_31, %c3, %c0_32, %c0_33] : memref<2x5x28x120xbf16, #tpu.memory_space<vmem>>, vector<1x1x28x120xbf16>
    %42 = vector.shape_cast %41 : vector<1x1x28x120xbf16> to vector<28x120xbf16>
    %cst_34 = arith.constant dense<0.000000e+00> : vector<256x120xf32>
    %43 = tpu.matmul %2, %42, %cst_34 {dimension_numbers = #tpu.dot_dimension_numbers<[1], [0], [0], [1], [0, 0, 1, 1], [], []>} : vector<256x28xbf16>, vector<28x120xbf16>, vector<256x120xf32> -> vector<256x120xf32>
    %c1_35 = arith.constant 1 : index
    %c3_36 = arith.constant 3 : index
    %c0_37 = arith.constant 0 : index
    %c0_38 = arith.constant 0 : index
    %44 = vector.load %arg2[%c1_35, %c3_36, %c0_37, %c0_38] : memref<2x5x28x120xbf16, #tpu.memory_space<vmem>>, vector<1x1x28x120xbf16>
    %45 = vector.shape_cast %44 : vector<1x1x28x120xbf16> to vector<28x120xbf16>
    %cst_39 = arith.constant dense<0.000000e+00> : vector<256x120xf32>
    %46 = tpu.matmul %2, %45, %cst_39 {dimension_numbers = #tpu.dot_dimension_numbers<[1], [0], [0], [1], [0, 0, 1, 1], [], []>} : vector<256x28xbf16>, vector<28x120xbf16>, vector<256x120xf32> -> vector<256x120xf32>
    %47 = vector.shape_cast %43 : vector<256x120xf32> to vector<32x8x120xf32>
    %48 = vector.shape_cast %46 : vector<256x120xf32> to vector<32x8x120xf32>
    %49 = vector.extract_strided_slice %47 {offsets = [3, 0, 0], sizes = [24, 8, 120], strides = [1, 1, 1]} : vector<32x8x120xf32> to vector<24x8x120xf32>
    %50 = arith.addf %38, %49 : vector<24x8x120xf32>
    %51 = vector.extract_strided_slice %48 {offsets = [3, 0, 0], sizes = [24, 8, 120], strides = [1, 1, 1]} : vector<32x8x120xf32> to vector<24x8x120xf32>
    %52 = arith.addf %40, %51 : vector<24x8x120xf32>
    %c0_40 = arith.constant 0 : index
    %c4 = arith.constant 4 : index
    %c0_41 = arith.constant 0 : index
    %c0_42 = arith.constant 0 : index
    %53 = vector.load %arg2[%c0_40, %c4, %c0_41, %c0_42] : memref<2x5x28x120xbf16, #tpu.memory_space<vmem>>, vector<1x1x28x120xbf16>
    %54 = vector.shape_cast %53 : vector<1x1x28x120xbf16> to vector<28x120xbf16>
    %cst_43 = arith.constant dense<0.000000e+00> : vector<256x120xf32>
    %55 = tpu.matmul %2, %54, %cst_43 {dimension_numbers = #tpu.dot_dimension_numbers<[1], [0], [0], [1], [0, 0, 1, 1], [], []>} : vector<256x28xbf16>, vector<28x120xbf16>, vector<256x120xf32> -> vector<256x120xf32>
    %c1_44 = arith.constant 1 : index
    %c4_45 = arith.constant 4 : index
    %c0_46 = arith.constant 0 : index
    %c0_47 = arith.constant 0 : index
    %56 = vector.load %arg2[%c1_44, %c4_45, %c0_46, %c0_47] : memref<2x5x28x120xbf16, #tpu.memory_space<vmem>>, vector<1x1x28x120xbf16>
    %57 = vector.shape_cast %56 : vector<1x1x28x120xbf16> to vector<28x120xbf16>
    %cst_48 = arith.constant dense<0.000000e+00> : vector<256x120xf32>
    %58 = tpu.matmul %2, %57, %cst_48 {dimension_numbers = #tpu.dot_dimension_numbers<[1], [0], [0], [1], [0, 0, 1, 1], [], []>} : vector<256x28xbf16>, vector<28x120xbf16>, vector<256x120xf32> -> vector<256x120xf32>
    %59 = vector.shape_cast %55 : vector<256x120xf32> to vector<32x8x120xf32>
    %60 = vector.shape_cast %58 : vector<256x120xf32> to vector<32x8x120xf32>
    %61 = vector.extract_strided_slice %59 {offsets = [4, 0, 0], sizes = [24, 8, 120], strides = [1, 1, 1]} : vector<32x8x120xf32> to vector<24x8x120xf32>
    %62 = arith.addf %50, %61 : vector<24x8x120xf32>
    %63 = vector.extract_strided_slice %60 {offsets = [4, 0, 0], sizes = [24, 8, 120], strides = [1, 1, 1]} : vector<32x8x120xf32> to vector<24x8x120xf32>
    %64 = arith.addf %52, %63 : vector<24x8x120xf32>
    %65 = vector.shape_cast %62 : vector<24x8x120xf32> to vector<12x2x8x120xf32>
    %cst_49 = arith.constant dense<0xFF800000> : vector<12x8x120xf32>
    %66 = vector.multi_reduction <maximumf>, %65, %cst_49 [1] : vector<12x2x8x120xf32> to vector<12x8x120xf32>
    %67 = vector.shape_cast %64 : vector<24x8x120xf32> to vector<12x2x8x120xf32>
    %cst_50 = arith.constant dense<0xFF800000> : vector<12x8x120xf32>
    %68 = vector.multi_reduction <maximumf>, %67, %cst_50 [1] : vector<12x2x8x120xf32> to vector<12x8x120xf32>
    %69 = arith.maximumf %66, %68 : vector<12x8x120xf32>
    %c0_51 = arith.constant 0 : index
    %c0_52 = arith.constant 0 : index
    %70 = vector.load %arg3[%c0_51, %c0_52] : memref<1x120xf32, #tpu.memory_space<vmem>>, vector<1x120xf32>
    %71 = vector.shape_cast %70 : vector<1x120xf32> to vector<1x1x120xf32>
    %72 = vector.broadcast %71 : vector<1x1x120xf32> to vector<12x8x120xf32>
    %73 = arith.addf %69, %72 : vector<12x8x120xf32>
    %cst_53 = arith.constant 0.000000e+00 : f32
    %74 = vector.broadcast %cst_53 : f32 to vector<12x8x120xf32>
    %75 = arith.maximumf %73, %74 : vector<12x8x120xf32>
    %76 = vector.shape_cast %75 : vector<12x8x120xf32> to vector<96x120xf32>
    %77 = arith.truncf %76 : vector<96x120xf32> to vector<96x120xbf16>
    %cst_54 = arith.constant 0.000000e+00 : f32
    %78 = vector.broadcast %cst_54 : f32 to vector<8x8x80xf32>
    %cst_55 = arith.constant 0.000000e+00 : f32
    %79 = vector.broadcast %cst_55 : f32 to vector<8x8x80xf32>
    %c0_56 = arith.constant 0 : index
    %c0_57 = arith.constant 0 : index
    %c0_58 = arith.constant 0 : index
    %c0_59 = arith.constant 0 : index
    %80 = vector.load %arg4[%c0_56, %c0_57, %c0_58, %c0_59] : memref<2x5x120x80xbf16, #tpu.memory_space<vmem>>, vector<1x1x120x80xbf16>
    %81 = vector.shape_cast %80 : vector<1x1x120x80xbf16> to vector<120x80xbf16>
    %cst_60 = arith.constant dense<0.000000e+00> : vector<96x80xf32>
    %82 = tpu.matmul %77, %81, %cst_60 {dimension_numbers = #tpu.dot_dimension_numbers<[1], [0], [0], [1], [0, 0, 1, 1], [], []>} : vector<96x120xbf16>, vector<120x80xbf16>, vector<96x80xf32> -> vector<96x80xf32>
    %c1_61 = arith.constant 1 : index
    %c0_62 = arith.constant 0 : index
    %c0_63 = arith.constant 0 : index
    %c0_64 = arith.constant 0 : index
    %83 = vector.load %arg4[%c1_61, %c0_62, %c0_63, %c0_64] : memref<2x5x120x80xbf16, #tpu.memory_space<vmem>>, vector<1x1x120x80xbf16>
    %84 = vector.shape_cast %83 : vector<1x1x120x80xbf16> to vector<120x80xbf16>
    %cst_65 = arith.constant dense<0.000000e+00> : vector<96x80xf32>
    %85 = tpu.matmul %77, %84, %cst_65 {dimension_numbers = #tpu.dot_dimension_numbers<[1], [0], [0], [1], [0, 0, 1, 1], [], []>} : vector<96x120xbf16>, vector<120x80xbf16>, vector<96x80xf32> -> vector<96x80xf32>
    %86 = vector.shape_cast %82 : vector<96x80xf32> to vector<12x8x80xf32>
    %87 = vector.shape_cast %85 : vector<96x80xf32> to vector<12x8x80xf32>
    %88 = vector.extract_strided_slice %86 {offsets = [0, 0, 0], sizes = [8, 8, 80], strides = [1, 1, 1]} : vector<12x8x80xf32> to vector<8x8x80xf32>
    %89 = arith.addf %78, %88 : vector<8x8x80xf32>
    %90 = vector.extract_strided_slice %87 {offsets = [0, 0, 0], sizes = [8, 8, 80], strides = [1, 1, 1]} : vector<12x8x80xf32> to vector<8x8x80xf32>
    %91 = arith.addf %79, %90 : vector<8x8x80xf32>
    %c0_66 = arith.constant 0 : index
    %c1_67 = arith.constant 1 : index
    %c0_68 = arith.constant 0 : index
    %c0_69 = arith.constant 0 : index
    %92 = vector.load %arg4[%c0_66, %c1_67, %c0_68, %c0_69] : memref<2x5x120x80xbf16, #tpu.memory_space<vmem>>, vector<1x1x120x80xbf16>
    %93 = vector.shape_cast %92 : vector<1x1x120x80xbf16> to vector<120x80xbf16>
    %cst_70 = arith.constant dense<0.000000e+00> : vector<96x80xf32>
    %94 = tpu.matmul %77, %93, %cst_70 {dimension_numbers = #tpu.dot_dimension_numbers<[1], [0], [0], [1], [0, 0, 1, 1], [], []>} : vector<96x120xbf16>, vector<120x80xbf16>, vector<96x80xf32> -> vector<96x80xf32>
    %c1_71 = arith.constant 1 : index
    %c1_72 = arith.constant 1 : index
    %c0_73 = arith.constant 0 : index
    %c0_74 = arith.constant 0 : index
    %95 = vector.load %arg4[%c1_71, %c1_72, %c0_73, %c0_74] : memref<2x5x120x80xbf16, #tpu.memory_space<vmem>>, vector<1x1x120x80xbf16>
    %96 = vector.shape_cast %95 : vector<1x1x120x80xbf16> to vector<120x80xbf16>
    %cst_75 = arith.constant dense<0.000000e+00> : vector<96x80xf32>
    %97 = tpu.matmul %77, %96, %cst_75 {dimension_numbers = #tpu.dot_dimension_numbers<[1], [0], [0], [1], [0, 0, 1, 1], [], []>} : vector<96x120xbf16>, vector<120x80xbf16>, vector<96x80xf32> -> vector<96x80xf32>
    %98 = vector.shape_cast %94 : vector<96x80xf32> to vector<12x8x80xf32>
    %99 = vector.shape_cast %97 : vector<96x80xf32> to vector<12x8x80xf32>
    %100 = vector.extract_strided_slice %98 {offsets = [1, 0, 0], sizes = [8, 8, 80], strides = [1, 1, 1]} : vector<12x8x80xf32> to vector<8x8x80xf32>
    %101 = arith.addf %89, %100 : vector<8x8x80xf32>
    %102 = vector.extract_strided_slice %99 {offsets = [1, 0, 0], sizes = [8, 8, 80], strides = [1, 1, 1]} : vector<12x8x80xf32> to vector<8x8x80xf32>
    %103 = arith.addf %91, %102 : vector<8x8x80xf32>
    %c0_76 = arith.constant 0 : index
    %c2_77 = arith.constant 2 : index
    %c0_78 = arith.constant 0 : index
    %c0_79 = arith.constant 0 : index
    %104 = vector.load %arg4[%c0_76, %c2_77, %c0_78, %c0_79] : memref<2x5x120x80xbf16, #tpu.memory_space<vmem>>, vector<1x1x120x80xbf16>
    %105 = vector.shape_cast %104 : vector<1x1x120x80xbf16> to vector<120x80xbf16>
    %cst_80 = arith.constant dense<0.000000e+00> : vector<96x80xf32>
    %106 = tpu.matmul %77, %105, %cst_80 {dimension_numbers = #tpu.dot_dimension_numbers<[1], [0], [0], [1], [0, 0, 1, 1], [], []>} : vector<96x120xbf16>, vector<120x80xbf16>, vector<96x80xf32> -> vector<96x80xf32>
    %c1_81 = arith.constant 1 : index
    %c2_82 = arith.constant 2 : index
    %c0_83 = arith.constant 0 : index
    %c0_84 = arith.constant 0 : index
    %107 = vector.load %arg4[%c1_81, %c2_82, %c0_83, %c0_84] : memref<2x5x120x80xbf16, #tpu.memory_space<vmem>>, vector<1x1x120x80xbf16>
    %108 = vector.shape_cast %107 : vector<1x1x120x80xbf16> to vector<120x80xbf16>
    %cst_85 = arith.constant dense<0.000000e+00> : vector<96x80xf32>
    %109 = tpu.matmul %77, %108, %cst_85 {dimension_numbers = #tpu.dot_dimension_numbers<[1], [0], [0], [1], [0, 0, 1, 1], [], []>} : vector<96x120xbf16>, vector<120x80xbf16>, vector<96x80xf32> -> vector<96x80xf32>
    %110 = vector.shape_cast %106 : vector<96x80xf32> to vector<12x8x80xf32>
    %111 = vector.shape_cast %109 : vector<96x80xf32> to vector<12x8x80xf32>
    %112 = vector.extract_strided_slice %110 {offsets = [2, 0, 0], sizes = [8, 8, 80], strides = [1, 1, 1]} : vector<12x8x80xf32> to vector<8x8x80xf32>
    %113 = arith.addf %101, %112 : vector<8x8x80xf32>
    %114 = vector.extract_strided_slice %111 {offsets = [2, 0, 0], sizes = [8, 8, 80], strides = [1, 1, 1]} : vector<12x8x80xf32> to vector<8x8x80xf32>
    %115 = arith.addf %103, %114 : vector<8x8x80xf32>
    %c0_86 = arith.constant 0 : index
    %c3_87 = arith.constant 3 : index
    %c0_88 = arith.constant 0 : index
    %c0_89 = arith.constant 0 : index
    %116 = vector.load %arg4[%c0_86, %c3_87, %c0_88, %c0_89] : memref<2x5x120x80xbf16, #tpu.memory_space<vmem>>, vector<1x1x120x80xbf16>
    %117 = vector.shape_cast %116 : vector<1x1x120x80xbf16> to vector<120x80xbf16>
    %cst_90 = arith.constant dense<0.000000e+00> : vector<96x80xf32>
    %118 = tpu.matmul %77, %117, %cst_90 {dimension_numbers = #tpu.dot_dimension_numbers<[1], [0], [0], [1], [0, 0, 1, 1], [], []>} : vector<96x120xbf16>, vector<120x80xbf16>, vector<96x80xf32> -> vector<96x80xf32>
    %c1_91 = arith.constant 1 : index
    %c3_92 = arith.constant 3 : index
    %c0_93 = arith.constant 0 : index
    %c0_94 = arith.constant 0 : index
    %119 = vector.load %arg4[%c1_91, %c3_92, %c0_93, %c0_94] : memref<2x5x120x80xbf16, #tpu.memory_space<vmem>>, vector<1x1x120x80xbf16>
    %120 = vector.shape_cast %119 : vector<1x1x120x80xbf16> to vector<120x80xbf16>
    %cst_95 = arith.constant dense<0.000000e+00> : vector<96x80xf32>
    %121 = tpu.matmul %77, %120, %cst_95 {dimension_numbers = #tpu.dot_dimension_numbers<[1], [0], [0], [1], [0, 0, 1, 1], [], []>} : vector<96x120xbf16>, vector<120x80xbf16>, vector<96x80xf32> -> vector<96x80xf32>
    %122 = vector.shape_cast %118 : vector<96x80xf32> to vector<12x8x80xf32>
    %123 = vector.shape_cast %121 : vector<96x80xf32> to vector<12x8x80xf32>
    %124 = vector.extract_strided_slice %122 {offsets = [3, 0, 0], sizes = [8, 8, 80], strides = [1, 1, 1]} : vector<12x8x80xf32> to vector<8x8x80xf32>
    %125 = arith.addf %113, %124 : vector<8x8x80xf32>
    %126 = vector.extract_strided_slice %123 {offsets = [3, 0, 0], sizes = [8, 8, 80], strides = [1, 1, 1]} : vector<12x8x80xf32> to vector<8x8x80xf32>
    %127 = arith.addf %115, %126 : vector<8x8x80xf32>
    %c0_96 = arith.constant 0 : index
    %c4_97 = arith.constant 4 : index
    %c0_98 = arith.constant 0 : index
    %c0_99 = arith.constant 0 : index
    %128 = vector.load %arg4[%c0_96, %c4_97, %c0_98, %c0_99] : memref<2x5x120x80xbf16, #tpu.memory_space<vmem>>, vector<1x1x120x80xbf16>
    %129 = vector.shape_cast %128 : vector<1x1x120x80xbf16> to vector<120x80xbf16>
    %cst_100 = arith.constant dense<0.000000e+00> : vector<96x80xf32>
    %130 = tpu.matmul %77, %129, %cst_100 {dimension_numbers = #tpu.dot_dimension_numbers<[1], [0], [0], [1], [0, 0, 1, 1], [], []>} : vector<96x120xbf16>, vector<120x80xbf16>, vector<96x80xf32> -> vector<96x80xf32>
    %c1_101 = arith.constant 1 : index
    %c4_102 = arith.constant 4 : index
    %c0_103 = arith.constant 0 : index
    %c0_104 = arith.constant 0 : index
    %131 = vector.load %arg4[%c1_101, %c4_102, %c0_103, %c0_104] : memref<2x5x120x80xbf16, #tpu.memory_space<vmem>>, vector<1x1x120x80xbf16>
    %132 = vector.shape_cast %131 : vector<1x1x120x80xbf16> to vector<120x80xbf16>
    %cst_105 = arith.constant dense<0.000000e+00> : vector<96x80xf32>
    %133 = tpu.matmul %77, %132, %cst_105 {dimension_numbers = #tpu.dot_dimension_numbers<[1], [0], [0], [1], [0, 0, 1, 1], [], []>} : vector<96x120xbf16>, vector<120x80xbf16>, vector<96x80xf32> -> vector<96x80xf32>
    %134 = vector.shape_cast %130 : vector<96x80xf32> to vector<12x8x80xf32>
    %135 = vector.shape_cast %133 : vector<96x80xf32> to vector<12x8x80xf32>
    %136 = vector.extract_strided_slice %134 {offsets = [4, 0, 0], sizes = [8, 8, 80], strides = [1, 1, 1]} : vector<12x8x80xf32> to vector<8x8x80xf32>
    %137 = arith.addf %125, %136 : vector<8x8x80xf32>
    %138 = vector.extract_strided_slice %135 {offsets = [4, 0, 0], sizes = [8, 8, 80], strides = [1, 1, 1]} : vector<12x8x80xf32> to vector<8x8x80xf32>
    %139 = arith.addf %127, %138 : vector<8x8x80xf32>
    %140 = vector.shape_cast %137 : vector<8x8x80xf32> to vector<4x2x8x80xf32>
    %cst_106 = arith.constant dense<0xFF800000> : vector<4x8x80xf32>
    %141 = vector.multi_reduction <maximumf>, %140, %cst_106 [1] : vector<4x2x8x80xf32> to vector<4x8x80xf32>
    %142 = vector.shape_cast %139 : vector<8x8x80xf32> to vector<4x2x8x80xf32>
    %cst_107 = arith.constant dense<0xFF800000> : vector<4x8x80xf32>
    %143 = vector.multi_reduction <maximumf>, %142, %cst_107 [1] : vector<4x2x8x80xf32> to vector<4x8x80xf32>
    %144 = arith.maximumf %141, %143 : vector<4x8x80xf32>
    %c0_108 = arith.constant 0 : index
    %c0_109 = arith.constant 0 : index
    %145 = vector.load %arg5[%c0_108, %c0_109] : memref<1x80xf32, #tpu.memory_space<vmem>>, vector<1x80xf32>
    %146 = vector.shape_cast %145 : vector<1x80xf32> to vector<1x1x80xf32>
    %147 = vector.broadcast %146 : vector<1x1x80xf32> to vector<4x8x80xf32>
    %148 = arith.addf %144, %147 : vector<4x8x80xf32>
    %cst_110 = arith.constant 0.000000e+00 : f32
    %149 = vector.broadcast %cst_110 : f32 to vector<4x8x80xf32>
    %150 = arith.maximumf %148, %149 : vector<4x8x80xf32>
    %cst_111 = arith.constant 0.000000e+00 : f32
    %151 = vector.broadcast %cst_111 : f32 to vector<8x50xf32>
    %152 = vector.extract_strided_slice %150 {offsets = [0, 0, 0], sizes = [1, 8, 80], strides = [1, 1, 1]} : vector<4x8x80xf32> to vector<1x8x80xf32>
    %153 = vector.shape_cast %152 : vector<1x8x80xf32> to vector<8x80xf32>
    %154 = arith.truncf %153 : vector<8x80xf32> to vector<8x80xbf16>
    %c0_112 = arith.constant 0 : index
    %c0_113 = arith.constant 0 : index
    %c0_114 = arith.constant 0 : index
    %155 = vector.load %arg6[%c0_112, %c0_113, %c0_114] : memref<4x80x50xbf16, #tpu.memory_space<vmem>>, vector<1x80x50xbf16>
    %156 = vector.shape_cast %155 : vector<1x80x50xbf16> to vector<80x50xbf16>
    %cst_115 = arith.constant dense<0.000000e+00> : vector<8x50xf32>
    %157 = tpu.matmul %154, %156, %cst_115 {dimension_numbers = #tpu.dot_dimension_numbers<[1], [0], [0], [1], [0, 0, 1, 1], [], []>} : vector<8x80xbf16>, vector<80x50xbf16>, vector<8x50xf32> -> vector<8x50xf32>
    %158 = arith.addf %151, %157 : vector<8x50xf32>
    %159 = vector.extract_strided_slice %150 {offsets = [1, 0, 0], sizes = [1, 8, 80], strides = [1, 1, 1]} : vector<4x8x80xf32> to vector<1x8x80xf32>
    %160 = vector.shape_cast %159 : vector<1x8x80xf32> to vector<8x80xf32>
    %161 = arith.truncf %160 : vector<8x80xf32> to vector<8x80xbf16>
    %c1_116 = arith.constant 1 : index
    %c0_117 = arith.constant 0 : index
    %c0_118 = arith.constant 0 : index
    %162 = vector.load %arg6[%c1_116, %c0_117, %c0_118] : memref<4x80x50xbf16, #tpu.memory_space<vmem>>, vector<1x80x50xbf16>
    %163 = vector.shape_cast %162 : vector<1x80x50xbf16> to vector<80x50xbf16>
    %cst_119 = arith.constant dense<0.000000e+00> : vector<8x50xf32>
    %164 = tpu.matmul %161, %163, %cst_119 {dimension_numbers = #tpu.dot_dimension_numbers<[1], [0], [0], [1], [0, 0, 1, 1], [], []>} : vector<8x80xbf16>, vector<80x50xbf16>, vector<8x50xf32> -> vector<8x50xf32>
    %165 = arith.addf %158, %164 : vector<8x50xf32>
    %166 = vector.extract_strided_slice %150 {offsets = [2, 0, 0], sizes = [1, 8, 80], strides = [1, 1, 1]} : vector<4x8x80xf32> to vector<1x8x80xf32>
    %167 = vector.shape_cast %166 : vector<1x8x80xf32> to vector<8x80xf32>
    %168 = arith.truncf %167 : vector<8x80xf32> to vector<8x80xbf16>
    %c2_120 = arith.constant 2 : index
    %c0_121 = arith.constant 0 : index
    %c0_122 = arith.constant 0 : index
    %169 = vector.load %arg6[%c2_120, %c0_121, %c0_122] : memref<4x80x50xbf16, #tpu.memory_space<vmem>>, vector<1x80x50xbf16>
    %170 = vector.shape_cast %169 : vector<1x80x50xbf16> to vector<80x50xbf16>
    %cst_123 = arith.constant dense<0.000000e+00> : vector<8x50xf32>
    %171 = tpu.matmul %168, %170, %cst_123 {dimension_numbers = #tpu.dot_dimension_numbers<[1], [0], [0], [1], [0, 0, 1, 1], [], []>} : vector<8x80xbf16>, vector<80x50xbf16>, vector<8x50xf32> -> vector<8x50xf32>
    %172 = arith.addf %165, %171 : vector<8x50xf32>
    %173 = vector.extract_strided_slice %150 {offsets = [3, 0, 0], sizes = [1, 8, 80], strides = [1, 1, 1]} : vector<4x8x80xf32> to vector<1x8x80xf32>
    %174 = vector.shape_cast %173 : vector<1x8x80xf32> to vector<8x80xf32>
    %175 = arith.truncf %174 : vector<8x80xf32> to vector<8x80xbf16>
    %c3_124 = arith.constant 3 : index
    %c0_125 = arith.constant 0 : index
    %c0_126 = arith.constant 0 : index
    %176 = vector.load %arg6[%c3_124, %c0_125, %c0_126] : memref<4x80x50xbf16, #tpu.memory_space<vmem>>, vector<1x80x50xbf16>
    %177 = vector.shape_cast %176 : vector<1x80x50xbf16> to vector<80x50xbf16>
    %cst_127 = arith.constant dense<0.000000e+00> : vector<8x50xf32>
    %178 = tpu.matmul %175, %177, %cst_127 {dimension_numbers = #tpu.dot_dimension_numbers<[1], [0], [0], [1], [0, 0, 1, 1], [], []>} : vector<8x80xbf16>, vector<80x50xbf16>, vector<8x50xf32> -> vector<8x50xf32>
    %179 = arith.addf %172, %178 : vector<8x50xf32>
    %c0_128 = arith.constant 0 : index
    %c0_129 = arith.constant 0 : index
    %180 = vector.load %arg7[%c0_128, %c0_129] : memref<1x50xf32, #tpu.memory_space<vmem>>, vector<1x50xf32>
    %181 = vector.broadcast %180 : vector<1x50xf32> to vector<8x50xf32>
    %182 = arith.addf %179, %181 : vector<8x50xf32>
    %cst_130 = arith.constant 0.000000e+00 : f32
    %183 = vector.broadcast %cst_130 : f32 to vector<8x50xf32>
    %184 = arith.maximumf %182, %183 : vector<8x50xf32>
    %185 = arith.truncf %184 : vector<8x50xf32> to vector<8x50xbf16>
    %c0_131 = arith.constant 0 : index
    %c0_132 = arith.constant 0 : index
    %186 = vector.load %arg8[%c0_131, %c0_132] : memref<50x128xbf16, #tpu.memory_space<vmem>>, vector<50x128xbf16>
    %cst_133 = arith.constant dense<0.000000e+00> : vector<8x128xf32>
    %187 = tpu.matmul %185, %186, %cst_133 {dimension_numbers = #tpu.dot_dimension_numbers<[1], [0], [0], [1], [0, 0, 1, 1], [], []>} : vector<8x50xbf16>, vector<50x128xbf16>, vector<8x128xf32> -> vector<8x128xf32>
    %c0_134 = arith.constant 0 : index
    %c0_135 = arith.constant 0 : index
    %188 = vector.load %arg9[%c0_134, %c0_135] : memref<1x128xf32, #tpu.memory_space<vmem>>, vector<1x128xf32>
    %189 = vector.broadcast %188 : vector<1x128xf32> to vector<8x128xf32>
    %190 = arith.addf %187, %189 : vector<8x128xf32>
    %cst_136 = arith.constant dense<0xFF800000> : vector<8xf32>
    %191 = vector.multi_reduction <maximumf>, %190, %cst_136 [1] : vector<8x128xf32> to vector<8xf32>
    %192 = vector.shape_cast %191 : vector<8xf32> to vector<8x1xf32>
    %193 = vector.broadcast %192 : vector<8x1xf32> to vector<8x128xf32>
    %194 = arith.subf %190, %193 : vector<8x128xf32>
    %195 = math.exp %194 : vector<8x128xf32>
    %cst_137 = arith.constant dense<0.000000e+00> : vector<8xf32>
    %196 = vector.multi_reduction <add>, %195, %cst_137 [1] : vector<8x128xf32> to vector<8xf32>
    %197 = vector.shape_cast %196 : vector<8xf32> to vector<8x1xf32>
    %198 = math.log %197 : vector<8x1xf32>
    %199 = vector.broadcast %198 : vector<8x1xf32> to vector<8x128xf32>
    %200 = arith.subf %194, %199 : vector<8x128xf32>
    %c0_138 = arith.constant 0 : index
    %c0_139 = arith.constant 0 : index
    %201 = vector.load %arg10[%c0_138, %c0_139] : memref<8x128xf32, #tpu.memory_space<vmem>>, vector<8x128xf32>
    tpu.vector_store %arg10[%c0_138, %c0_139], %200 {strides = array<i32>} : memref<8x128xf32, #tpu.memory_space<vmem>>, vector<8x128xf32>,
    return
  }
  func.func @transform_0(%arg0: i32) -> (i32, i32, i32) {
    %c0_i32 = arith.constant 0 : i32
    %c0_i32_0 = arith.constant 0 : i32
    %c0_i32_1 = arith.constant 0 : i32
    return %c0_i32, %arg0, %c0_i32_0 : i32, i32, i32
  }
  func.func @transform_1(%arg0: i32) -> (i32, i32, i32, i32) {
    %c0_i32 = arith.constant 0 : i32
    %c0_i32_0 = arith.constant 0 : i32
    %c0_i32_1 = arith.constant 0 : i32
    %c0_i32_2 = arith.constant 0 : i32
    %c0_i32_3 = arith.constant 0 : i32
    return %c0_i32, %c0_i32_0, %c0_i32_1, %c0_i32_2 : i32, i32, i32, i32
  }
  func.func @transform_2(%arg0: i32) -> (i32, i32) {
    %c0_i32 = arith.constant 0 : i32
    %c0_i32_0 = arith.constant 0 : i32
    %c0_i32_1 = arith.constant 0 : i32
    return %c0_i32, %c0_i32_0 : i32, i32
  }
  func.func @transform_3(%arg0: i32) -> (i32, i32, i32, i32) {
    %c0_i32 = arith.constant 0 : i32
    %c0_i32_0 = arith.constant 0 : i32
    %c0_i32_1 = arith.constant 0 : i32
    %c0_i32_2 = arith.constant 0 : i32
    %c0_i32_3 = arith.constant 0 : i32
    return %c0_i32, %c0_i32_0, %c0_i32_1, %c0_i32_2 : i32, i32, i32, i32
  }
  func.func @transform_4(%arg0: i32) -> (i32, i32) {
    %c0_i32 = arith.constant 0 : i32
    %c0_i32_0 = arith.constant 0 : i32
    %c0_i32_1 = arith.constant 0 : i32
    return %c0_i32, %c0_i32_0 : i32, i32
  }
  func.func @transform_5(%arg0: i32) -> (i32, i32, i32) {
    %c0_i32 = arith.constant 0 : i32
    %c0_i32_0 = arith.constant 0 : i32
    %c0_i32_1 = arith.constant 0 : i32
    %c0_i32_2 = arith.constant 0 : i32
    return %c0_i32, %c0_i32_0, %c0_i32_1 : i32, i32, i32
  }
  func.func @transform_6(%arg0: i32) -> (i32, i32) {
    %c0_i32 = arith.constant 0 : i32
    %c0_i32_0 = arith.constant 0 : i32
    %c0_i32_1 = arith.constant 0 : i32
    return %c0_i32, %c0_i32_0 : i32, i32
  }
  func.func @transform_7(%arg0: i32) -> (i32, i32) {
    %c0_i32 = arith.constant 0 : i32
    %c0_i32_0 = arith.constant 0 : i32
    %c0_i32_1 = arith.constant 0 : i32
    return %c0_i32, %c0_i32_0 : i32, i32
  }
  func.func @transform_8(%arg0: i32) -> (i32, i32) {
    %c0_i32 = arith.constant 0 : i32
    %c0_i32_0 = arith.constant 0 : i32
    %c0_i32_1 = arith.constant 0 : i32
    return %c0_i32, %c0_i32_0 : i32, i32
  }
  func.func @transform_9(%arg0: i32) -> (i32, i32) {
    %c0_i32 = arith.constant 0 : i32
    %c0_i32_0 = arith.constant 0 : i32
    return %arg0, %c0_i32 : i32, i32
  }
}

</mosaic_0001>

<bundles_post_ra>
// kernel: cnn_forward.1
= control target key start
LH: loop header
LB: loop body
LE: loop exit
PB: predicated region body
PF: predicated region fallthrough
CT: control target
= control target key end

     0   :  { %vm145_vm0 = vcmask 1045504   ;;  %vm96_vm1 = vcmask 228352   ;;  %vm2290_vm2 = vcmask 1043456   ;;  %vm2090_vm3 = vcmask 982016   ;;  %s7941_s1 = inlined_call_operand.vmem [shape: bf16[2,5,28,120], index: 1, kind: input, shape index: {}]   ;;  %s7942_s0 = inlined_call_operand.vmem [shape: f32[32,8,28], index: 0, kind: input, shape index: {}]   ;;  %s7943_s3 = inlined_call_operand.vmem [shape: bf16[2,5,120,80], index: 3, kind: input, shape index: {}]   ;;  %s7944_s2 = inlined_call_operand.vmem [shape: f32[1,120], index: 2, kind: input, shape index: {}]   ;;  %s7945_s5 = inlined_call_operand.vmem [shape: bf16[4,80,50], index: 5, kind: input, shape index: {}]   ;;  %s7946_s4 = inlined_call_operand.vmem [shape: f32[1,80], index: 4, kind: input, shape index: {}]   ;;  %s7947_s7 = inlined_call_operand.vmem [shape: bf16[50,128], index: 7, kind: input, shape index: {}]   ;;  %s7948_s6 = inlined_call_operand.vmem [shape: f32[1,50], index: 6, kind: input, shape index: {}]   ;;  %s7949_s8 = inlined_call_operand.vmem [shape: f32[1,128], index: 8, kind: input, shape index: {}]   ;;  %s7950_s9 = inlined_call_operand.vmem [shape: f32[8,128], index: 9, kind: output, shape index: {}]  }
   0x1   :  { %v5851_v0 = vld [vmem:[%s7941_s1 + $0x8] sm:$0x3f]   ;;  %v5852_v1 = vld [vmem:[%s7941_s1] sm:$0xff]   ;;  %v35_v8 = vld [vmem:[%s7942_s0 + $0x10] sm:$0xff]  ;;  %vm5980_vm4 = vmmov 0   ;;  %vm3720_vm5 = vcmask 654336  }
   0x2   :  { %5828 = vmatprep.subr.msk.bf16.mxu0 %vm145_vm0, %v5851_v0  ;;  %5829 = vmatprep.subr.msk.bf16.mxu1 %vm145_vm0, %v5851_v0  ;;  %v147_v2 = vsel %vm145_vm0, %v5851_v0, 0  ;;  %v33_v3 = vld [vmem:[%s7942_s0] sm:$0xff]  ;;  %v34_v4 = vld [vmem:[%s7942_s0 + $0x8] sm:$0xff]  ;;  %v36_v9 = vld [vmem:[%s7942_s0 + $0x18] sm:$0xff]  ;;  %vm4154_vm6 = vcmask 1040384   ;;  %vm4150_vm7 = vcmask 408576  }
   0x3   :  { %v61_v5 = vld [vmem:[%s7942_s0 + $0xe0] sm:$0xff]  ;;  %5117 = vmatpush3.bf16.msra.mxu0 %v147_v2  ;;  %5826 = vmatpush3.bf16.msra.mxu1 %v147_v2  ;;  %v6049_v6 = vpack.c.bf16 %v34_v4, %v33_v3  ;;  %v62_v7 = vld [vmem:[%s7942_s0 + $0xe8] sm:$0xff]  ;;  %v63_v11 = vld [vmem:[%s7942_s0 + $0xf0] sm:$0xff]  ;;  %v6075_v14 = vpack.c.bf16 %v36_v9, %v35_v8 }
   0x4   :  { %5118 = vmatprep.subr.bf16.mxu0 %v5852_v1  ;;  %5825 = vmatprep.subr.bf16.mxu1 %v5852_v1  ;;  %v6060_v10 = vpack.c.bf16 %v62_v7, %v61_v5  ;;  %v64_v12 = vld [vmem:[%s7942_s0 + $0xf8] sm:$0xff]  ;;  %v37_v16 = vld [vmem:[%s7942_s0 + $0x20] sm:$0xff]  ;;  %v38_v17 = vld [vmem:[%s7942_s0 + $0x28] sm:$0xff] }
   0x5   :  { %5120 = vmatprep.mubr.msk.bf16.mxu0 %vm96_vm1, %v6049_v6  ;;  %v5853_v13 = vld [vmem:[%s7941_s1 + $0x58] sm:$0x3f]   ;;  %v6077_v15 = vpack.c.bf16 %v64_v12, %v63_v11  ;;  %v5854_v19 = vld [vmem:[%s7941_s1 + $0x50] sm:$0xff]   ;;  %v6090_v20 = vpack.c.bf16 %v38_v17, %v37_v16  ;;  %v5855_v24 = vld [vmem:[%s7941_s1 + $0x68] sm:$0x3f]  }
   0x6   :  { %5148 = vmatprep.mubr.msk.bf16.mxu1 %vm96_vm1, %v6060_v10  ;;  %v319_v18 = vsel %vm145_vm0, %v5853_v13, 0  ;;  %v39_v21 = vld [vmem:[%s7942_s0 + $0x30] sm:$0xff]  ;;  %v40_v22 = vld [vmem:[%s7942_s0 + $0x38] sm:$0xff]  ;;  %v41_v25 = vld [vmem:[%s7942_s0 + $0x40] sm:$0xff]  ;;  %v711_v30 = vsel %vm145_vm0, %v5855_v24, 0 }
   0x7   :  { %5119 = vmatpush3.bf16.msra.mxu0 %v5852_v1  ;;  %5827 = vmatpush3.bf16.msra.mxu1 %v5852_v1  ;;  %v5856_v23 = vld [vmem:[%s7941_s1 + $0x18] sm:$0x3f]   ;;  %v42_v26 = vld [vmem:[%s7942_s0 + $0x48] sm:$0xff]  ;;  %v6120_v28 = vpack.c.bf16 %v40_v22, %v39_v21  ;;  %v5857_v31 = vld [vmem:[%s7941_s1 + $0x60] sm:$0xff]  }
   0x8   :  { %5830 = vmatprep.subr.msk.bf16.mxu1 %vm145_vm0, %v5853_v13  ;;  %5831 = vmatprep.subr.msk.bf16.mxu0 %vm145_vm0, %v5856_v23  ;;  %v539_v27 = vsel %vm145_vm0, %v5856_v23, 0  ;;  %v6122_v29 = vpack.c.bf16 %v42_v26, %v41_v25  ;;  %v43_v32 = vld [vmem:[%s7942_s0 + $0x50] sm:$0xff]  ;;  %v44_v33 = vld [vmem:[%s7942_s0 + $0x58] sm:$0xff]  ;;  %v45_v35 = vld [vmem:[%s7942_s0 + $0x60] sm:$0xff] }
   0x9   :  { %v5858_v34 = vld [vmem:[%s7941_s1 + $0x10] sm:$0xff]   ;;  %v46_v36 = vld [vmem:[%s7942_s0 + $0x68] sm:$0xff]  ;;  %v6158_v38 = vld [vmem:[%s7941_s1 + $0x78] sm:$0x3f]   ;;  %v6160_v39 = vpack.c.bf16 %v44_v33, %v43_v32 }
   0xa   :  { %5121 = vmatmul.mubr.msk.bf16.vlgmr.msra.gmra.mxu0 %vm96_vm1, %v6075_v14  ;;  %5149 = vmatmul.mubr.msk.bf16.vlgmr.msra.gmra.mxu1 %vm96_vm1, %v6077_v15  ;;  %v5859_v37 = vld [vmem:[%s7941_s1 + $0x28] sm:$0x3f]   ;;  %v6162_v40 = vpack.c.bf16 %v46_v36, %v45_v35  ;;  %v47_v41 = vld [vmem:[%s7942_s0 + $0x70] sm:$0xff]  ;;  %v48_v42 = vld [vmem:[%s7942_s0 + $0x78] sm:$0xff]  ;;  %v1103_v1 = vsel %vm145_vm0, %v6158_v38, 0 }
   0xb   :  { %5153 = vmatpush3.bf16.msra.mxu1 %v319_v18  ;;  %5124 = vmatprep.mubr.msk.bf16.mxu0 %vm96_vm1, %v6090_v20  ;;  %v49_v43 = vld [vmem:[%s7942_s0 + $0x80] sm:$0xff]  ;;  %v50_v44 = vld [vmem:[%s7942_s0 + $0x88] sm:$0xff]  ;;  %v6187_v45 = vpack.c.bf16 %v48_v42, %v47_v41  ;;  %v51_v47 = vld [vmem:[%s7942_s0 + $0x90] sm:$0xff]  ;;  %v931_v62 = vsel %vm145_vm0, %v5859_v37, 0 }
   0xc   :  { %5154 = vmatprep.subr.bf16.mxu1 %v5854_v19  ;;  %5156 = vmatprep.mubr.msk.bf16.mxu1 %vm96_vm1, %v6049_v6  ;;  %v6189_v46 = vpack.c.bf16 %v50_v44, %v49_v43  ;;  %v52_v48 = vld [vmem:[%s7942_s0 + $0x98] sm:$0xff]  ;;  %v53_v49 = vld [vmem:[%s7942_s0 + $0xa0] sm:$0xff]  ;;  %v54_v50 = vld [vmem:[%s7942_s0 + $0xa8] sm:$0xff] }
   0xd   :  { %5189 = vmatpush3.bf16.msra.mxu0 %v539_v27  ;;  %v6211_v51 = vpack.c.bf16 %v52_v48, %v51_v47  ;;  %v6213_v52 = vpack.c.bf16 %v54_v50, %v53_v49  ;;  %v55_v53 = vld [vmem:[%s7942_s0 + $0xb0] sm:$0xff]  ;;  %v56_v54 = vld [vmem:[%s7942_s0 + $0xb8] sm:$0xff]  ;;  %v57_v55 = vld [vmem:[%s7942_s0 + $0xc0] sm:$0xff] }
   0xe   :  { %5190 = vmatprep.subr.bf16.mxu0 %v5858_v34  ;;  %v58_v56 = vld [vmem:[%s7942_s0 + $0xc8] sm:$0xff]  ;;  %v6235_v57 = vpack.c.bf16 %v56_v54, %v55_v53  ;;  %v59_v59 = vld [vmem:[%s7942_s0 + $0xd0] sm:$0xff]  ;;  %v60_v60 = vld [vmem:[%s7942_s0 + $0xd8] sm:$0xff] }
   0xf   :  { %5155 = vmatpush3.bf16.msra.mxu1 %v5854_v19  ;;  %v6237_v58 = vpack.c.bf16 %v58_v56, %v57_v55  ;;  %v6253_v61 = vpack.c.bf16 %v60_v60, %v59_v59  ;;  %v5861_v63 = vld [vmem:[%s7941_s1 + $0x20] sm:$0xff]   ;;  %v5863_v0 = vld [vmem:[%s7941_s1 + $0x38] sm:$0x3f]   ;;  %v5862_v2 = vld [vmem:[%s7941_s1 + $0x70] sm:$0xff]  }
  0x10   :  { %5832 = vmatprep.subr.msk.bf16.mxu1 %vm145_vm0, %v5855_v24  ;;  %v5864_v3 = vld [vmem:[%s7941_s1 + $0x88] sm:$0x3f]   ;;  %v1323_v4 = vsel %vm145_vm0, %v5863_v0, 0  ;;  %v5865_v5 = vld [vmem:[%s7941_s1 + $0x30] sm:$0xff]   ;;  %v5866_v9 = vld [vmem:[%s7941_s1 + $0x80] sm:$0xff]  }
  0x11   :  { %5191 = vmatpush3.bf16.msra.mxu0 %v5858_v34  ;;  %v5867_v7 = vld [vmem:[%s7941_s1 + $0x48] sm:$0x3f]   ;;  %v1495_v8 = vsel %vm145_vm0, %v5864_v3, 0  ;;  %v5868_v11 = vld [vmem:[%s7941_s1 + $0x98] sm:$0x3f]   ;;  %v5869_v13 = vld [vmem:[%s7941_s1 + $0x40] sm:$0xff]  }
  0x12   :  { %5125 = vmatmul.mubr.msk.bf16.gmra.mxu0 %vm96_vm1, %v6120_v28  ;;  %5157 = vmatmul.mubr.msk.bf16.vlgmr.msra.gmra.mxu1 %vm96_vm1, %v6075_v14  ;;  %v1715_v12 = vsel %vm145_vm0, %v5867_v7, 0  ;;  %v1887_v25 = vsel %vm145_vm0, %v5868_v11, 0  ;;  %v5870_v26 = vld [vmem:[%s7941_s1 + $0x90] sm:$0xff]  }
  0x13   :  { %5225 = vmatpush3.bf16.msra.mxu1 %v711_v30  ;;  %5128 = vmatprep.mubr.msk.bf16.mxu0 %vm96_vm1, %v6122_v29 }
  0x14   :  { %5160 = vmatprep.mubr.msk.bf16.mxu1 %vm96_vm1, %v6090_v20  ;;  %5226 = vmatprep.subr.bf16.mxu1 %v5857_v31 }
  0x15   :  { %5833 = vmatprep.subr.msk.bf16.mxu0 %vm145_vm0, %v5859_v37 }
  0x17   :  { %5227 = vmatpush3.bf16.msra.mxu1 %v5857_v31 }
  0x18   :  { %5834 = vmatprep.subr.msk.bf16.mxu1 %vm145_vm0, %v6158_v38 }
  0x1a   :  { %5129 = vmatmul.mubr.msk.bf16.gmra.mxu0 %vm96_vm1, %v6160_v39  ;;  %5161 = vmatmul.mubr.msk.bf16.gmra.mxu1 %vm96_vm1, %v6120_v28 }
  0x1b   :  { %5132 = vmatprep.mubr.msk.bf16.mxu0 %vm96_vm1, %v6162_v40  ;;  %5164 = vmatprep.mubr.msk.bf16.mxu1 %vm96_vm1, %v6122_v29 }
  0x22   :  { %5133 = vmatmul.mubr.msk.bf16.gmra.mxu0 %vm96_vm1, %v6187_v45  ;;  %5165 = vmatmul.mubr.msk.bf16.gmra.mxu1 %vm96_vm1, %v6160_v39 }
  0x23   :  { %5136 = vmatprep.mubr.msk.bf16.mxu0 %vm96_vm1, %v6189_v46  ;;  %5168 = vmatprep.mubr.msk.bf16.mxu1 %vm96_vm1, %v6162_v40 }
  0x2a   :  { %5137 = vmatmul.mubr.msk.bf16.gmra.mxu0 %vm96_vm1, %v6211_v51  ;;  %5169 = vmatmul.mubr.msk.bf16.gmra.mxu1 %vm96_vm1, %v6187_v45 }
  0x2b   :  { %5140 = vmatprep.mubr.msk.bf16.mxu0 %vm96_vm1, %v6213_v52  ;;  %5172 = vmatprep.mubr.msk.bf16.mxu1 %vm96_vm1, %v6189_v46 }
  0x32   :  { %5141 = vmatmul.mubr.msk.bf16.gmra.mxu0 %vm96_vm1, %v6235_v57  ;;  %5173 = vmatmul.mubr.msk.bf16.gmra.mxu1 %vm96_vm1, %v6211_v51 }
  0x33   :  { %5144 = vmatprep.mubr.msk.bf16.mxu0 %vm96_vm1, %v6237_v58  ;;  %5176 = vmatprep.mubr.msk.bf16.mxu1 %vm96_vm1, %v6213_v52 }
  0x3a   :  { %5145 = vmatmul.mubr.msk.bf16.gmra.mxu0 %vm96_vm1, %v6253_v61  ;;  %5177 = vmatmul.mubr.msk.bf16.gmra.mxu1 %vm96_vm1, %v6235_v57 }
  0x3b   :  { %5180 = vmatprep.mubr.msk.bf16.mxu1 %vm96_vm1, %v6237_v58  ;;  %5192 = vmatprep.mubr.msk.bf16.mxu0 %vm96_vm1, %v6049_v6 }
  0x42   :  { %5181 = vmatmul.mubr.msk.bf16.gmra.mxu1 %vm96_vm1, %v6253_v61  ;;  %5193 = vmatmul.mubr.msk.bf16.vlgmr.msra.gmra.mxu0 %vm96_vm1, %v6075_v14 }
  0x43   :  { %5184 = vmatprep.mubr.msk.bf16.mxu1 %vm96_vm1, %v6060_v10  ;;  %5196 = vmatprep.mubr.msk.bf16.mxu0 %vm96_vm1, %v6090_v20 }
  0x44   :  { %5261 = vmatpush3.bf16.msra.mxu0 %v931_v62 }
  0x45   :  { %5262 = vmatprep.subr.bf16.mxu0 %v5861_v63 }
  0x48   :  { %5263 = vmatpush3.bf16.msra.mxu0 %v5861_v63 }
  0x49   :  { %5835 = vmatprep.subr.msk.bf16.mxu0 %vm145_vm0, %v5863_v0 }
  0x4a   :  { %5185 = vmatmul.mubr.msk.bf16.gmra.mxu1 %vm96_vm1, %v6077_v15  ;;  %5197 = vmatmul.mubr.msk.bf16.gmra.mxu0 %vm96_vm1, %v6120_v28 }
  0x4b   :  { %5200 = vmatprep.mubr.msk.bf16.mxu0 %vm96_vm1, %v6122_v29  ;;  %5228 = vmatprep.mubr.msk.bf16.mxu1 %vm96_vm1, %v6049_v6 }
  0x52   :  { %5201 = vmatmul.mubr.msk.bf16.gmra.mxu0 %vm96_vm1, %v6160_v39  ;;  %5229 = vmatmul.mubr.msk.bf16.vlgmr.msra.gmra.mxu1 %vm96_vm1, %v6075_v14 }
  0x53   :  { %5297 = vmatpush3.bf16.msra.mxu1 %v1103_v1  ;;  %5204 = vmatprep.mubr.msk.bf16.mxu0 %vm96_vm1, %v6162_v40 }
  0x54   :  { %5232 = vmatprep.mubr.msk.bf16.mxu1 %vm96_vm1, %v6090_v20  ;;  %5298 = vmatprep.subr.bf16.mxu1 %v5862_v2 }
  0x57   :  { %5299 = vmatpush3.bf16.msra.mxu1 %v5862_v2 }
  0x58   :  { %5836 = vmatprep.subr.msk.bf16.mxu1 %vm145_vm0, %v5864_v3 }
  0x5a   :  { %5205 = vmatmul.mubr.msk.bf16.gmra.mxu0 %vm96_vm1, %v6187_v45  ;;  %5233 = vmatmul.mubr.msk.bf16.gmra.mxu1 %vm96_vm1, %v6120_v28 }
  0x5b   :  { %5208 = vmatprep.mubr.msk.bf16.mxu0 %vm96_vm1, %v6189_v46  ;;  %5236 = vmatprep.mubr.msk.bf16.mxu1 %vm96_vm1, %v6122_v29 }
  0x62   :  { %5209 = vmatmul.mubr.msk.bf16.gmra.mxu0 %vm96_vm1, %v6211_v51  ;;  %5237 = vmatmul.mubr.msk.bf16.gmra.mxu1 %vm96_vm1, %v6160_v39 }
  0x63   :  { %5212 = vmatprep.mubr.msk.bf16.mxu0 %vm96_vm1, %v6213_v52  ;;  %5240 = vmatprep.mubr.msk.bf16.mxu1 %vm96_vm1, %v6162_v40 }
  0x6a   :  { %5213 = vmatmul.mubr.msk.bf16.gmra.mxu0 %vm96_vm1, %v6235_v57  ;;  %5241 = vmatmul.mubr.msk.bf16.gmra.mxu1 %vm96_vm1, %v6187_v45 }
  0x6b   :  { %5216 = vmatprep.mubr.msk.bf16.mxu0 %vm96_vm1, %v6237_v58  ;;  %5244 = vmatprep.mubr.msk.bf16.mxu1 %vm96_vm1, %v6189_v46 }
  0x72   :  { %5217 = vmatmul.mubr.msk.bf16.gmra.mxu0 %vm96_vm1, %v6253_v61  ;;  %5245 = vmatmul.mubr.msk.bf16.gmra.mxu1 %vm96_vm1, %v6211_v51 }
  0x73   :  { %5220 = vmatprep.mubr.msk.bf16.mxu0 %vm96_vm1, %v6060_v10  ;;  %5248 = vmatprep.mubr.msk.bf16.mxu1 %vm96_vm1, %v6213_v52 }
  0x7a   :  { %5221 = vmatmul.mubr.msk.bf16.gmra.mxu0 %vm96_vm1, %v6077_v15  ;;  %5249 = vmatmul.mubr.msk.bf16.gmra.mxu1 %vm96_vm1, %v6235_v57 }
  0x7b   :  { %5252 = vmatprep.mubr.msk.bf16.mxu1 %vm96_vm1, %v6237_v58  ;;  %5264 = vmatprep.mubr.msk.bf16.mxu0 %vm96_vm1, %v6049_v6 }
  0x82   :  { %5253 = vmatmul.mubr.msk.bf16.gmra.mxu1 %vm96_vm1, %v6253_v61  ;;  %5265 = vmatmul.mubr.msk.bf16.vlgmr.msra.gmra.mxu0 %vm96_vm1, %v6075_v14 }
  0x83   :  { %5256 = vmatprep.mubr.msk.bf16.mxu1 %vm96_vm1, %v6060_v10  ;;  %5268 = vmatprep.mubr.msk.bf16.mxu0 %vm96_vm1, %v6090_v20 }
  0x84   :  { %5333 = vmatpush3.bf16.msra.mxu0 %v1323_v4 }
  0x85   :  { %5334 = vmatprep.subr.bf16.mxu0 %v5865_v5 }
  0x88   :  { %5335 = vmatpush3.bf16.msra.mxu0 %v5865_v5 }
  0x89   :  { %5837 = vmatprep.subr.msk.bf16.mxu0 %vm145_vm0, %v5867_v7 }
  0x8a   :  { %5257 = vmatmul.mubr.msk.bf16.gmra.mxu1 %vm96_vm1, %v6077_v15  ;;  %5269 = vmatmul.mubr.msk.bf16.gmra.mxu0 %vm96_vm1, %v6120_v28 }
  0x8b   :  { %5272 = vmatprep.mubr.msk.bf16.mxu0 %vm96_vm1, %v6122_v29  ;;  %5300 = vmatprep.mubr.msk.bf16.mxu1 %vm96_vm1, %v6049_v6 }
  0x92   :  { %5273 = vmatmul.mubr.msk.bf16.gmra.mxu0 %vm96_vm1, %v6160_v39  ;;  %5301 = vmatmul.mubr.msk.bf16.vlgmr.msra.gmra.mxu1 %vm96_vm1, %v6075_v14 }
  0x93   :  { %5369 = vmatpush3.bf16.msra.mxu1 %v1495_v8  ;;  %5276 = vmatprep.mubr.msk.bf16.mxu0 %vm96_vm1, %v6162_v40 }
  0x94   :  { %5304 = vmatprep.mubr.msk.bf16.mxu1 %vm96_vm1, %v6090_v20  ;;  %5370 = vmatprep.subr.bf16.mxu1 %v5866_v9 }
  0x97   :  { %5371 = vmatpush3.bf16.msra.mxu1 %v5866_v9 }
  0x98   :  { %5838 = vmatprep.subr.msk.bf16.mxu1 %vm145_vm0, %v5868_v11 }
  0x9a   :  { %5277 = vmatmul.mubr.msk.bf16.gmra.mxu0 %vm96_vm1, %v6187_v45  ;;  %5305 = vmatmul.mubr.msk.bf16.gmra.mxu1 %vm96_vm1, %v6120_v28 }
  0x9b   :  { %5280 = vmatprep.mubr.msk.bf16.mxu0 %vm96_vm1, %v6189_v46  ;;  %5308 = vmatprep.mubr.msk.bf16.mxu1 %vm96_vm1, %v6122_v29 }
  0xa2   :  { %5281 = vmatmul.mubr.msk.bf16.gmra.mxu0 %vm96_vm1, %v6211_v51  ;;  %5309 = vmatmul.mubr.msk.bf16.gmra.mxu1 %vm96_vm1, %v6160_v39 }
  0xa3   :  { %5284 = vmatprep.mubr.msk.bf16.mxu0 %vm96_vm1, %v6213_v52  ;;  %5312 = vmatprep.mubr.msk.bf16.mxu1 %vm96_vm1, %v6162_v40 }
  0xaa   :  { %5285 = vmatmul.mubr.msk.bf16.gmra.mxu0 %vm96_vm1, %v6235_v57  ;;  %5313 = vmatmul.mubr.msk.bf16.gmra.mxu1 %vm96_vm1, %v6187_v45 }
  0xab   :  { %5288 = vmatprep.mubr.msk.bf16.mxu0 %vm96_vm1, %v6237_v58  ;;  %5316 = vmatprep.mubr.msk.bf16.mxu1 %vm96_vm1, %v6189_v46 }
  0xb2   :  { %5289 = vmatmul.mubr.msk.bf16.gmra.mxu0 %vm96_vm1, %v6253_v61  ;;  %5317 = vmatmul.mubr.msk.bf16.gmra.mxu1 %vm96_vm1, %v6211_v51 }
  0xb3   :  { %5292 = vmatprep.mubr.msk.bf16.mxu0 %vm96_vm1, %v6060_v10  ;;  %5320 = vmatprep.mubr.msk.bf16.mxu1 %vm96_vm1, %v6213_v52 }
  0xba   :  { %5293 = vmatmul.mubr.msk.bf16.gmra.mxu0 %vm96_vm1, %v6077_v15  ;;  %5321 = vmatmul.mubr.msk.bf16.gmra.mxu1 %vm96_vm1, %v6235_v57 }
  0xbb   :  { %5324 = vmatprep.mubr.msk.bf16.mxu1 %vm96_vm1, %v6237_v58  ;;  %5336 = vmatprep.mubr.msk.bf16.mxu0 %vm96_vm1, %v6049_v6 }
  0xc2   :  { %5325 = vmatmul.mubr.msk.bf16.gmra.mxu1 %vm96_vm1, %v6253_v61  ;;  %5337 = vmatmul.mubr.msk.bf16.vlgmr.msra.gmra.mxu0 %vm96_vm1, %v6075_v14 }
  0xc3   :  { %5328 = vmatprep.mubr.msk.bf16.mxu1 %vm96_vm1, %v6060_v10  ;;  %5340 = vmatprep.mubr.msk.bf16.mxu0 %vm96_vm1, %v6090_v20 }
  0xc4   :  { %5405 = vmatpush3.bf16.msra.mxu0 %v1715_v12 }
  0xc5   :  { %5406 = vmatprep.subr.bf16.mxu0 %v5869_v13 }
  0xc8   :  { %5407 = vmatpush3.bf16.msra.mxu0 %v5869_v13 }
  0xca   :  { %v6436_v16 = vpop.f32.mrf.mxu0  ;;  %v5150_v17 = vpop.f32.mrf.mxu1  ;;  %5329 = vmatmul.mubr.msk.bf16.gmra.mxu1 %vm96_vm1, %v6077_v15  ;;  %5341 = vmatmul.mubr.msk.bf16.gmra.mxu0 %vm96_vm1, %v6120_v28 }
  0xcb   :  { %5344 = vmatprep.mubr.msk.bf16.mxu0 %vm96_vm1, %v6122_v29  ;;  %5372 = vmatprep.mubr.msk.bf16.mxu1 %vm96_vm1, %v6049_v6 }
  0xcc   :  { %v6446_v18 = vpop.f32.mrf.mxu0  ;;  %v291_v19 = vpop.f32.mrf.mxu1 }
  0xce   :  { %v6448_v21 = vpop.f32.mrf.mxu0  ;;  %v5151_v22 = vpop.f32.mrf.mxu1 }
  0xd0   :  { %v6450_v23 = vpop.f32.mrf.mxu0  ;;  %v293_v24 = vpop.f32.mrf.mxu1 }
  0xd2   :  { %v6456_v27 = vpop.f32.mrf.mxu0  ;;  %v6458_v30 = vpop.f32.mrf.mxu1  ;;  %5345 = vmatmul.mubr.msk.bf16.gmra.mxu0 %vm96_vm1, %v6160_v39  ;;  %5373 = vmatmul.mubr.msk.bf16.vlgmr.msra.gmra.mxu1 %vm96_vm1, %v6075_v14 }
  0xd3   :  { %5441 = vmatpush3.bf16.msra.mxu1 %v1887_v25  ;;  %5348 = vmatprep.mubr.msk.bf16.mxu0 %vm96_vm1, %v6162_v40 }
  0xd4   :  { %v6466_v31 = vpop.f32.mrf.mxu0  ;;  %v6468_v32 = vpop.f32.mrf.mxu1  ;;  %5376 = vmatprep.mubr.msk.bf16.mxu1 %vm96_vm1, %v6090_v20  ;;  %5442 = vmatprep.subr.bf16.mxu1 %v5870_v26 }
  0xd6   :  { %v6472_v33 = vpop.f32.mrf.mxu0  ;;  %v6474_v34 = vpop.f32.mrf.mxu1 }
  0xd7   :  { %7953 = vst [vmem:[#allocation2_spill] sm:$0xff] %v6474_v34  ;;  %5443 = vmatpush3.bf16.msra.mxu1 %v5870_v26 }
  0xd8   :  { %v6476_v35 = vpop.f32.mrf.mxu0  ;;  %v6478_v36 = vpop.f32.mrf.mxu1 }
  0xda   :  { %v6480_v37 = vpop.f32.mrf.mxu0  ;;  %v6482_v38 = vpop.f32.mrf.mxu1  ;;  %5349 = vmatmul.mubr.msk.bf16.gmra.mxu0 %vm96_vm1, %v6187_v45  ;;  %5377 = vmatmul.mubr.msk.bf16.gmra.mxu1 %vm96_vm1, %v6120_v28 }
  0xdb   :  { %5352 = vmatprep.mubr.msk.bf16.mxu0 %vm96_vm1, %v6189_v46  ;;  %5380 = vmatprep.mubr.msk.bf16.mxu1 %vm96_vm1, %v6122_v29 }
  0xdc   :  { %v6492_v41 = vpop.f32.mrf.mxu0  ;;  %v6494_v42 = vpop.f32.mrf.mxu1 }
  0xde   :  { %v6496_v43 = vpop.f32.mrf.mxu0  ;;  %v6498_v44 = vpop.f32.mrf.mxu1 }
  0xdf   :  { %7954 = vst [vmem:[#allocation3_spill] sm:$0xff] %v6498_v44 }
  0xe0   :  { %v6500_v47 = vpop.f32.mrf.mxu0  ;;  %v6502_v48 = vpop.f32.mrf.mxu1 }
  0xe2   :  { %v6504_v49 = vpop.f32.mrf.mxu0  ;;  %v6506_v50 = vpop.f32.mrf.mxu1  ;;  %5353 = vmatmul.mubr.msk.bf16.gmra.mxu0 %vm96_vm1, %v6211_v51  ;;  %5381 = vmatmul.mubr.msk.bf16.gmra.mxu1 %vm96_vm1, %v6160_v39 }
  0xe3   :  { %5356 = vmatprep.mubr.msk.bf16.mxu0 %vm96_vm1, %v6213_v52  ;;  %5384 = vmatprep.mubr.msk.bf16.mxu1 %vm96_vm1, %v6162_v40 }
  0xe4   :  { %v6516_v53 = vpop.f32.mrf.mxu0  ;;  %v6518_v54 = vpop.f32.mrf.mxu1 }
  0xe6   :  { %v6520_v55 = vpop.f32.mrf.mxu0  ;;  %v6522_v56 = vpop.f32.mrf.mxu1 }
  0xe7   :  { %7955 = vst [vmem:[#allocation4_spill] sm:$0xff] %v6522_v56 }
  0xe8   :  { %v6524_v59 = vpop.f32.mrf.mxu0  ;;  %v6526_v60 = vpop.f32.mrf.mxu1 }
  0xea   :  { %v6528_v62 = vpop.f32.mrf.mxu0  ;;  %v6530_v63 = vpop.f32.mrf.mxu1  ;;  %5357 = vmatmul.mubr.msk.bf16.gmra.mxu0 %vm96_vm1, %v6235_v57  ;;  %5385 = vmatmul.mubr.msk.bf16.gmra.mxu1 %vm96_vm1, %v6187_v45 }
  0xeb   :  { %7956 = vst [vmem:[#allocation5_spill] sm:$0xff] %v6530_v63  ;;  %5360 = vmatprep.mubr.msk.bf16.mxu0 %vm96_vm1, %v6237_v58  ;;  %5388 = vmatprep.mubr.msk.bf16.mxu1 %vm96_vm1, %v6189_v46 }
  0xec   :  { %v6540_v0 = vpop.f32.mrf.mxu0  ;;  %v6542_v1 = vpop.f32.mrf.mxu1 }
  0xee   :  { %v6544_v2 = vpop.f32.mrf.mxu0  ;;  %v6546_v3 = vpop.f32.mrf.mxu1 }
  0xef   :  { %7957 = vst [vmem:[#allocation6_spill] sm:$0xff] %v6546_v3 }
  0xf0   :  { %v6548_v4 = vpop.f32.mrf.mxu0  ;;  %v6550_v5 = vpop.f32.mrf.mxu1 }
  0xf2   :  { %v6552_v7 = vpop.f32.mrf.mxu0  ;;  %v6554_v8 = vpop.f32.mrf.mxu1  ;;  %5361 = vmatmul.mubr.msk.bf16.gmra.mxu0 %vm96_vm1, %v6253_v61  ;;  %5389 = vmatmul.mubr.msk.bf16.gmra.mxu1 %vm96_vm1, %v6211_v51 }
  0xf3   :  { %7958 = vst [vmem:[#allocation7_spill] sm:$0xff] %v6554_v8  ;;  %5364 = vmatprep.mubr.msk.bf16.mxu0 %vm96_vm1, %v6060_v10  ;;  %5392 = vmatprep.mubr.msk.bf16.mxu1 %vm96_vm1, %v6213_v52 }
  0xf4   :  { %v6564_v9 = vpop.f32.mrf.mxu0  ;;  %v6566_v11 = vpop.f32.mrf.mxu1 }
  0xf5   :  { %7959 = vst [vmem:[#allocation8_spill] sm:$0xff] %v6566_v11 }
  0xf6   :  { %v6568_v12 = vpop.f32.mrf.mxu0  ;;  %v6570_v13 = vpop.f32.mrf.mxu1 }
  0xf7   :  { %7960 = vst [vmem:[#allocation9_spill] sm:$0xff] %v6570_v13 }
  0xf8   :  { %v6572_v17 = vpop.f32.mrf.mxu0  ;;  %v6574_v19 = vpop.f32.mrf.mxu1 }
  0xfa   :  { %v5146_v22 = vpop.f32.mrf.mxu0  ;;  %v6576_v24 = vpop.f32.mrf.mxu1  ;;  %5365 = vmatmul.mubr.msk.bf16.gmra.mxu0 %vm96_vm1, %v6077_v15  ;;  %5393 = vmatmul.mubr.msk.bf16.gmra.mxu1 %vm96_vm1, %v6235_v57 }
  0xfb   :  { %7961 = vst [vmem:[#allocation10_spill] sm:$0xff] %v6576_v24  ;;  %5396 = vmatprep.mubr.msk.bf16.mxu1 %vm96_vm1, %v6237_v58  ;;  %5408 = vmatprep.mubr.msk.bf16.mxu0 %vm96_vm1, %v6049_v6 }
  0xfc   :  { %v279_v25 = vpop.f32.mrf.mxu0  ;;  %v6586_v26 = vpop.f32.mrf.mxu1 }
  0xfd   :  { %7962 = vst [vmem:[#allocation11_spill] sm:$0xff] %v6586_v26 }
  0xfe   :  { %v5147_v13 = vpop.f32.mrf.mxu0  ;;  %v6588_v11 = vpop.f32.mrf.mxu1 }
  0xff   :  { %7963 = vst [vmem:[#allocation12_spill] sm:$0xff] %v6588_v11 }
 0x100   :  { %v281_v22 = vpop.f32.mrf.mxu0  ;;  %v6590_v3 = vpop.f32.mrf.mxu1 }
 0x102   :  { %v5182_v56 = vpop.f32.mrf.mxu1  ;;  %v5194_v44 = vpop.f32.mrf.mxu0  ;;  %5397 = vmatmul.mubr.msk.bf16.gmra.mxu1 %vm96_vm1, %v6253_v61  ;;  %5409 = vmatmul.mubr.msk.bf16.vlgmr.msra.gmra.mxu0 %vm96_vm1, %v6075_v14 }
 0x103   :  { %v6597_v34 = vadd.f32 %v5194_v44, %v6450_v23  ;;  %5400 = vmatprep.mubr.msk.bf16.mxu1 %vm96_vm1, %v6060_v10  ;;  %5412 = vmatprep.mubr.msk.bf16.mxu0 %vm96_vm1, %v6090_v20 }
 0x104   :  { %v451_v13 = vpop.f32.mrf.mxu1  ;;  %v575_v25 = vpop.f32.mrf.mxu0 }
 0x106   :  { %v5183_v22 = vpop.f32.mrf.mxu1  ;;  %v5195_v56 = vpop.f32.mrf.mxu0 }
 0x107   :  { %v6604_v11 = vadd.f32 %v5195_v56, %v6436_v16 }
 0x108   :  { %v453_v26 = vpop.f32.mrf.mxu1  ;;  %v577_v24 = vpop.f32.mrf.mxu0 }
 0x109   :  { %v6607_v8 = vadd.f32 %v577_v24, %v6446_v18 }
 0x10a   :  { %v5186_v23 = vpop.f32.mrf.mxu1  ;;  %v5198_v44 = vpop.f32.mrf.mxu0  ;;  %5401 = vmatmul.mubr.msk.bf16.gmra.mxu1 %vm96_vm1, %v6077_v15  ;;  %5413 = vmatmul.mubr.msk.bf16.gmra.mxu0 %vm96_vm1, %v6120_v28 }
 0x10b   :  { %v6614_v13 = vadd.f32 %v5198_v44, %v6476_v35  ;;  %5416 = vmatprep.mubr.msk.bf16.mxu0 %vm96_vm1, %v6122_v29  ;;  %5444 = vmatprep.mubr.msk.bf16.mxu1 %vm96_vm1, %v6049_v6 }
 0x10c   :  { %v463_v16 = vpop.f32.mrf.mxu1  ;;  %v590_v18 = vpop.f32.mrf.mxu0 }
 0x10d   :  { %v6621_v24 = vadd.f32 %v6448_v21, %v590_v18 }
 0x10e   :  { %v5187_v26 = vpop.f32.mrf.mxu1  ;;  %v5199_v25 = vpop.f32.mrf.mxu0 }
 0x10f   :  { %v6624_v22 = vadd.f32 %v5199_v25, %v6456_v27 }
 0x110   :  { %v465_v56 = vpop.f32.mrf.mxu1  ;;  %v593_v23 = vpop.f32.mrf.mxu0 }
 0x111   :  { %v6627_v35 = vadd.f32 %v593_v23, %v6466_v31 }
 0x112   :  { %v5202_v44 = vpop.f32.mrf.mxu0  ;;  %v5230_v63 = vpop.f32.mrf.mxu1  ;;  %5417 = vmatmul.mubr.msk.bf16.gmra.mxu0 %vm96_vm1, %v6160_v39  ;;  %5445 = vmatmul.mubr.msk.bf16.vlgmr.msra.gmra.mxu1 %vm96_vm1, %v6075_v14 }
 0x113   :  { %v6634_v6 = vadd.f32 %v5202_v44, %v6500_v47  ;;  %v6637_v21 = vadd.f32 %v5230_v63, %v6478_v36  ;;  %5420 = vmatprep.mubr.msk.bf16.mxu0 %vm96_vm1, %v6162_v40  ;;  %5448 = vmatprep.mubr.msk.bf16.mxu1 %vm96_vm1, %v6090_v20 }
 0x114   :  { %v606_v27 = vpop.f32.mrf.mxu0  ;;  %v747_v31 = vpop.f32.mrf.mxu1 }
 0x115   :  { %v6644_v16 = vadd.f32 %v6472_v33, %v606_v27 }
 0x116   :  { %v5203_v18 = vpop.f32.mrf.mxu0  ;;  %v6646_v26 = vpop.f32.mrf.mxu1 }
 0x117   :  { %v6649_v14 = vadd.f32 %v5203_v18, %v6480_v37 }
 0x118   :  { %v609_v47 = vpop.f32.mrf.mxu0  ;;  %v6651_v36 = vpop.f32.mrf.mxu1 }
 0x119   :  { %v6654_v63 = vadd.f32 %v609_v47, %v6492_v41 }
 0x11a   :  { %v5206_v25 = vpop.f32.mrf.mxu0  ;;  %v5234_v56 = vpop.f32.mrf.mxu1  ;;  %5421 = vmatmul.mubr.msk.bf16.gmra.mxu0 %vm96_vm1, %v6187_v45  ;;  %5449 = vmatmul.mubr.msk.bf16.gmra.mxu1 %vm96_vm1, %v6120_v28 }
 0x11b   :  { %v6661_v20 = vadd.f32 %v5206_v25, %v6524_v59  ;;  %v6664_v33 = vadd.f32 %v5234_v56, %v6502_v48  ;;  %5424 = vmatprep.mubr.msk.bf16.mxu0 %vm96_vm1, %v6189_v46  ;;  %5452 = vmatprep.mubr.msk.bf16.mxu1 %vm96_vm1, %v6122_v29 }
 0x11c   :  { %v622_v37 = vpop.f32.mrf.mxu0  ;;  %v6670_v41 = vpop.f32.mrf.mxu1 }
 0x11d   :  { %v6673_v23 = vadd.f32 %v6496_v43, %v622_v37 }
 0x11e   :  { %v5207_v44 = vpop.f32.mrf.mxu0  ;;  %v6675_v28 = vpop.f32.mrf.mxu1 }
 0x11f   :  { %v6678_v59 = vadd.f32 %v5207_v44, %v6504_v49 }
 0x120   :  { %v625_v48 = vpop.f32.mrf.mxu0  ;;  %v6680_v27 = vpop.f32.mrf.mxu1 }
 0x121   :  { %v6683_v31 = vadd.f32 %v625_v48, %v6516_v53 }
 0x122   :  { %v5210_v18 = vpop.f32.mrf.mxu0  ;;  %v5238_v29 = vpop.f32.mrf.mxu1  ;;  %5425 = vmatmul.mubr.msk.bf16.gmra.mxu0 %vm96_vm1, %v6211_v51  ;;  %5453 = vmatmul.mubr.msk.bf16.gmra.mxu1 %vm96_vm1, %v6160_v39 }
 0x123   :  { %v6690_v43 = vadd.f32 %v5210_v18, %v6548_v4  ;;  %v6693_v49 = vadd.f32 %v5238_v29, %v6526_v60  ;;  %5428 = vmatprep.mubr.msk.bf16.mxu0 %vm96_vm1, %v6213_v52  ;;  %5456 = vmatprep.mubr.msk.bf16.mxu1 %vm96_vm1, %v6162_v40 }
 0x124   :  { %v638_v53 = vpop.f32.mrf.mxu0  ;;  %v6699_v47 = vpop.f32.mrf.mxu1 }
 0x125   :  { %v6702_v25 = vadd.f32 %v6520_v55, %v638_v53 }
 0x126   :  { %v5211_v56 = vpop.f32.mrf.mxu0  ;;  %v6704_v39 = vpop.f32.mrf.mxu1 }
 0x127   :  { %v6707_v4 = vadd.f32 %v5211_v56, %v6528_v62 }
 0x128   :  { %v6709_v60 = vpop.f32.mrf.mxu0  ;;  %v6711_v37 = vpop.f32.mrf.mxu1 }
 0x12a   :  { %v5214_v44 = vpop.f32.mrf.mxu0  ;;  %v5242_v48 = vpop.f32.mrf.mxu1  ;;  %5429 = vmatmul.mubr.msk.bf16.gmra.mxu0 %vm96_vm1, %v6235_v57  ;;  %5457 = vmatmul.mubr.msk.bf16.gmra.mxu1 %vm96_vm1, %v6187_v45 }
 0x12b   :  { %v6718_v40 = vadd.f32 %v5214_v44, %v6572_v17  ;;  %v6721_v55 = vadd.f32 %v5242_v48, %v6550_v5  ;;  %5432 = vmatprep.mubr.msk.bf16.mxu0 %vm96_vm1, %v6237_v58  ;;  %5460 = vmatprep.mubr.msk.bf16.mxu1 %vm96_vm1, %v6189_v46 }
 0x12c   :  { %v654_v62 = vpop.f32.mrf.mxu0  ;;  %v6727_v18 = vpop.f32.mrf.mxu1 }
 0x12d   :  { %v6730_v29 = vadd.f32 %v6544_v2, %v654_v62 }
 0x12e   :  { %v5215_v53 = vpop.f32.mrf.mxu0  ;;  %v6732_v45 = vpop.f32.mrf.mxu1 }
 0x12f   :  { %7964 = vst [vmem:[#allocation13_spill] sm:$0xff] %v6730_v29  ;;  %v6735_v17 = vadd.f32 %v5215_v53, %v6552_v7 }
 0x130   :  { %v6737_v5 = vpop.f32.mrf.mxu0  ;;  %v6739_v56 = vpop.f32.mrf.mxu1 }
 0x132   :  { %v5218_v44 = vpop.f32.mrf.mxu0  ;;  %v5246_v48 = vpop.f32.mrf.mxu1  ;;  %5433 = vmatmul.mubr.msk.bf16.gmra.mxu0 %vm96_vm1, %v6253_v61  ;;  %5461 = vmatmul.mubr.msk.bf16.gmra.mxu1 %vm96_vm1, %v6211_v51 }
 0x133   :  { %v6746_v46 = vadd.f32 %v5246_v48, %v6574_v19  ;;  %5464 = vmatprep.mubr.msk.bf16.mxu1 %vm96_vm1, %v6213_v52  ;;  %5436 = vmatprep.mubr.msk.bf16.mxu0 %vm96_vm1, %v6060_v10 }
 0x134   :  { %v670_v2 = vpop.f32.mrf.mxu0  ;;  %v6752_v7 = vpop.f32.mrf.mxu1 }
 0x135   :  { %v6755_v62 = vadd.f32 %v6568_v12, %v670_v2 }
 0x136   :  { %v5219_v53 = vpop.f32.mrf.mxu0  ;;  %v6757_v44 = vpop.f32.mrf.mxu1 }
 0x137   :  { %7965 = vst [vmem:[#allocation14_spill] sm:$0xff] %v6755_v62 }
 0x138   :  { %v673_v29 = vpop.f32.mrf.mxu0  ;;  %v6759_v51 = vpop.f32.mrf.mxu1 }
 0x139   :  { %7966 = vst [vmem:[#allocation15_spill] sm:$0xff] %v6759_v51 }
 0x13a   :  { %v5222_v19 = vpop.f32.mrf.mxu0  ;;  %v5250_v48 = vpop.f32.mrf.mxu1  ;;  %5465 = vmatmul.mubr.msk.bf16.gmra.mxu1 %vm96_vm1, %v6235_v57  ;;  %5437 = vmatmul.mubr.msk.bf16.gmra.mxu0 %vm96_vm1, %v6077_v15  ;;  %v5871_v57 = vld [vmem:[%s7943_s3 + $0x38] ss:$0 sps:$4 sm:$0xff]  }
 0x13b   :  { %v6766_v52 = vadd.f32 %v5250_v48, %v6590_v3  ;;  %5468 = vmatprep.mubr.msk.bf16.mxu1 %vm96_vm1, %v6237_v58  ;;  %v5872_v3 = vld [vmem:[%s7943_s3 + $0x164] ss:$0 sps:$4 sm:$0xff]   ;;  %5839 = vmatprep.subr.msk.bf16.mxu0 %vm2290_vm2, %v5871_v57 }
 0x13c   :  { %v683_v12 = vpop.f32.mrf.mxu0  ;;  %v6770_v2 = vpop.f32.mrf.mxu1  ;;  %5840 = vmatprep.subr.msk.bf16.mxu1 %vm2290_vm2, %v5872_v3 }
 0x13d   :  { %7967 = vst [vmem:[#allocation16_spill] sm:$0xff] %v6770_v2  ;;  %v2292_v12 = vsel %vm2290_vm2, %v5871_v57, 0  ;;  %v5873_v57 = vld [vmem:[%s7943_s3 + $0x30] sm:$0xff]  }
 0x13e   :  { %v5223_v29 = vpop.f32.mrf.mxu0  ;;  %v6772_v53 = vpop.f32.mrf.mxu1  ;;  %5477 = vmatpush3.bf16.msra.mxu0 %v2292_v12 }
 0x13f   :  { %5478 = vmatprep.subr.bf16.mxu0 %v5873_v57 }
 0x140   :  { %v685_v19 = vpop.f32.mrf.mxu0  ;;  %v6774_v51 = vpop.f32.mrf.mxu1 }
 0x141   :  { %7968 = vst [vmem:[#allocation17_spill] sm:$0xff] %v6774_v51  ;;  %v2433_v19 = vsel %vm2290_vm2, %v5872_v3, 0 }
 0x142   :  { %v5254_v48 = vpop.f32.mrf.mxu1  ;;  %v5266_v58 = vpop.f32.mrf.mxu0  ;;  %5469 = vmatmul.mubr.msk.bf16.gmra.mxu1 %vm96_vm1, %v6253_v61  ;;  %5479 = vmatpush3.bf16.msra.mxu0 %v5873_v57 }
 0x143   :  { %v6787_v29 = vadd.f32 %v5266_v58, %v6607_v8  ;;  %5505 = vmatpush3.bf16.msra.mxu1 %v2433_v19  ;;  %5472 = vmatprep.mubr.msk.bf16.mxu1 %vm96_vm1, %v6060_v10  ;;  %v5874_v8 = vld [vmem:[%s7943_s3 + $0x15c] sm:$0xff]  }
 0x144   :  { %v6791_v51 = vpop.f32.mrf.mxu1  ;;  %v967_v2 = vpop.f32.mrf.mxu0  ;;  %5506 = vmatprep.subr.bf16.mxu1 %v5874_v8 }
 0x145   :  { %7969 = vst [vmem:[#allocation18_spill] sm:$0xff] %v6791_v51 }
 0x146   :  { %v5255_v61 = vpop.f32.mrf.mxu1  ;;  %v5267_v48 = vpop.f32.mrf.mxu0 }
 0x147   :  { %v6802_v58 = vadd.f32 %v5267_v48, %v6597_v34  ;;  %5507 = vmatpush3.bf16.msra.mxu1 %v5874_v8 }
 0x148   :  { %v845_v3 = vpop.f32.mrf.mxu1  ;;  %v969_v12 = vpop.f32.mrf.mxu0 }
 0x149   :  { %v890_v12 = vadd.f32 %v6651_v36, %v6468_v32 }
 0x14a   :  { %v5258_v10 = vpop.f32.mrf.mxu1  ;;  %v5270_v2 = vpop.f32.mrf.mxu0  ;;  %5473 = vmatmul.mubr.msk.bf16.gmra.mxu1 %vm96_vm1, %v6077_v15 }
 0x14b   :  { %v6807_v19 = vadd.f32 %v5270_v2, %v6627_v35  ;;  %v5875_v35 = vld [vmem:[%s7943_s3 + $0x28] sm:$0xff]  }
 0x14c   :  { %v855_v61 = vpop.f32.mrf.mxu1  ;;  %v981_v51 = vpop.f32.mrf.mxu0  ;;  %5480 = vmatprep.subr.bf16.mxu0 %v5875_v35 }
 0x14d   :  { %v6810_v62 = vadd.f32 %v981_v51, %v6604_v11  ;;  %v5876_v11 = vld [vmem:[%s7943_s3 + $0x154] sm:$0xff]   ;;  %5481 = vmatpush3.bf16.msra.mxu0 %v5875_v35 }
 0x14e   :  { %v5259_v34 = vpop.f32.mrf.mxu1  ;;  %v5271_v48 = vpop.f32.mrf.mxu0  ;;  %5508 = vmatprep.subr.bf16.mxu1 %v5876_v11 }
 0x14f   :  { %v6813_v3 = vadd.f32 %v5271_v48, %v6614_v13  ;;  %5509 = vmatpush3.bf16.msra.mxu1 %v5876_v11 }
 0x150   :  { %v857_v57 = vpop.f32.mrf.mxu1  ;;  %v6815_v8 = vpop.f32.mrf.mxu0 }
 0x152   :  { %v5274_v15 = vpop.f32.mrf.mxu0  ;;  %v5302_v10 = vpop.f32.mrf.mxu1 }
 0x153   :  { %v6826_v51 = vadd.f32 %v5274_v15, %v6654_v63  ;;  %v6828_v13 = vadd.f32 %v5302_v10, %v890_v12  ;;  %v894_v15 = vadd.f32 %v6680_v27, %v6494_v42 }
 0x154   :  { %v997_v2 = vpop.f32.mrf.mxu0  ;;  %v1139_v61 = vpop.f32.mrf.mxu1 }
 0x155   :  { %v6831_v32 = vadd.f32 %v997_v2, %v6624_v22  ;;  %v5877_v22 = vld [vmem:[%s7943_s3 + $0x20] sm:$0xff]  }
 0x156   :  { %v5275_v36 = vpop.f32.mrf.mxu0  ;;  %v5303_v34 = vpop.f32.mrf.mxu1  ;;  %5482 = vmatprep.subr.bf16.mxu0 %v5877_v22 }
 0x157   :  { %v6834_v48 = vadd.f32 %v5275_v36, %v6634_v6  ;;  %v6837_v57 = vadd.f32 %v5303_v34, %v6637_v21  ;;  %v5878_v6 = vld [vmem:[%s7943_s3 + $0x14c] sm:$0xff]   ;;  %v892_v21 = vadd.f32 %v6646_v26, %v6458_v30  ;;  %5483 = vmatpush3.bf16.msra.mxu0 %v5877_v22 }
 0x158   :  { %v6839_v63 = vpop.f32.mrf.mxu0  ;;  %v1141_v12 = vpop.f32.mrf.mxu1  ;;  %5510 = vmatprep.subr.bf16.mxu1 %v5878_v6 }
 0x159   :  { %5511 = vmatpush3.bf16.msra.mxu1 %v5878_v6  ;;  %v896_v6 = vadd.f32 %v6675_v28, %v6482_v38 }
 0x15a   :  { %v5278_v10 = vpop.f32.mrf.mxu0  ;;  %v5306_v61 = vpop.f32.mrf.mxu1 }
 0x15b   :  { %v6852_v35 = vadd.f32 %v5278_v10, %v6683_v31  ;;  %v6854_v11 = vadd.f32 %v5306_v61, %v894_v15  ;;  %v898_v10 = vadd.f32 %v6711_v37, %v6518_v54 }
 0x15c   :  { %v1013_v2 = vpop.f32.mrf.mxu0  ;;  %v1153_v42 = vpop.f32.mrf.mxu1 }
 0x15d   :  { %v6857_v27 = vadd.f32 %v1013_v2, %v6649_v14  ;;  %v6859_v36 = vadd.f32 %v1153_v42, %v892_v21  ;;  %v882_v14 = vadd.f32 %v6709_v60, %v6540_v0  ;;  %v5879_v42 = vld [vmem:[%s7943_s3 + $0x18] sm:$0xff]   ;;  %v5880_v0 = vld [vmem:[%s7943_s3 + $0x144] sm:$0xff]  }
 0x15e   :  { %v5279_v34 = vpop.f32.mrf.mxu0  ;;  %v5307_v12 = vpop.f32.mrf.mxu1  ;;  %5484 = vmatprep.subr.bf16.mxu0 %v5879_v42  ;;  %5512 = vmatprep.subr.bf16.mxu1 %v5880_v0 }
 0x15f   :  { %v6862_v30 = vadd.f32 %v5279_v34, %v6661_v20  ;;  %v6865_v26 = vadd.f32 %v5307_v12, %v6664_v33  ;;  %5485 = vmatpush3.bf16.msra.mxu0 %v5879_v42  ;;  %5513 = vmatpush3.bf16.msra.mxu1 %v5880_v0 }
 0x160   :  { %v6867_v31 = vpop.f32.mrf.mxu0  ;;  %v6869_v15 = vpop.f32.mrf.mxu1 }
 0x162   :  { %v5282_v61 = vpop.f32.mrf.mxu0  ;;  %v5310_v22 = vpop.f32.mrf.mxu1 }
 0x163   :  { %v6877_v20 = vadd.f32 %v5282_v61, %v882_v14  ;;  %v6879_v21 = vadd.f32 %v5310_v22, %v898_v10  ;;  %v5882_v10 = vld [vmem:[%s7943_s3 + $0x13c] sm:$0xff]  }
 0x164   :  { %v1029_v33 = vpop.f32.mrf.mxu0  ;;  %v1169_v2 = vpop.f32.mrf.mxu1  ;;  %5514 = vmatprep.subr.bf16.mxu1 %v5882_v10 }
 0x165   :  { %v6888_v54 = vadd.f32 %v1029_v33, %v6678_v59  ;;  %v6890_v60 = vadd.f32 %v1169_v2, %v896_v6  ;;  %v5881_v59 = vld [vmem:[%s7943_s3 + $0x10] sm:$0xff]   ;;  %v900_v6 = vadd.f32 %v6704_v39, %v6506_v50  ;;  %5515 = vmatpush3.bf16.msra.mxu1 %v5882_v10 }
 0x166   :  { %v5283_v38 = vpop.f32.mrf.mxu0  ;;  %v5311_v28 = vpop.f32.mrf.mxu1  ;;  %5486 = vmatprep.subr.bf16.mxu0 %v5881_v59 }
 0x167   :  { %7970 = vst [vmem:[#allocation19_spill] sm:$0xff] %v6890_v60  ;;  %v6893_v37 = vadd.f32 %v5283_v38, %v6690_v43  ;;  %v6896_v34 = vadd.f32 %v5311_v28, %v6693_v49  ;;  %v886_v43 = vadd.f32 %v6737_v5, %v6564_v9  ;;  %v902_v49 = vadd.f32 %v6739_v56, %v6542_v1  ;;  %v5883_v9 = vld [vmem:[%s7943_s3 + $0x8] sm:$0xff]   ;;  %v5884_v1 = vld [vmem:[%s7943_s3 + $0x134] sm:$0xff]  }
 0x168   :  { %v6898_v12 = vpop.f32.mrf.mxu0  ;;  %v6900_v14 = vpop.f32.mrf.mxu1  ;;  %5487 = vmatpush3.bf16.msra.mxu0 %v5881_v59  ;;  %5516 = vmatprep.subr.bf16.mxu1 %v5884_v1 }
 0x169   :  { %5488 = vmatprep.subr.bf16.mxu0 %v5883_v9  ;;  %5517 = vmatpush3.bf16.msra.mxu1 %v5884_v1 }
 0x16a   :  { %v5286_v61 = vpop.f32.mrf.mxu0  ;;  %v5314_v22 = vpop.f32.mrf.mxu1 }
 0x16b   :  { %v6914_v33 = vadd.f32 %v5286_v61, %v886_v43  ;;  %v6916_v2 = vadd.f32 %v5314_v22, %v902_v49  ;;  %v5886_v43 = vld [vmem:[%s7943_s3 + $0x12c] sm:$0xff]  }
 0x16c   :  { %v1045_v42 = vpop.f32.mrf.mxu0  ;;  %v1185_v0 = vpop.f32.mrf.mxu1  ;;  %5489 = vmatpush3.bf16.msra.mxu0 %v5883_v9  ;;  %5518 = vmatprep.subr.bf16.mxu1 %v5886_v43 }
 0x16d   :  { %v6925_v5 = vadd.f32 %v1045_v42, %v6707_v4  ;;  %v6927_v50 = vadd.f32 %v1185_v0, %v900_v6  ;;  %v5885_v4 = vld [vmem:[%s7943_s3] sm:$0xff]   ;;  %5519 = vmatpush3.bf16.msra.mxu1 %v5886_v43 }
 0x16e   :  { %v5287_v39 = vpop.f32.mrf.mxu0  ;;  %v5315_v56 = vpop.f32.mrf.mxu1  ;;  %5490 = vmatprep.subr.bf16.mxu0 %v5885_v4 }
 0x16f   :  { %7971 = vst [vmem:[#allocation20_spill] sm:$0xff] %v6925_v5  ;;  %7972 = vst [vmem:[#allocation21_spill] sm:$0xff] %v6927_v50  ;;  %v6930_v38 = vadd.f32 %v5287_v39, %v6718_v40  ;;  %v6933_v28 = vadd.f32 %v5315_v56, %v6721_v55  ;;  %v7973_v55 = vld [vmem:[#allocation5_spill] sm:$0xff] }
 0x170   :  { %v6935_v59 = vpop.f32.mrf.mxu0  ;;  %v6937_v10 = vpop.f32.mrf.mxu1  ;;  %v904_v61 = vadd.f32 %v6732_v45, %v7973_v55  ;;  %5491 = vmatpush3.bf16.msra.mxu0 %v5885_v4  ;;  %v7975_v4 = vld [vmem:[#allocation7_spill] sm:$0xff] }
 0x171   :  { %v908_v43 = vadd.f32 %v6757_v44, %v7975_v4 }
 0x172   :  { %v5290_v49 = vpop.f32.mrf.mxu0  ;;  %v6945_v40 = vpop.f32.mrf.mxu1 }
 0x174   :  { %v1061_v22 = vpop.f32.mrf.mxu0  ;;  %v1201_v6 = vpop.f32.mrf.mxu1 }
 0x175   :  { %v6950_v42 = vadd.f32 %v1061_v22, %v6735_v17  ;;  %v6952_v0 = vadd.f32 %v1201_v6, %v904_v61  ;;  %v6968_v17 = vld [vmem:[%s7943_s3 + $0x74] ss:$0 sps:$4 sm:$0xff]  }
 0x176   :  { %v5291_v9 = vpop.f32.mrf.mxu0  ;;  %v5319_v1 = vpop.f32.mrf.mxu1  ;;  %7976 = vst [vmem:[#allocation7_spill] sm:$0xff] %v6968_v17  ;;  %5841 = vmatprep.subr.msk.bf16.mxu0 %vm2290_vm2, %v6968_v17 }
 0x177   :  { %7974 = vst [vmem:[#allocation5_spill] sm:$0xff] %v6952_v0  ;;  %v6955_v39 = vadd.f32 %v5319_v1, %v6746_v46  ;;  %v6973_v46 = vld [vmem:[%s7943_s3 + $0x1a0] ss:$0 sps:$4 sm:$0xff]  }
 0x178   :  { %v6957_v56 = vpop.f32.mrf.mxu0  ;;  %v6959_v49 = vpop.f32.mrf.mxu1  ;;  %7977 = vst [vmem:[#allocation22_spill] sm:$0xff] %v6973_v46  ;;  %5842 = vmatprep.subr.msk.bf16.mxu1 %vm2290_vm2, %v6973_v46 }
 0x17a   :  { %v5294_v50 = vpop.f32.mrf.mxu0  ;;  %v6961_v45 = vpop.f32.mrf.mxu1 }
 0x17c   :  { %v1075_v55 = vpop.f32.mrf.mxu0  ;;  %v1217_v61 = vpop.f32.mrf.mxu1 }
 0x17d   :  { %v6975_v22 = vadd.f32 %v1217_v61, %v908_v43  ;;  %v7979_v55 = vld [vmem:[#allocation10_spill] sm:$0xff] }
 0x17e   :  { %v5295_v44 = vpop.f32.mrf.mxu0  ;;  %v5323_v50 = vpop.f32.mrf.mxu1  ;;  %v912_v43 = vadd.f32 %v6772_v53, %v7979_v55 }
 0x17f   :  { %7978 = vst [vmem:[#allocation23_spill] sm:$0xff] %v6975_v22  ;;  %v6982_v6 = vadd.f32 %v5323_v50, %v6766_v52  ;;  %v1261_v50 = vadd.f32 %v6815_v8, %v6621_v24  ;;  %v1265_v24 = vadd.f32 %v6839_v63, %v6644_v16 }
 0x180   :  { %v1077_v9 = vpop.f32.mrf.mxu0  ;;  %v6984_v1 = vpop.f32.mrf.mxu1 }
 0x182   :  { %v5326_v4 = vpop.f32.mrf.mxu1  ;;  %v5338_v0 = vpop.f32.mrf.mxu0 }
 0x184   :  { %v1233_v61 = vpop.f32.mrf.mxu1  ;;  %v1359_v22 = vpop.f32.mrf.mxu0 }
 0x185   :  { %v6988_v5 = vadd.f32 %v1233_v61, %v912_v43 }
 0x186   :  { %v5327_v17 = vpop.f32.mrf.mxu1  ;;  %v5339_v60 = vpop.f32.mrf.mxu0 }
 0x187   :  { %7980 = vst [vmem:[#allocation10_spill] sm:$0xff] %v6988_v5  ;;  %v6991_v44 = vadd.f32 %v5339_v60, %v6787_v29  ;;  %v7991_v5 = vld [vmem:[#allocation15_spill] sm:$0xff] }
 0x188   :  { %v6993_v46 = vpop.f32.mrf.mxu1  ;;  %v1361_v52 = vpop.f32.mrf.mxu0 }
 0x18a   :  { %v5330_v9 = vpop.f32.mrf.mxu1  ;;  %v5342_v0 = vpop.f32.mrf.mxu0 }
 0x18b   :  { %v6997_v4 = vadd.f32 %v5342_v0, %v1261_v50 }
 0x18c   :  { %v1247_v53 = vpop.f32.mrf.mxu1  ;;  %v1372_v55 = vpop.f32.mrf.mxu0 }
 0x18d   :  { %v7000_v22 = vadd.f32 %v1372_v55, %v6802_v58 }
 0x18e   :  { %v5331_v17 = vpop.f32.mrf.mxu1  ;;  %v5343_v43 = vpop.f32.mrf.mxu0 }
 0x18f   :  { %v7003_v29 = vadd.f32 %v5343_v43, %v6807_v19  ;;  %v7981_v19 = vld [vmem:[#allocation2_spill] sm:$0xff] }
 0x190   :  { %v1249_v60 = vpop.f32.mrf.mxu1  ;;  %v7005_v61 = vpop.f32.mrf.mxu0  ;;  %v893_v17 = vadd.f32 %v7981_v19, %v6670_v41 }
 0x192   :  { %v5346_v8 = vpop.f32.mrf.mxu0  ;;  %v5374_v52 = vpop.f32.mrf.mxu1 }
 0x193   :  { %v7009_v50 = vadd.f32 %v5346_v8, %v1265_v24  ;;  %v1269_v24 = vadd.f32 %v6867_v31, %v6673_v23  ;;  %v7982_v23 = vld [vmem:[#allocation3_spill] sm:$0xff] }
 0x194   :  { %v1388_v9 = vpop.f32.mrf.mxu0  ;;  %v1531_v0 = vpop.f32.mrf.mxu1  ;;  %v897_v31 = vadd.f32 %v7982_v23, %v6699_v47 }
 0x195   :  { %v7012_v58 = vadd.f32 %v1388_v9, %v6813_v3  ;;  %v1285_v3 = vadd.f32 %v6869_v15, %v893_v17 }
 0x196   :  { %v5347_v53 = vpop.f32.mrf.mxu0  ;;  %v5375_v55 = vpop.f32.mrf.mxu1 }
 0x197   :  { %v7017_v43 = vadd.f32 %v5347_v53, %v6826_v51  ;;  %v7020_v60 = vadd.f32 %v5375_v55, %v6828_v13 }
 0x198   :  { %v7022_v16 = vpop.f32.mrf.mxu0  ;;  %v1533_v63 = vpop.f32.mrf.mxu1 }
 0x19a   :  { %v5350_v8 = vpop.f32.mrf.mxu0  ;;  %v5378_v52 = vpop.f32.mrf.mxu1 }
 0x19b   :  { %v7027_v9 = vadd.f32 %v5350_v8, %v1269_v24  ;;  %v7029_v0 = vadd.f32 %v5378_v52, %v1285_v3 }
 0x19c   :  { %v1404_v41 = vpop.f32.mrf.mxu0  ;;  %v1544_v51 = vpop.f32.mrf.mxu1 }
 0x19d   :  { %v7032_v53 = vadd.f32 %v1404_v41, %v6834_v48  ;;  %v7035_v13 = vadd.f32 %v1544_v51, %v6837_v57  ;;  %v1273_v48 = vadd.f32 %v6898_v12, %v6702_v25  ;;  %v1289_v57 = vadd.f32 %v6900_v14, %v897_v31  ;;  %v7983_v25 = vld [vmem:[#allocation4_spill] sm:$0xff] }
 0x19e   :  { %v5351_v55 = vpop.f32.mrf.mxu0  ;;  %v5379_v19 = vpop.f32.mrf.mxu1  ;;  %v901_v12 = vadd.f32 %v7983_v25, %v6727_v18 }
 0x19f   :  { %v7040_v15 = vadd.f32 %v5351_v55, %v6852_v35  ;;  %v7043_v17 = vadd.f32 %v5379_v19, %v6854_v11 }
 0x1a0   :  { %v7045_v63 = vpop.f32.mrf.mxu0  ;;  %v7047_v24 = vpop.f32.mrf.mxu1 }
 0x1a2   :  { %v5354_v3 = vpop.f32.mrf.mxu0  ;;  %v5382_v8 = vpop.f32.mrf.mxu1 }
 0x1a3   :  { %v7052_v52 = vadd.f32 %v5354_v3, %v1273_v48  ;;  %v7054_v47 = vadd.f32 %v5382_v8, %v1289_v57 }
 0x1a4   :  { %v1420_v35 = vpop.f32.mrf.mxu0  ;;  %v1560_v41 = vpop.f32.mrf.mxu1 }
 0x1a5   :  { %v7057_v11 = vadd.f32 %v1420_v35, %v6862_v30  ;;  %v7060_v51 = vadd.f32 %v1560_v41, %v6865_v26  ;;  %v7984_v30 = vld [vmem:[#allocation13_spill] sm:$0xff]  ;;  %v1293_v26 = vadd.f32 %v6937_v10, %v901_v12 }
 0x1a6   :  { %v5355_v55 = vpop.f32.mrf.mxu0  ;;  %v5383_v19 = vpop.f32.mrf.mxu1  ;;  %v1277_v57 = vadd.f32 %v6935_v59, %v7984_v30  ;;  %v7986_v59 = vld [vmem:[#allocation6_spill] sm:$0xff] }
 0x1a7   :  { %v7065_v14 = vadd.f32 %v5355_v55, %v6877_v20  ;;  %v7068_v23 = vadd.f32 %v5383_v19, %v6879_v21  ;;  %v905_v30 = vadd.f32 %v7986_v59, %v6752_v7 }
 0x1a8   :  { %v7070_v31 = vpop.f32.mrf.mxu0  ;;  %v7072_v48 = vpop.f32.mrf.mxu1 }
 0x1aa   :  { %v5358_v3 = vpop.f32.mrf.mxu0  ;;  %v5386_v8 = vpop.f32.mrf.mxu1 }
 0x1ab   :  { %v7077_v35 = vadd.f32 %v5358_v3, %v1277_v57  ;;  %v7079_v18 = vadd.f32 %v5386_v8, %v1293_v26 }
 0x1ac   :  { %v1436_v20 = vpop.f32.mrf.mxu0  ;;  %v1576_v41 = vpop.f32.mrf.mxu1 }
 0x1ad   :  { %v7082_v21 = vadd.f32 %v1436_v20, %v6893_v37  ;;  %v7085_v55 = vadd.f32 %v1576_v41, %v6896_v34  ;;  %v7989_v37 = vld [vmem:[#allocation14_spill] sm:$0xff]  ;;  %v1297_v34 = vadd.f32 %v6959_v49, %v905_v30  ;;  %v7990_v41 = vld [vmem:[#allocation8_spill] sm:$0xff] }
 0x1ae   :  { %v5359_v19 = vpop.f32.mrf.mxu0  ;;  %v5387_v25 = vpop.f32.mrf.mxu1  ;;  %v1281_v3 = vadd.f32 %v6957_v56, %v7989_v37  ;;  %v906_v7 = vadd.f32 %v7991_v5, %v7990_v41  ;;  %v7992_v37 = vld [vmem:[#allocation16_spill] sm:$0xff]  ;;  %v7995_v41 = vld [vmem:[#allocation11_spill] sm:$0xff] }
 0x1af   :  { %7985 = vst [vmem:[#allocation2_spill] sm:$0xff] %v7085_v55  ;;  %v7090_v10 = vadd.f32 %v5359_v19, %v6914_v33  ;;  %v7093_v12 = vadd.f32 %v5387_v25, %v6916_v2 }
 0x1b0   :  { %v7095_v57 = vpop.f32.mrf.mxu0  ;;  %v7097_v26 = vpop.f32.mrf.mxu1  ;;  %v1298_v25 = vadd.f32 %v6945_v40, %v906_v7 }
 0x1b1   :  { %7987 = vst [vmem:[#allocation3_spill] sm:$0xff] %v7090_v10  ;;  %7988 = vst [vmem:[#allocation4_spill] sm:$0xff] %v7093_v12  ;;  %v7993_v10 = vld [vmem:[#allocation9_spill] sm:$0xff] }
 0x1b2   :  { %v5362_v8 = vpop.f32.mrf.mxu0  ;;  %v5390_v20 = vpop.f32.mrf.mxu1  ;;  %v909_v55 = vadd.f32 %v7993_v10, %v7992_v37 }
 0x1b3   :  { %v7104_v59 = vadd.f32 %v5362_v8, %v1281_v3  ;;  %v7106_v33 = vadd.f32 %v5390_v20, %v1297_v34 }
 0x1b4   :  { %v1452_v2 = vpop.f32.mrf.mxu0  ;;  %v1592_v19 = vpop.f32.mrf.mxu1  ;;  %v1301_v8 = vadd.f32 %v6984_v1, %v909_v55  ;;  %v7997_v1 = vld [vmem:[#allocation18_spill] sm:$0xff]  ;;  %v7998_v55 = vld [vmem:[#allocation12_spill] sm:$0xff] }
 0x1b5   :  { %v7110_v12 = vadd.f32 %v1452_v2, %v6930_v38  ;;  %v7113_v56 = vadd.f32 %v1592_v19, %v6933_v28  ;;  %v7996_v28 = vld [vmem:[#allocation17_spill] sm:$0xff] }
 0x1b6   :  { %v5363_v49 = vpop.f32.mrf.mxu0  ;;  %v5391_v30 = vpop.f32.mrf.mxu1  ;;  %v910_v7 = vadd.f32 %v7996_v28, %v7995_v41 }
 0x1b7   :  { %v7117_v5 = vadd.f32 %v5391_v30, %v1298_v25 }
 0x1b8   :  { %v1455_v3 = vpop.f32.mrf.mxu0  ;;  %v7119_v34 = vpop.f32.mrf.mxu1  ;;  %v1302_v10 = vadd.f32 %v6961_v45, %v910_v7 }
 0x1b9   :  { %7994 = vst [vmem:[#allocation13_spill] sm:$0xff] %v7117_v5  ;;  %v7123_v40 = vadd.f32 %v1455_v3, %v6950_v42  ;;  %v913_v42 = vadd.f32 %v7998_v55, %v7997_v1  ;;  %v1652_v55 = vadd.f32 %v7005_v61, %v6810_v62 }
 0x1ba   :  { %v5366_v38 = vpop.f32.mrf.mxu0  ;;  %v5394_v20 = vpop.f32.mrf.mxu1 }
 0x1bb   :  { %v7127_v2 = vadd.f32 %v5394_v20, %v1301_v8  ;;  %v1305_v8 = vadd.f32 %v6993_v46, %v913_v42 }
 0x1bc   :  { %v1467_v19 = vpop.f32.mrf.mxu0  ;;  %v1608_v49 = vpop.f32.mrf.mxu1 }
 0x1bd   :  { %v7131_v25 = vadd.f32 %v1608_v49, %v6955_v39 }
 0x1be   :  { %v5367_v30 = vpop.f32.mrf.mxu0  ;;  %v5395_v37 = vpop.f32.mrf.mxu1 }
 0x1bf   :  { %v7135_v3 = vadd.f32 %v5395_v37, %v1302_v10 }
 0x1c0   :  { %v1469_v38 = vpop.f32.mrf.mxu0  ;;  %v7137_v5 = vpop.f32.mrf.mxu1 }
 0x1c2   :  { %v5398_v20 = vpop.f32.mrf.mxu1  ;;  %v5410_v41 = vpop.f32.mrf.mxu0 }
 0x1c3   :  { %v7140_v28 = vadd.f32 %v5398_v20, %v1305_v8 }
 0x1c4   :  { %v1624_v45 = vpop.f32.mrf.mxu1  ;;  %v1751_v7 = vpop.f32.mrf.mxu0 }
 0x1c5   :  { %v7143_v39 = vadd.f32 %v1624_v45, %v6982_v6 }
 0x1c6   :  { %v5399_v19 = vpop.f32.mrf.mxu1  ;;  %v5411_v49 = vpop.f32.mrf.mxu0 }
 0x1c8   :  { %v7145_v30 = vpop.f32.mrf.mxu1  ;;  %v1753_v10 = vpop.f32.mrf.mxu0 }
 0x1ca   :  { %v5402_v37 = vpop.f32.mrf.mxu1  ;;  %v5414_v1 = vpop.f32.mrf.mxu0 }
 0x1cb   :  { %v2044_v38 = vadd.f32 %v5414_v1, %v1652_v55  ;;  %v1656_v1 = vadd.f32 %v7022_v16, %v6831_v32 }
 0x1cc   :  { %v1639_v46 = vpop.f32.mrf.mxu1  ;;  %v1763_v42 = vpop.f32.mrf.mxu0 }
 0x1cd   :  { %v2042_v41 = vadd.f32 %v1763_v42, %v6991_v44  ;;  %v2094_v19 = vsel %vm2090_vm3, %v2044_v38, -inf }
 0x1ce   :  { %v5403_v8 = vpop.f32.mrf.mxu1  ;;  %v5415_v20 = vpop.f32.mrf.mxu0 }
 0x1cf   :  { %v2045_v6 = vadd.f32 %v5415_v20, %v6997_v4  ;;  %v7157_v55 = vsel %vm2090_vm3, %v2042_v41, -inf }
 0x1d0   :  { %v1641_v45 = vpop.f32.mrf.mxu1  ;;  %v1766_v7 = vpop.f32.mrf.mxu0 }
 0x1d1   :  { %v2095_v49 = vsel %vm2090_vm3, %v2045_v6, -inf  ;;  %v2043_v10 = vadd.f32 %v1766_v7, %v7000_v22 }
 0x1d2   :  { %v2096_v37 = vmax.f32 %v2094_v19, %v2095_v49  ;;  %v5418_v62 = vpop.f32.mrf.mxu0  ;;  %v5446_v61 = vpop.f32.mrf.mxu1  ;;  %v1660_v19 = vadd.f32 %v7045_v63, %v6857_v27  ;;  %v1676_v49 = vadd.f32 %v7047_v24, %v6859_v36 }
 0x1d3   :  { %v7160_v44 = vsel %vm2090_vm3, %v2043_v10, -inf  ;;  %v2048_v38 = vadd.f32 %v5418_v62, %v1656_v1 }
 0x1d4   :  { %v2093_v4 = vmax.f32 %v7157_v55, %v7160_v44  ;;  %v1779_v46 = vpop.f32.mrf.mxu0  ;;  %v1923_v42 = vpop.f32.mrf.mxu1 }
 0x1d5   :  { %v2046_v20 = vadd.f32 %v1779_v46, %v7003_v29  ;;  %v7167_v16 = vsel %vm2090_vm3, %v2048_v38, -inf }
 0x1d6   :  { %v5419_v8 = vpop.f32.mrf.mxu0  ;;  %v5447_v22 = vpop.f32.mrf.mxu1 }
 0x1d7   :  { %v2049_v6 = vadd.f32 %v5419_v8, %v7009_v50  ;;  %v7180_v62 = vsel %vm2090_vm3, %v2046_v20, -inf  ;;  %v1664_v8 = vadd.f32 %v7070_v31, %v6888_v54 }
 0x1d8   :  { %v1782_v45 = vpop.f32.mrf.mxu0  ;;  %v1925_v32 = vpop.f32.mrf.mxu1 }
 0x1d9   :  { %v7170_v41 = vsel %vm2090_vm3, %v2049_v6, -inf  ;;  %v2047_v7 = vadd.f32 %v1782_v45, %v7012_v58 }
 0x1da   :  { %v2102_v29 = vmax.f32 %v7167_v16, %v7170_v41  ;;  %v5422_v50 = vpop.f32.mrf.mxu0  ;;  %v5450_v10 = vpop.f32.mrf.mxu1  ;;  %v8002_v16 = vld [vmem:[#allocation7_spill] sm:$0xff] }
 0x1db   :  { %v7183_v61 = vsel %vm2090_vm3, %v2047_v7, -inf  ;;  %v2052_v1 = vadd.f32 %v5422_v50, %v1660_v19  ;;  %v2068_v55 = vadd.f32 %v5450_v10, %v1676_v49  ;;  %v2590_v41 = vsel %vm2290_vm2, %v8002_v16, 0 }
 0x1dc   :  { %v2099_v58 = vmax.f32 %v7180_v62, %v7183_v61  ;;  %v1795_v27 = vpop.f32.mrf.mxu0  ;;  %v1935_v63 = vpop.f32.mrf.mxu1 }
 0x1dd   :  { %v2050_v36 = vadd.f32 %v1795_v27, %v7017_v43  ;;  %v2066_v46 = vadd.f32 %v1935_v63, %v7020_v60  ;;  %v7194_v22 = vsel %vm2090_vm3, %v2052_v1, -inf  ;;  %v2130_v20 = vsel %vm2090_vm3, %v2068_v55, -inf }
 0x1de   :  { %v5423_v24 = vpop.f32.mrf.mxu0  ;;  %v5451_v44 = vpop.f32.mrf.mxu1 }
 0x1df   :  { %v2053_v42 = vadd.f32 %v5423_v24, %v7027_v9  ;;  %v2069_v38 = vadd.f32 %v5451_v44, %v7029_v0  ;;  %v7999_v0 = vld [vmem:[#allocation19_spill] sm:$0xff]  ;;  %v7206_v54 = vsel %vm2090_vm3, %v2050_v36, -inf  ;;  %v2127_v10 = vsel %vm2090_vm3, %v2066_v46, -inf }
 0x1e0   :  { %v1798_v6 = vpop.f32.mrf.mxu0  ;;  %v1938_v45 = vpop.f32.mrf.mxu1  ;;  %v1680_v7 = vadd.f32 %v7072_v48, %v7999_v0 }
 0x1e1   :  { %v7198_v43 = vsel %vm2090_vm3, %v2053_v42, -inf  ;;  %v2131_v32 = vsel %vm2090_vm3, %v2069_v38, -inf  ;;  %v2051_v60 = vadd.f32 %v1798_v6, %v7032_v53  ;;  %v2067_v9 = vadd.f32 %v1938_v45, %v7035_v13  ;;  %v7214_v53 = vld [vmem:[%s7944_s2] ss:$0 sm:$0xff]  ;;  %v8000_v38 = vld [vmem:[#allocation20_spill] sm:$0xff] }
 0x1e2   :  { %v2108_v31 = vmax.f32 %v7194_v22, %v7198_v43  ;;  %v2132_v19 = vmax.f32 %v2130_v20, %v2131_v32  ;;  %v5426_v49 = vpop.f32.mrf.mxu0  ;;  %v5454_v50 = vpop.f32.mrf.mxu1  ;;  %v1668_v20 = vadd.f32 %v7095_v57, %v8000_v38  ;;  %v8006_v43 = vld [vmem:[#allocation3_spill] sm:$0xff] }
 0x1e3   :  { %v7217_v13 = vsel %vm2090_vm3, %v2051_v60, -inf  ;;  %v2128_v48 = vsel %vm2090_vm3, %v2067_v9, -inf  ;;  %v2056_v1 = vadd.f32 %v5426_v49, %v1664_v8  ;;  %v2072_v36 = vadd.f32 %v5454_v50, %v1680_v7 }
 0x1e4   :  { %v2164_v55 = vmax.f32 %v2096_v37, %v2132_v19  ;;  %v2105_v27 = vmax.f32 %v7206_v54, %v7217_v13  ;;  %v2129_v63 = vmax.f32 %v2127_v10, %v2128_v48  ;;  %v1811_v24 = vpop.f32.mrf.mxu0  ;;  %v1951_v44 = vpop.f32.mrf.mxu1  ;;  %v8001_v37 = vld [vmem:[#allocation21_spill] sm:$0xff]  ;;  %v8008_v54 = vld [vmem:[#allocation23_spill] sm:$0xff] }
 0x1e5   :  { %v2054_v46 = vadd.f32 %v1811_v24, %v7040_v15  ;;  %v2070_v42 = vadd.f32 %v1951_v44, %v7043_v17  ;;  %v1684_v60 = vadd.f32 %v7097_v26, %v8001_v37  ;;  %v7230_v9 = vsel %vm2090_vm3, %v2056_v1, -inf }
 0x1e6   :  { %v2183_v6 = vadd.f32 %v7214_v53, %v2164_v55  ;;  %v2163_v45 = vmax.f32 %v2093_v4, %v2129_v63  ;;  %v5427_v32 = vpop.f32.mrf.mxu0  ;;  %v5455_v8 = vpop.f32.mrf.mxu1  ;;  %v2136_v7 = vsel %vm2090_vm3, %v2072_v36, -inf  ;;  %v1692_v13 = vadd.f32 %v7137_v5, %v8008_v54 }
 0x1e7   :  { %v2057_v0 = vadd.f32 %v5427_v32, %v7052_v52  ;;  %v2073_v15 = vadd.f32 %v5455_v8, %v7054_v47  ;;  %v7237_v57 = vsel %vm2090_vm3, %v2054_v46, -inf  ;;  %v2133_v4 = vsel %vm2090_vm3, %v2070_v42, -inf }
 0x1e8   :  { %v2182_v17 = vadd.f32 %v7214_v53, %v2163_v45  ;;  %v1814_v19 = vpop.f32.mrf.mxu0  ;;  %v1954_v49 = vpop.f32.mrf.mxu1  ;;  %v2195_v10 = vmax.f32 %v2183_v6, 0.0 }
 0x1e9   :  { %v7241_v26 = vsel %vm2090_vm3, %v2057_v0, -inf  ;;  %v2137_v50 = vsel %vm2090_vm3, %v2073_v15, -inf  ;;  %v2055_v52 = vadd.f32 %v1814_v19, %v7057_v11  ;;  %v2071_v47 = vadd.f32 %v1954_v49, %v7060_v51 }
 0x1ea   :  { %v2194_v48 = vmax.f32 %v2182_v17, 0.0  ;;  %v2114_v1 = vmax.f32 %v7230_v9, %v7241_v26  ;;  %v2138_v55 = vmax.f32 %v2136_v7, %v2137_v50  ;;  %v5430_v63 = vpop.f32.mrf.mxu0  ;;  %v5458_v36 = vpop.f32.mrf.mxu1 }
 0x1eb   :  { %v7249_v24 = vsel %vm2090_vm3, %v2055_v52, -inf  ;;  %v2134_v44 = vsel %vm2090_vm3, %v2071_v47, -inf  ;;  %v2060_v46 = vadd.f32 %v5430_v63, %v1668_v20  ;;  %v2076_v42 = vadd.f32 %v5458_v36, %v1684_v60 }
 0x1ec   :  { %v7252_v38 = vpack.c.bf16 %v2195_v10, %v2194_v48  ;;  %v2166_v11 = vmax.f32 %v2102_v29, %v2138_v55  ;;  %v2111_v51 = vmax.f32 %v7237_v57, %v7249_v24  ;;  %v2135_v6 = vmax.f32 %v2133_v4, %v2134_v44  ;;  %v1827_v45 = vpop.f32.mrf.mxu0  ;;  %v1967_v32 = vpop.f32.mrf.mxu1  ;;  %v8004_v29 = vld [vmem:[#allocation5_spill] sm:$0xff]  ;;  %v8005_v10 = vld [vmem:[#allocation2_spill] sm:$0xff] }
 0x1ed   :  { %v2058_v8 = vadd.f32 %v1827_v45, %v7065_v14  ;;  %v2074_v37 = vadd.f32 %v1967_v32, %v7068_v23  ;;  %v8003_v14 = vld [vmem:[#allocation22_spill] sm:$0xff]  ;;  %v1688_v17 = vadd.f32 %v7119_v34, %v8004_v29  ;;  %v7276_v62 = vsel %vm2090_vm3, %v2060_v46, -inf  ;;  %v8007_v29 = vld [vmem:[#allocation4_spill] sm:$0xff] }
 0x1ee   :  { %v2185_v0 = vadd.f32 %v7214_v53, %v2166_v11  ;;  %v2165_v20 = vmax.f32 %v2099_v58, %v2135_v6  ;;  %v5431_v60 = vpop.f32.mrf.mxu0  ;;  %v5459_v15 = vpop.f32.mrf.mxu1  ;;  %5492 = vmatprep.mubr.msk.bf16.mxu0 %vm2090_vm3, %v7252_v38  ;;  %5520 = vmatprep.mubr.msk.bf16.mxu1 %vm2090_vm3, %v7252_v38  ;;  %v2731_v23 = vsel %vm2290_vm2, %v8003_v14, 0  ;;  %v2142_v4 = vsel %vm2090_vm3, %v2076_v42, -inf  ;;  %v5895_v57 = vld [vmem:[%s7943_s3 + $0x54] sm:$0xff]   ;;  %v5896_v24 = vld [vmem:[%s7943_s3 + $0x180] sm:$0xff]  }
 0x1ef   :  { %v2061_v61 = vadd.f32 %v5431_v60, %v7077_v35  ;;  %v2077_v58 = vadd.f32 %v5459_v15, %v7079_v18  ;;  %v7283_v19 = vsel %vm2090_vm3, %v2058_v8, -inf  ;;  %v2139_v49 = vsel %vm2090_vm3, %v2074_v37, -inf  ;;  %v5889_v60 = vld [vmem:[%s7943_s3 + $0x6c] sm:$0xff]  }
 0x1f0   :  { %v2184_v7 = vadd.f32 %v7214_v53, %v2165_v20  ;;  %v1830_v50 = vpop.f32.mrf.mxu0  ;;  %v1970_v52 = vpop.f32.mrf.mxu1  ;;  %v2197_v48 = vmax.f32 %v2185_v0, 0.0 }
 0x1f1   :  { %v7287_v34 = vsel %vm2090_vm3, %v2061_v61, -inf  ;;  %v2143_v47 = vsel %vm2090_vm3, %v2077_v58, -inf  ;;  %v2059_v35 = vadd.f32 %v1830_v50, %v7082_v21  ;;  %v2075_v18 = vadd.f32 %v1970_v52, %v8005_v10  ;;  %v5892_v52 = vld [vmem:[%s7943_s3 + $0x190] sm:$0xff]  }
 0x1f2   :  { %v2196_v55 = vmax.f32 %v2184_v7, 0.0  ;;  %v2120_v63 = vmax.f32 %v7276_v62, %v7287_v34  ;;  %v2144_v36 = vmax.f32 %v2142_v4, %v2143_v47  ;;  %v5434_v44 = vpop.f32.mrf.mxu0  ;;  %v5462_v46 = vpop.f32.mrf.mxu1 }
 0x1f3   :  { %v7295_v42 = vsel %vm2090_vm3, %v2059_v35, -inf  ;;  %v2140_v11 = vsel %vm2090_vm3, %v2075_v18, -inf  ;;  %v2064_v6 = vadd.f32 %v5434_v44, %v7123_v40  ;;  %v2080_v45 = vadd.f32 %v5462_v46, %v1688_v17  ;;  %v5890_v40 = vld [vmem:[%s7943_s3 + $0x198] sm:$0xff]  }
 0x1f4   :  { %v7299_v32 = vpack.c.bf16 %v2197_v48, %v2196_v55  ;;  %v2168_v21 = vmax.f32 %v2108_v31, %v2144_v36  ;;  %v2117_v8 = vmax.f32 %v7283_v19, %v7295_v42  ;;  %v2141_v37 = vmax.f32 %v2139_v49, %v2140_v11  ;;  %v1843_v0 = vpop.f32.mrf.mxu0  ;;  %v1983_v20 = vpop.f32.mrf.mxu1  ;;  %v5899_v19 = vld [vmem:[%s7943_s3 + $0x44] sm:$0xff]   ;;  %v5900_v42 = vld [vmem:[%s7943_s3 + $0x170] sm:$0xff]  }
 0x1f5   :  { %v2062_v31 = vadd.f32 %v1843_v0, %v8006_v43  ;;  %v2078_v17 = vadd.f32 %v1983_v20, %v8007_v29  ;;  %v7328_v7 = vsel %vm2090_vm3, %v2064_v6, -inf  ;;  %v2148_v4 = vsel %vm2090_vm3, %v2080_v45, -inf  ;;  %v5894_v0 = vld [vmem:[%s7943_s3 + $0x188] sm:$0xff]  }
 0x1f6   :  { %v2187_v15 = vadd.f32 %v7214_v53, %v2168_v21  ;;  %v2167_v22 = vmax.f32 %v2105_v27, %v2141_v37  ;;  %v5435_v16 = vpop.f32.mrf.mxu0  ;;  %v5463_v14 = vpop.f32.mrf.mxu1  ;;  %5493 = vmatmul.mubr.msk.bf16.vlgmr.msra.gmra.mxu0 %vm2090_vm3, %v7299_v32  ;;  %5521 = vmatmul.mubr.msk.bf16.vlgmr.msra.gmra.mxu1 %vm2090_vm3, %v7299_v32  ;;  %v5893_v37 = vld [vmem:[%s7943_s3 + $0x5c] sm:$0xff]  }
 0x1f7   :  { %v2065_v61 = vadd.f32 %v5435_v16, %v7104_v59  ;;  %v2081_v58 = vadd.f32 %v5463_v14, %v7106_v33  ;;  %5533 = vmatpush3.bf16.msra.mxu0 %v2590_v41  ;;  %5561 = vmatpush3.bf16.msra.mxu1 %v2731_v23  ;;  %v5891_v59 = vld [vmem:[%s7943_s3 + $0x64] sm:$0xff]   ;;  %v7346_v36 = vsel %vm2090_vm3, %v2062_v31, -inf  ;;  %v2145_v44 = vsel %vm2090_vm3, %v2078_v17, -inf }
 0x1f8   :  { %v2186_v27 = vadd.f32 %v7214_v53, %v2167_v22  ;;  %v1846_v49 = vpop.f32.mrf.mxu0  ;;  %v1986_v50 = vpop.f32.mrf.mxu1  ;;  %5534 = vmatprep.subr.bf16.mxu0 %v5889_v60  ;;  %5562 = vmatprep.subr.bf16.mxu1 %v5890_v40  ;;  %v2199_v47 = vmax.f32 %v2187_v15, 0.0  ;;  %v8009_v15 = vld [vmem:[#allocation13_spill] sm:$0xff] }
 0x1f9   :  { %v7335_v33 = vsel %vm2090_vm3, %v2065_v61, -inf  ;;  %v2149_v5 = vsel %vm2090_vm3, %v2081_v58, -inf  ;;  %v2063_v41 = vadd.f32 %v1846_v49, %v7110_v12  ;;  %v2079_v23 = vadd.f32 %v1986_v50, %v7113_v56 }
 0x1fa   :  { %v2198_v35 = vmax.f32 %v2186_v27, 0.0  ;;  %v2126_v10 = vmax.f32 %v7328_v7, %v7335_v33  ;;  %v2150_v18 = vmax.f32 %v2148_v4, %v2149_v5  ;;  %v5466_v48 = vpop.f32.mrf.mxu1  ;;  %v5438_v55 = vpop.f32.mrf.mxu0 }
 0x1fb   :  { %v7350_v12 = vsel %vm2090_vm3, %v2063_v41, -inf  ;;  %v2146_v56 = vsel %vm2090_vm3, %v2079_v23, -inf  ;;  %5535 = vmatpush3.bf16.msra.mxu0 %v5889_v60  ;;  %5563 = vmatpush3.bf16.msra.mxu1 %v5890_v40  ;;  %v2084_v60 = vadd.f32 %v5466_v48, %v1692_v13  ;;  %v8010_v13 = vld [vmem:[#allocation10_spill] sm:$0xff]  ;;  %v5898_v41 = vld [vmem:[%s7943_s3 + $0x178] sm:$0xff]  }
 0x1fc   :  { %v7353_v46 = vpack.c.bf16 %v2199_v47, %v2198_v35  ;;  %v2170_v11 = vmax.f32 %v2114_v1, %v2150_v18  ;;  %v2123_v6 = vmax.f32 %v7346_v36, %v7350_v12  ;;  %v2147_v45 = vmax.f32 %v2145_v44, %v2146_v56  ;;  %v1999_v21 = vpop.f32.mrf.mxu1  ;;  %5536 = vmatprep.subr.bf16.mxu0 %v5891_v59  ;;  %v1859_v20 = vpop.f32.mrf.mxu0  ;;  %v5904_v36 = vld [vmem:[%s7943_s3 + $0x1dc] ss:$0 sps:$4 sm:$0xff]  }
 0x1fd   :  { %5564 = vmatprep.subr.bf16.mxu1 %v5892_v52  ;;  %v2082_v22 = vadd.f32 %v1999_v21, %v8009_v15  ;;  %v2154_v14 = vsel %vm2090_vm3, %v2084_v60, -inf  ;;  %v1696_v27 = vadd.f32 %v7145_v30, %v8010_v13  ;;  %v5897_v30 = vld [vmem:[%s7943_s3 + $0x4c] sm:$0xff]   ;;  %v3029_v15 = vsel %vm2290_vm2, %v5904_v36, 0 }
 0x1fe   :  { %v2189_v9 = vadd.f32 %v7214_v53, %v2170_v11  ;;  %v2169_v26 = vmax.f32 %v2111_v51, %v2147_v45  ;;  %v5467_v1 = vpop.f32.mrf.mxu1  ;;  %5496 = vmatprep.mubr.msk.bf16.mxu0 %vm2090_vm3, %v7353_v46  ;;  %5524 = vmatprep.mubr.msk.bf16.mxu1 %vm2090_vm3, %v7353_v46  ;;  %v5439_v40 = vpop.f32.mrf.mxu0  ;;  %v5902_v20 = vld [vmem:[%s7943_s3 + $0x168] sm:$0xff]  }
 0x1ff   :  { %v2085_v43 = vadd.f32 %v5467_v1, %v7127_v2  ;;  %5537 = vmatpush3.bf16.msra.mxu0 %v5891_v59  ;;  %5565 = vmatpush3.bf16.msra.mxu1 %v5892_v52  ;;  %v2151_v4 = vsel %vm2090_vm3, %v2082_v22, -inf  ;;  %v5905_v22 = vld [vmem:[%s7943_s3 + $0xa8] sm:$0xff]  }
 0x200   :  { %v2188_v31 = vadd.f32 %v7214_v53, %v2169_v26  ;;  %v2002_v16 = vpop.f32.mrf.mxu1  ;;  %5538 = vmatprep.subr.bf16.mxu0 %v5893_v37  ;;  %5566 = vmatprep.subr.bf16.mxu1 %v5894_v0  ;;  %v1861_v51 = vpop.f32.mrf.mxu0  ;;  %v2201_v17 = vmax.f32 %v2189_v9, 0.0  ;;  %v5919_v13 = vld [vmem:[%s7943_s3 + $0xec] ss:$0 sps:$4 sm:$0xff]  }
 0x201   :  { %v2155_v2 = vsel %vm2090_vm3, %v2085_v43, -inf  ;;  %v2083_v29 = vadd.f32 %v2002_v16, %v7131_v25  ;;  %v5906_v43 = vld [vmem:[%s7943_s3 + $0x1d4] sm:$0xff]   ;;  %v5908_v16 = vld [vmem:[%s7943_s3 + $0x1cc] sm:$0xff]  }
 0x202   :  { %v2200_v61 = vmax.f32 %v2188_v31, 0.0  ;;  %v2156_v58 = vmax.f32 %v2154_v14, %v2155_v2  ;;  %v5470_v54 = vpop.f32.mrf.mxu1  ;;  %v5907_v31 = vld [vmem:[%s7943_s3 + $0xa0] sm:$0xff]   ;;  %v5911_v51 = vld [vmem:[%s7943_s3 + $0x90] sm:$0xff]   ;;  %v5913_v2 = vld [vmem:[%s7943_s3 + $0x88] sm:$0xff]  }
 0x203   :  { %v2152_v49 = vsel %vm2090_vm3, %v2083_v29, -inf  ;;  %5539 = vmatpush3.bf16.msra.mxu0 %v5893_v37  ;;  %5567 = vmatpush3.bf16.msra.mxu1 %v5894_v0  ;;  %v2088_v23 = vadd.f32 %v5470_v54, %v1696_v27  ;;  %v5912_v14 = vld [vmem:[%s7943_s3 + $0x1bc] sm:$0xff]   ;;  %v5914_v29 = vld [vmem:[%s7943_s3 + $0x1b4] sm:$0xff]   ;;  %v5918_v54 = vld [vmem:[%s7943_s3 + $0x1a4] sm:$0xff]  }
 0x204   :  { %v7390_v50 = vpack.c.bf16 %v2201_v17, %v2200_v61  ;;  %v2172_v59 = vmax.f32 %v2120_v63, %v2156_v58  ;;  %v2153_v25 = vmax.f32 %v2151_v4, %v2152_v49  ;;  %v2015_v5 = vpop.f32.mrf.mxu1  ;;  %5540 = vmatprep.subr.bf16.mxu0 %v5895_v57  ;;  %5568 = vmatprep.subr.bf16.mxu1 %v5896_v24  ;;  %v5915_v17 = vld [vmem:[%s7943_s3 + $0x80] sm:$0xff]   ;;  %v5916_v61 = vld [vmem:[%s7943_s3 + $0x1ac] sm:$0xff]   ;;  %v5917_v58 = vld [vmem:[%s7943_s3 + $0x78] sm:$0xff]   ;;  %v3186_v4 = vsel %vm2290_vm2, %v5919_v13, 0 }
 0x205   :  { %v2086_v63 = vadd.f32 %v2015_v5, %v7135_v3  ;;  %v5920_v27 = vld [vmem:[%s7943_s3 + $0x218] ss:$0 sps:$4 sm:$0xff]   ;;  %v5923_v5 = vld [vmem:[%s7943_s3 + $0xdc] sm:$0xff]  }
 0x206   :  { %v2191_v52 = vadd.f32 %v7214_v53, %v2172_v59  ;;  %v2171_v62 = vmax.f32 %v2117_v8, %v2153_v25  ;;  %v5471_v34 = vpop.f32.mrf.mxu1  ;;  %5497 = vmatmul.mubr.msk.bf16.gmra.mxu0 %vm2090_vm3, %v7390_v50  ;;  %5525 = vmatmul.mubr.msk.bf16.gmra.mxu1 %vm2090_vm3, %v7390_v50  ;;  %v2160_v8 = vsel %vm2090_vm3, %v2088_v23, -inf  ;;  %v3327_v49 = vsel %vm2290_vm2, %v5920_v27, 0  ;;  %v5921_v59 = vld [vmem:[%s7943_s3 + $0xe4] sm:$0xff]   ;;  %v5922_v25 = vld [vmem:[%s7943_s3 + $0x210] sm:$0xff]  }
 0x207   :  { %v2089_v47 = vadd.f32 %v5471_v34, %v7140_v28  ;;  %5541 = vmatpush3.bf16.msra.mxu0 %v5895_v57  ;;  %5569 = vmatpush3.bf16.msra.mxu1 %v5896_v24  ;;  %v2157_v11 = vsel %vm2090_vm3, %v2086_v63, -inf  ;;  %v5909_v57 = vld [vmem:[%s7943_s3 + $0x98] sm:$0xff]   ;;  %v5910_v24 = vld [vmem:[%s7943_s3 + $0x1c4] sm:$0xff]   ;;  %v5930_v63 = vld [vmem:[%s7943_s3 + $0x1f0] sm:$0xff]  }
 0x208   :  { %v2190_v35 = vadd.f32 %v7214_v53, %v2171_v62  ;;  %v2018_v18 = vpop.f32.mrf.mxu1  ;;  %5542 = vmatprep.subr.bf16.mxu0 %v5897_v30  ;;  %5570 = vmatprep.subr.bf16.mxu1 %v5898_v41  ;;  %v2203_v48 = vmax.f32 %v2191_v52, 0.0  ;;  %v5926_v23 = vld [vmem:[%s7943_s3 + $0x200] sm:$0xff]   ;;  %v5927_v52 = vld [vmem:[%s7943_s3 + $0xcc] sm:$0xff]   ;;  %v5928_v62 = vld [vmem:[%s7943_s3 + $0x1f8] sm:$0xff]  }
 0x209   :  { %v2161_v3 = vsel %vm2090_vm3, %v2089_v47, -inf  ;;  %v2087_v28 = vadd.f32 %v2018_v18, %v7143_v39  ;;  %v5901_v39 = vld [vmem:[%s7943_s3 + $0x3c] sm:$0xff]   ;;  %v5929_v34 = vld [vmem:[%s7943_s3 + $0xc4] sm:$0xff]   ;;  %v5933_v18 = vld [vmem:[%s7943_s3 + $0xb4] sm:$0xff]  }
 0x20a   :  { %v2202_v55 = vmax.f32 %v2190_v35, 0.0  ;;  %v2162_v44 = vmax.f32 %v2160_v8, %v2161_v3  ;;  %v5474_v56 = vpop.f32.mrf.mxu1  ;;  %v5931_v47 = vld [vmem:[%s7943_s3 + $0xbc] sm:$0xff]   ;;  %v5932_v35 = vld [vmem:[%s7943_s3 + $0x1e8] sm:$0xff]   ;;  %v5936_v8 = vld [vmem:[%s7943_s3 + $0x254] ss:$0 sps:$4 sm:$0xff]  }
 0x20b   :  { %v2158_v45 = vsel %vm2090_vm3, %v2087_v28, -inf  ;;  %5543 = vmatpush3.bf16.msra.mxu0 %v5897_v30  ;;  %5571 = vmatpush3.bf16.msra.mxu1 %v5898_v41  ;;  %v5924_v30 = vld [vmem:[%s7943_s3 + $0x208] sm:$0xff]   ;;  %v5925_v41 = vld [vmem:[%s7943_s3 + $0xd4] sm:$0xff]   ;;  %v3625_v28 = vsel %vm2290_vm2, %v5936_v8, 0 }
 0x20c   :  { %v7423_v21 = vpack.c.bf16 %v2203_v48, %v2202_v55  ;;  %v2174_v37 = vmax.f32 %v2126_v10, %v2162_v44  ;;  %v2159_v0 = vmax.f32 %v2157_v11, %v2158_v45  ;;  %5544 = vmatprep.subr.bf16.mxu0 %v5899_v19  ;;  %5572 = vmatprep.subr.bf16.mxu1 %v5900_v42  ;;  %v2031_v60 = vpop.f32.mrf.mxu1  ;;  %v5903_v10 = vld [vmem:[%s7943_s3 + $0xb0] ss:$0 sps:$4 sm:$0xff]   ;;  %v5937_v48 = vld [vmem:[%s7943_s3 + $0x120] sm:$0xff]   ;;  %v5939_v44 = vld [vmem:[%s7943_s3 + $0x118] sm:$0xff]  }
 0x20d   :  { %v5938_v55 = vld [vmem:[%s7943_s3 + $0x24c] sm:$0xff]   ;;  %v5940_v56 = vld [vmem:[%s7943_s3 + $0x244] sm:$0xff]   ;;  %v5942_v45 = vld [vmem:[%s7943_s3 + $0x23c] sm:$0xff]  }
 0x20e   :  { %v2193_v9 = vadd.f32 %v7214_v53, %v2174_v37  ;;  %v2173_v26 = vmax.f32 %v2123_v6, %v2159_v0  ;;  %5500 = vmatprep.mubr.msk.bf16.mxu0 %vm2090_vm3, %v7423_v21  ;;  %5528 = vmatprep.mubr.msk.bf16.mxu1 %vm2090_vm3, %v7423_v21  ;;  %v5475_v7 = vpop.f32.mrf.mxu1  ;;  %v5941_v11 = vld [vmem:[%s7943_s3 + $0x110] sm:$0xff]   ;;  %v5943_v37 = vld [vmem:[%s7943_s3 + $0x108] sm:$0xff]   ;;  %v5947_v60 = vld [vmem:[%s7943_s3 + $0xf8] sm:$0xff]  }
 0x20f   :  { %5545 = vmatpush3.bf16.msra.mxu0 %v5899_v19  ;;  %5573 = vmatpush3.bf16.msra.mxu1 %v5900_v42  ;;  %v5934_v19 = vld [vmem:[%s7943_s3 + $0x1e0] sm:$0xff]   ;;  %v5935_v42 = vld [vmem:[%s7943_s3 + $0x128] ss:$0 sps:$4 sm:$0xff]   ;;  %v5944_v0 = vld [vmem:[%s7943_s3 + $0x234] sm:$0xff]  }
 0x210   :  { %v2192_v33 = vadd.f32 %v7214_v53, %v2173_v26  ;;  %5546 = vmatprep.subr.bf16.mxu0 %v5901_v39  ;;  %5574 = vmatprep.subr.bf16.mxu1 %v5902_v20  ;;  %v2033_v12 = vpop.f32.mrf.mxu1  ;;  %v2205_v6 = vmax.f32 %v2193_v9, 0.0  ;;  %v2888_v53 = vsel %vm2290_vm2, %v5903_v10, 0  ;;  %v3484_v3 = vsel %vm2290_vm2, %v5935_v42, 0  ;;  %v5948_v9 = vld [vmem:[%s7943_s3 + $0x224] sm:$0xff]   ;;  %v5950_v26 = vld [vmem:[%s7943_s3 + $0x21c] sm:$0xff]  }
 0x211   :  { %v5952_v12 = vld [vmem:[%s7945_s5 + $0x20] sm:$0xff]  }
 0x212   :  { %v2204_v1 = vmax.f32 %v2192_v33, 0.0 }
 0x213   :  { %5547 = vmatpush3.bf16.msra.mxu0 %v5901_v39  ;;  %5575 = vmatpush3.bf16.msra.mxu1 %v5902_v20  ;;  %v5945_v39 = vld [vmem:[%s7943_s3 + $0x100] sm:$0xff]   ;;  %v5946_v20 = vld [vmem:[%s7943_s3 + $0x22c] sm:$0xff]  }
 0x214   :  { %v7449_v40 = vpack.c.bf16 %v2205_v6, %v2204_v1  ;;  %5843 = vmatprep.subr.msk.bf16.mxu0 %vm2290_vm2, %v5903_v10  ;;  %5844 = vmatprep.subr.msk.bf16.mxu1 %vm2290_vm2, %v5904_v36  ;;  %v5979_v36 = vmov 0.0  }
 0x216   :  { %5501 = vmatmul.mubr.msk.bf16.gmra.mxu0 %vm2090_vm3, %v7449_v40  ;;  %5529 = vmatmul.mubr.msk.bf16.gmra.mxu1 %vm2090_vm3, %v7449_v40 }
 0x217   :  { %5548 = vmatprep.mubr.msk.bf16.mxu0 %vm2090_vm3, %v7252_v38  ;;  %5576 = vmatprep.mubr.msk.bf16.mxu1 %vm2090_vm3, %v7252_v38 }
 0x21e   :  { %5549 = vmatmul.mubr.msk.bf16.vlgmr.msra.gmra.mxu0 %vm2090_vm3, %v7299_v32  ;;  %5577 = vmatmul.mubr.msk.bf16.vlgmr.msra.gmra.mxu1 %vm2090_vm3, %v7299_v32 }
 0x21f   :  { %5589 = vmatpush3.bf16.msra.mxu0 %v2888_v53  ;;  %5617 = vmatpush3.bf16.msra.mxu1 %v3029_v15  ;;  %v5953_v15 = vld [vmem:[%s7945_s5 + $0x40] sm:$0xff]  }
 0x220   :  { %5552 = vmatprep.mubr.msk.bf16.mxu0 %vm2090_vm3, %v7353_v46  ;;  %5580 = vmatprep.mubr.msk.bf16.mxu1 %vm2090_vm3, %v7353_v46 }
 0x221   :  { %5590 = vmatprep.subr.bf16.mxu0 %v5905_v22  ;;  %5618 = vmatprep.subr.bf16.mxu1 %v5906_v43 }
 0x223   :  { %5591 = vmatpush3.bf16.msra.mxu0 %v5905_v22  ;;  %5619 = vmatpush3.bf16.msra.mxu1 %v5906_v43  ;;  %v5954_v22 = vld [vmem:[%s7945_s5 + $0x18] sm:$0xff]  }
 0x224   :  { %5592 = vmatprep.subr.bf16.mxu0 %v5907_v31  ;;  %5620 = vmatprep.subr.bf16.mxu1 %v5908_v16 }
 0x226   :  { %5553 = vmatmul.mubr.msk.bf16.gmra.mxu0 %vm2090_vm3, %v7390_v50  ;;  %5581 = vmatmul.mubr.msk.bf16.gmra.mxu1 %vm2090_vm3, %v7390_v50 }
 0x227   :  { %5593 = vmatpush3.bf16.msra.mxu0 %v5907_v31  ;;  %5621 = vmatpush3.bf16.msra.mxu1 %v5908_v16  ;;  %v5955_v16 = vld [vmem:[%s7945_s5 + $0x38] sm:$0xff]  }
 0x228   :  { %5556 = vmatprep.mubr.msk.bf16.mxu0 %vm2090_vm3, %v7423_v21  ;;  %5584 = vmatprep.mubr.msk.bf16.mxu1 %vm2090_vm3, %v7423_v21 }
 0x229   :  { %5594 = vmatprep.subr.bf16.mxu0 %v5909_v57  ;;  %5622 = vmatprep.subr.bf16.mxu1 %v5910_v24 }
 0x22b   :  { %5595 = vmatpush3.bf16.msra.mxu0 %v5909_v57  ;;  %5623 = vmatpush3.bf16.msra.mxu1 %v5910_v24  ;;  %v5956_v57 = vld [vmem:[%s7945_s5 + $0x10] sm:$0xff]  }
 0x22c   :  { %5596 = vmatprep.subr.bf16.mxu0 %v5911_v51  ;;  %5624 = vmatprep.subr.bf16.mxu1 %v5912_v14 }
 0x22e   :  { %5557 = vmatmul.mubr.msk.bf16.gmra.mxu0 %vm2090_vm3, %v7449_v40  ;;  %5585 = vmatmul.mubr.msk.bf16.gmra.mxu1 %vm2090_vm3, %v7449_v40 }
 0x22f   :  { %5597 = vmatpush3.bf16.msra.mxu0 %v5911_v51  ;;  %5625 = vmatpush3.bf16.msra.mxu1 %v5912_v14  ;;  %v5957_v14 = vld [vmem:[%s7945_s5 + $0x30] sm:$0xff]  }
 0x230   :  { %5604 = vmatprep.mubr.msk.bf16.mxu0 %vm2090_vm3, %v7252_v38  ;;  %5632 = vmatprep.mubr.msk.bf16.mxu1 %vm2090_vm3, %v7252_v38 }
 0x231   :  { %5598 = vmatprep.subr.bf16.mxu0 %v5913_v2  ;;  %5626 = vmatprep.subr.bf16.mxu1 %v5914_v29 }
 0x233   :  { %5599 = vmatpush3.bf16.msra.mxu0 %v5913_v2  ;;  %5627 = vmatpush3.bf16.msra.mxu1 %v5914_v29  ;;  %v5958_v2 = vld [vmem:[%s7945_s5 + $0x8] sm:$0xff]  }
 0x234   :  { %5600 = vmatprep.subr.bf16.mxu0 %v5915_v17  ;;  %5628 = vmatprep.subr.bf16.mxu1 %v5916_v61 }
 0x237   :  { %5601 = vmatpush3.bf16.msra.mxu0 %v5915_v17  ;;  %5629 = vmatpush3.bf16.msra.mxu1 %v5916_v61  ;;  %v5959_v61 = vld [vmem:[%s7945_s5 + $0x28] sm:$0xff]  }
 0x238   :  { %5602 = vmatprep.subr.bf16.mxu0 %v5917_v58  ;;  %5630 = vmatprep.subr.bf16.mxu1 %v5918_v54 }
 0x23b   :  { %5603 = vmatpush3.bf16.msra.mxu0 %v5917_v58  ;;  %5631 = vmatpush3.bf16.msra.mxu1 %v5918_v54 }
 0x23c   :  { %5845 = vmatprep.subr.msk.bf16.mxu0 %vm2290_vm2, %v5919_v13  ;;  %5846 = vmatprep.subr.msk.bf16.mxu1 %vm2290_vm2, %v5920_v27  ;;  %v5960_v13 = vld [vmem:[%s7945_s5] sm:$0xff]  }
 0x23e   :  { %5605 = vmatmul.mubr.msk.bf16.vlgmr.msra.gmra.mxu0 %vm2090_vm3, %v7299_v32  ;;  %5633 = vmatmul.mubr.msk.bf16.vlgmr.msra.gmra.mxu1 %vm2090_vm3, %v7299_v32 }
 0x23f   :  { %5608 = vmatprep.mubr.msk.bf16.mxu0 %vm2090_vm3, %v7353_v46  ;;  %5636 = vmatprep.mubr.msk.bf16.mxu1 %vm2090_vm3, %v7353_v46 }
 0x240   :  { %5645 = vmatpush3.bf16.msra.mxu0 %v3186_v4  ;;  %5673 = vmatpush3.bf16.msra.mxu1 %v3327_v49 }
 0x241   :  { %5646 = vmatprep.subr.bf16.mxu0 %v5921_v59  ;;  %5674 = vmatprep.subr.bf16.mxu1 %v5922_v25 }
 0x244   :  { %5647 = vmatpush3.bf16.msra.mxu0 %v5921_v59  ;;  %5675 = vmatpush3.bf16.msra.mxu1 %v5922_v25 }
 0x245   :  { %5648 = vmatprep.subr.bf16.mxu0 %v5923_v5  ;;  %5676 = vmatprep.subr.bf16.mxu1 %v5924_v30 }
 0x246   :  { %5609 = vmatmul.mubr.msk.bf16.gmra.mxu0 %vm2090_vm3, %v7390_v50  ;;  %5637 = vmatmul.mubr.msk.bf16.gmra.mxu1 %vm2090_vm3, %v7390_v50 }
 0x247   :  { %5612 = vmatprep.mubr.msk.bf16.mxu0 %vm2090_vm3, %v7423_v21  ;;  %5640 = vmatprep.mubr.msk.bf16.mxu1 %vm2090_vm3, %v7423_v21 }
 0x248   :  { %5649 = vmatpush3.bf16.msra.mxu0 %v5923_v5  ;;  %5677 = vmatpush3.bf16.msra.mxu1 %v5924_v30 }
 0x249   :  { %5650 = vmatprep.subr.bf16.mxu0 %v5925_v41  ;;  %5678 = vmatprep.subr.bf16.mxu1 %v5926_v23 }
 0x24c   :  { %5651 = vmatpush3.bf16.msra.mxu0 %v5925_v41  ;;  %5679 = vmatpush3.bf16.msra.mxu1 %v5926_v23 }
 0x24d   :  { %5652 = vmatprep.subr.bf16.mxu0 %v5927_v52  ;;  %5680 = vmatprep.subr.bf16.mxu1 %v5928_v62 }
 0x24e   :  { %5613 = vmatmul.mubr.msk.bf16.gmra.mxu0 %vm2090_vm3, %v7449_v40  ;;  %5641 = vmatmul.mubr.msk.bf16.gmra.mxu1 %vm2090_vm3, %v7449_v40 }
 0x24f   :  { %5660 = vmatprep.mubr.msk.bf16.mxu0 %vm2090_vm3, %v7252_v38  ;;  %5688 = vmatprep.mubr.msk.bf16.mxu1 %vm2090_vm3, %v7252_v38 }
 0x250   :  { %5653 = vmatpush3.bf16.msra.mxu0 %v5927_v52  ;;  %5681 = vmatpush3.bf16.msra.mxu1 %v5928_v62 }
 0x251   :  { %5654 = vmatprep.subr.bf16.mxu0 %v5929_v34  ;;  %5682 = vmatprep.subr.bf16.mxu1 %v5930_v63 }
 0x254   :  { %5655 = vmatpush3.bf16.msra.mxu0 %v5929_v34  ;;  %5683 = vmatpush3.bf16.msra.mxu1 %v5930_v63 }
 0x255   :  { %5656 = vmatprep.subr.bf16.mxu0 %v5931_v47  ;;  %5684 = vmatprep.subr.bf16.mxu1 %v5932_v35 }
 0x258   :  { %5657 = vmatpush3.bf16.msra.mxu0 %v5931_v47  ;;  %5685 = vmatpush3.bf16.msra.mxu1 %v5932_v35 }
 0x259   :  { %5658 = vmatprep.subr.bf16.mxu0 %v5933_v18  ;;  %5686 = vmatprep.subr.bf16.mxu1 %v5934_v19 }
 0x25c   :  { %5659 = vmatpush3.bf16.msra.mxu0 %v5933_v18  ;;  %5687 = vmatpush3.bf16.msra.mxu1 %v5934_v19 }
 0x25d   :  { %5847 = vmatprep.subr.msk.bf16.mxu0 %vm2290_vm2, %v5935_v42  ;;  %5848 = vmatprep.subr.msk.bf16.mxu1 %vm2290_vm2, %v5936_v8 }
 0x25f   :  { %5661 = vmatmul.mubr.msk.bf16.vlgmr.msra.gmra.mxu0 %vm2090_vm3, %v7299_v32  ;;  %5689 = vmatmul.mubr.msk.bf16.vlgmr.msra.gmra.mxu1 %vm2090_vm3, %v7299_v32 }
 0x260   :  { %5664 = vmatprep.mubr.msk.bf16.mxu0 %vm2090_vm3, %v7353_v46  ;;  %5692 = vmatprep.mubr.msk.bf16.mxu1 %vm2090_vm3, %v7353_v46 }
 0x261   :  { %5701 = vmatpush3.bf16.msra.mxu0 %v3484_v3  ;;  %5729 = vmatpush3.bf16.msra.mxu1 %v3625_v28 }
 0x262   :  { %5702 = vmatprep.subr.bf16.mxu0 %v5937_v48  ;;  %5730 = vmatprep.subr.bf16.mxu1 %v5938_v55 }
 0x265   :  { %5703 = vmatpush3.bf16.msra.mxu0 %v5937_v48  ;;  %5731 = vmatpush3.bf16.msra.mxu1 %v5938_v55 }
 0x266   :  { %5704 = vmatprep.subr.bf16.mxu0 %v5939_v44  ;;  %5732 = vmatprep.subr.bf16.mxu1 %v5940_v56 }
 0x267   :  { %5665 = vmatmul.mubr.msk.bf16.gmra.mxu0 %vm2090_vm3, %v7390_v50  ;;  %5693 = vmatmul.mubr.msk.bf16.gmra.mxu1 %vm2090_vm3, %v7390_v50 }
 0x268   :  { %5668 = vmatprep.mubr.msk.bf16.mxu0 %vm2090_vm3, %v7423_v21  ;;  %5696 = vmatprep.mubr.msk.bf16.mxu1 %vm2090_vm3, %v7423_v21 }
 0x269   :  { %5705 = vmatpush3.bf16.msra.mxu0 %v5939_v44  ;;  %5733 = vmatpush3.bf16.msra.mxu1 %v5940_v56 }
 0x26a   :  { %5706 = vmatprep.subr.bf16.mxu0 %v5941_v11  ;;  %5734 = vmatprep.subr.bf16.mxu1 %v5942_v45 }
 0x26d   :  { %5707 = vmatpush3.bf16.msra.mxu0 %v5941_v11  ;;  %5735 = vmatpush3.bf16.msra.mxu1 %v5942_v45 }
 0x26e   :  { %5708 = vmatprep.subr.bf16.mxu0 %v5943_v37  ;;  %5736 = vmatprep.subr.bf16.mxu1 %v5944_v0 }
 0x26f   :  { %5669 = vmatmul.mubr.msk.bf16.gmra.mxu0 %vm2090_vm3, %v7449_v40  ;;  %5697 = vmatmul.mubr.msk.bf16.gmra.mxu1 %vm2090_vm3, %v7449_v40 }
 0x270   :  { %5716 = vmatprep.mubr.msk.bf16.mxu0 %vm2090_vm3, %v7252_v38  ;;  %5744 = vmatprep.mubr.msk.bf16.mxu1 %vm2090_vm3, %v7252_v38  ;;  %v5949_v38 = vld [vmem:[%s7943_s3 + $0xf0] sm:$0xff]  }
 0x271   :  { %5709 = vmatpush3.bf16.msra.mxu0 %v5943_v37  ;;  %5737 = vmatpush3.bf16.msra.mxu1 %v5944_v0 }
 0x272   :  { %5710 = vmatprep.subr.bf16.mxu0 %v5945_v39  ;;  %5738 = vmatprep.subr.bf16.mxu1 %v5946_v20 }
 0x275   :  { %5711 = vmatpush3.bf16.msra.mxu0 %v5945_v39  ;;  %5739 = vmatpush3.bf16.msra.mxu1 %v5946_v20 }
 0x276   :  { %5712 = vmatprep.subr.bf16.mxu0 %v5947_v60  ;;  %5740 = vmatprep.subr.bf16.mxu1 %v5948_v9 }
 0x279   :  { %5713 = vmatpush3.bf16.msra.mxu0 %v5947_v60  ;;  %5741 = vmatpush3.bf16.msra.mxu1 %v5948_v9 }
 0x27a   :  { %5714 = vmatprep.subr.bf16.mxu0 %v5949_v38  ;;  %5742 = vmatprep.subr.bf16.mxu1 %v5950_v26 }
 0x27d   :  { %5715 = vmatpush3.bf16.msra.mxu0 %v5949_v38  ;;  %5743 = vmatpush3.bf16.msra.mxu1 %v5950_v26 }
 0x27e   :  { %5756 = vmatprep.subr.bf16.mxu0 %v5979_v36  ;;  %5770 = vmatprep.subr.bf16.mxu1 %v5979_v36 }
 0x280   :  { %5717 = vmatmul.mubr.msk.bf16.vlgmr.msra.gmra.mxu0 %vm2090_vm3, %v7299_v32  ;;  %5745 = vmatmul.mubr.msk.bf16.vlgmr.msra.gmra.mxu1 %vm2090_vm3, %v7299_v32 }
 0x281   :  { %5720 = vmatprep.mubr.msk.bf16.mxu0 %vm2090_vm3, %v7353_v46  ;;  %5748 = vmatprep.mubr.msk.bf16.mxu1 %vm2090_vm3, %v7353_v46 }
 0x282   :  { %5771 = vmatpush3.bf16.msra.mxu1 %v5952_v12 }
 0x283   :  { %5772 = vmatprep.subr.bf16.mxu1 %v5979_v36 }
 0x286   :  { %5773 = vmatpush3.bf16.msra.mxu1 %v5954_v22 }
 0x287   :  { %5774 = vmatprep.subr.bf16.mxu1 %v5979_v36 }
 0x288   :  { %5721 = vmatmul.mubr.msk.bf16.gmra.mxu0 %vm2090_vm3, %v7390_v50  ;;  %5749 = vmatmul.mubr.msk.bf16.gmra.mxu1 %vm2090_vm3, %v7390_v50 }
 0x289   :  { %5724 = vmatprep.mubr.msk.bf16.mxu0 %vm2090_vm3, %v7423_v21  ;;  %5752 = vmatprep.mubr.msk.bf16.mxu1 %vm2090_vm3, %v7423_v21  ;;  %v5951_v21 = vld [vmem:[%s7945_s5 + $0x48] sm:$0xff]  }
 0x28a   :  { %5757 = vmatpush3.bf16.msra.mxu0 %v5951_v21  ;;  %5775 = vmatpush3.bf16.msra.mxu1 %v5956_v57 }
 0x28b   :  { %5758 = vmatprep.subr.bf16.mxu0 %v5979_v36  ;;  %5776 = vmatprep.subr.bf16.mxu1 %v5979_v36 }
 0x28e   :  { %5759 = vmatpush3.bf16.msra.mxu0 %v5953_v15  ;;  %5777 = vmatpush3.bf16.msra.mxu1 %v5958_v2 }
 0x28f   :  { %5760 = vmatprep.subr.bf16.mxu0 %v5979_v36  ;;  %5778 = vmatprep.subr.bf16.mxu1 %v5979_v36 }
 0x290   :  { %5725 = vmatmul.mubr.msk.bf16.gmra.mxu0 %vm2090_vm3, %v7449_v40  ;;  %5753 = vmatmul.mubr.msk.bf16.gmra.mxu1 %vm2090_vm3, %v7449_v40 }
 0x291   :  { %5766 = vmatprep.mubr.msk.bf16.mxu0 %vm5980_vm4, %v5979_v36  ;;  %5780 = vmatprep.mubr.msk.bf16.mxu1 %vm5980_vm4, %v5979_v36 }
 0x292   :  { %5761 = vmatpush3.bf16.msra.mxu0 %v5955_v16  ;;  %5779 = vmatpush3.bf16.msra.mxu1 %v5960_v13 }
 0x293   :  { %5762 = vmatprep.subr.bf16.mxu0 %v5979_v36  ;;  %5798 = vmatprep.subr.bf16.mxu1 %v5979_v36 }
 0x296   :  { %5763 = vmatpush3.bf16.msra.mxu0 %v5957_v14 }
 0x297   :  { %5764 = vmatprep.subr.bf16.mxu0 %v5979_v36 }
 0x29a   :  { %5765 = vmatpush3.bf16.msra.mxu0 %v5959_v61 }
 0x29b   :  { %5784 = vmatprep.subr.bf16.mxu0 %v5979_v36 }
 0x2b6   :  { %v7701_v32 = vpop.f32.mrf.mxu0  ;;  %v7703_v46 = vpop.f32.mrf.mxu1 }
 0x2b8   :  { %v7705_v7 = vpop.f32.mrf.mxu0  ;;  %v7707_v33 = vpop.f32.mrf.mxu1 }
 0x2ba   :  { %v7709_v50 = vpop.f32.mrf.mxu0  ;;  %v7711_v10 = vpop.f32.mrf.mxu1 }
 0x2bc   :  { %v2331_v6 = vpop.f32.mrf.mxu0  ;;  %v2472_v1 = vpop.f32.mrf.mxu1 }
 0x2c6   :  { %v7723_v40 = vpop.f32.mrf.mxu0  ;;  %v7725_v53 = vpop.f32.mrf.mxu1 }
 0x2c8   :  { %v7734_v43 = vpop.f32.mrf.mxu0  ;;  %v7736_v31 = vpop.f32.mrf.mxu1 }
 0x2ca   :  { %v7746_v24 = vpop.f32.mrf.mxu0  ;;  %v7748_v51 = vpop.f32.mrf.mxu1 }
 0x2cc   :  { %v2347_v29 = vpop.f32.mrf.mxu0  ;;  %v2488_v17 = vpop.f32.mrf.mxu1 }
 0x2d6   :  { %v5502_v58 = vpop.f32.mrf.mxu0  ;;  %v5530_v54 = vpop.f32.mrf.mxu1 }
 0x2d8   :  { %v2360_v27 = vpop.f32.mrf.mxu0  ;;  %v2501_v4 = vpop.f32.mrf.mxu1 }
 0x2da   :  { %v5503_v49 = vpop.f32.mrf.mxu0  ;;  %v5531_v59 = vpop.f32.mrf.mxu1 }
 0x2dc   :  { %v2362_v25 = vpop.f32.mrf.mxu0  ;;  %v2503_v5 = vpop.f32.mrf.mxu1 }
 0x2de   :  { %v5550_v30 = vpop.f32.mrf.mxu0  ;;  %v5578_v41 = vpop.f32.mrf.mxu1 }
 0x2df   :  { %v2811_v23 = vadd.f32 %v5550_v30, %v2331_v6  ;;  %v2819_v52 = vadd.f32 %v5578_v41, %v2472_v1 }
 0x2e0   :  { %v2626_v62 = vpop.f32.mrf.mxu0  ;;  %v2767_v34 = vpop.f32.mrf.mxu1 }
 0x2e2   :  { %v5551_v63 = vpop.f32.mrf.mxu0  ;;  %v5579_v47 = vpop.f32.mrf.mxu1 }
 0x2e3   :  { %v2812_v35 = vadd.f32 %v5551_v63, %v7701_v32  ;;  %v2820_v18 = vadd.f32 %v5579_v47, %v7703_v46 }
 0x2e4   :  { %v2628_v19 = vpop.f32.mrf.mxu0  ;;  %v2769_v42 = vpop.f32.mrf.mxu1 }
 0x2e5   :  { %v2810_v8 = vadd.f32 %v2628_v19, %v7705_v7  ;;  %v2818_v3 = vadd.f32 %v2769_v42, %v7707_v33 }
 0x2e6   :  { %v5554_v28 = vpop.f32.mrf.mxu0  ;;  %v5582_v48 = vpop.f32.mrf.mxu1 }
 0x2e7   :  { %v2815_v55 = vadd.f32 %v5554_v28, %v2347_v29  ;;  %v2823_v44 = vadd.f32 %v5582_v48, %v2488_v17 }
 0x2e8   :  { %v2641_v56 = vpop.f32.mrf.mxu0  ;;  %v2782_v11 = vpop.f32.mrf.mxu1 }
 0x2e9   :  { %v7776_v45 = vadd.f32 %v7709_v50, %v2641_v56  ;;  %v7779_v37 = vadd.f32 %v7711_v10, %v2782_v11 }
 0x2ea   :  { %v5555_v0 = vpop.f32.mrf.mxu0  ;;  %v5583_v39 = vpop.f32.mrf.mxu1 }
 0x2eb   :  { %v2816_v20 = vadd.f32 %v5555_v0, %v7723_v40  ;;  %v2824_v60 = vadd.f32 %v5583_v39, %v7725_v53 }
 0x2ec   :  { %v2644_v9 = vpop.f32.mrf.mxu0  ;;  %v2785_v38 = vpop.f32.mrf.mxu1 }
 0x2ed   :  { %v2814_v26 = vadd.f32 %v2644_v9, %v7734_v43  ;;  %v2822_v32 = vadd.f32 %v2785_v38, %v7736_v31 }
 0x2ee   :  { %v5558_v46 = vpop.f32.mrf.mxu0  ;;  %v5586_v7 = vpop.f32.mrf.mxu1 }
 0x2f0   :  { %v2657_v33 = vpop.f32.mrf.mxu0  ;;  %v2798_v50 = vpop.f32.mrf.mxu1 }
 0x2f1   :  { %v2817_v21 = vadd.f32 %v7746_v24, %v2657_v33  ;;  %v2825_v10 = vadd.f32 %v7748_v51, %v2798_v50 }
 0x2f2   :  { %v5559_v12 = vpop.f32.mrf.mxu0  ;;  %v5587_v6 = vpop.f32.mrf.mxu1 }
 0x2f4   :  { %v2660_v1 = vpop.f32.mrf.mxu0  ;;  %v2801_v40 = vpop.f32.mrf.mxu1 }
 0x2fe   :  { %v5606_v15 = vpop.f32.mrf.mxu0  ;;  %v5634_v53 = vpop.f32.mrf.mxu1 }
 0x2ff   :  { %v7787_v22 = vadd.f32 %v5606_v15, %v2810_v8  ;;  %v7789_v16 = vadd.f32 %v5634_v53, %v2818_v3 }
 0x300   :  { %v2924_v43 = vpop.f32.mrf.mxu0  ;;  %v3065_v31 = vpop.f32.mrf.mxu1 }
 0x302   :  { %v5607_v57 = vpop.f32.mrf.mxu0  ;;  %v5635_v14 = vpop.f32.mrf.mxu1 }
 0x303   :  { %v7791_v2 = vadd.f32 %v5607_v57, %v2811_v23  ;;  %v7793_v29 = vadd.f32 %v5635_v14, %v2819_v52 }
 0x304   :  { %v2926_v24 = vpop.f32.mrf.mxu0  ;;  %v3067_v51 = vpop.f32.mrf.mxu1 }
 0x306   :  { %v5610_v17 = vpop.f32.mrf.mxu0  ;;  %v5638_v61 = vpop.f32.mrf.mxu1 }
 0x307   :  { %v7795_v58 = vadd.f32 %v5610_v17, %v2814_v26  ;;  %v7797_v54 = vadd.f32 %v5638_v61, %v2822_v32 }
 0x308   :  { %v2938_v13 = vpop.f32.mrf.mxu0  ;;  %v3079_v27 = vpop.f32.mrf.mxu1 }
 0x309   :  { %v3110_v4 = vadd.f32 %v2938_v13, %v2812_v35  ;;  %v3118_v49 = vadd.f32 %v3079_v27, %v2820_v18 }
 0x30a   :  { %v5611_v59 = vpop.f32.mrf.mxu0  ;;  %v5639_v25 = vpop.f32.mrf.mxu1 }
 0x30b   :  { %v7799_v5 = vadd.f32 %v5611_v59, %v2815_v55  ;;  %v7801_v30 = vadd.f32 %v5639_v25, %v2823_v44 }
 0x30c   :  { %v2941_v41 = vpop.f32.mrf.mxu0  ;;  %v3082_v23 = vpop.f32.mrf.mxu1 }
 0x30d   :  { %v3111_v25 = vadd.f32 %v2941_v41, %v7776_v45 }
 0x30e   :  { %v5614_v52 = vpop.f32.mrf.mxu0  ;;  %v5642_v62 = vpop.f32.mrf.mxu1 }
 0x30f   :  { %v3119_v52 = vadd.f32 %v3082_v23, %v7779_v37 }
 0x310   :  { %v2954_v34 = vpop.f32.mrf.mxu0  ;;  %v3095_v63 = vpop.f32.mrf.mxu1 }
 0x311   :  { %v7803_v47 = vadd.f32 %v2954_v34, %v2816_v20  ;;  %v7805_v19 = vadd.f32 %v3095_v63, %v2824_v60 }
 0x312   :  { %v5615_v42 = vpop.f32.mrf.mxu0  ;;  %v5643_v8 = vpop.f32.mrf.mxu1 }
 0x314   :  { %v2957_v35 = vpop.f32.mrf.mxu0  ;;  %v3098_v18 = vpop.f32.mrf.mxu1 }
 0x315   :  { %v7807_v3 = vadd.f32 %v2957_v35, %v2817_v21  ;;  %v7809_v28 = vadd.f32 %v3098_v18, %v2825_v10 }
 0x31f   :  { %v5662_v48 = vpop.f32.mrf.mxu0  ;;  %v5690_v55 = vpop.f32.mrf.mxu1 }
 0x321   :  { %v3222_v44 = vpop.f32.mrf.mxu0  ;;  %v3363_v56 = vpop.f32.mrf.mxu1 }
 0x323   :  { %v5663_v11 = vpop.f32.mrf.mxu0  ;;  %v5691_v0 = vpop.f32.mrf.mxu1 }
 0x324   :  { %v3406_v62 = vadd.f32 %v5663_v11, %v7787_v22  ;;  %v3414_v35 = vadd.f32 %v5691_v0, %v7789_v16 }
 0x325   :  { %v3224_v39 = vpop.f32.mrf.mxu0  ;;  %v3365_v9 = vpop.f32.mrf.mxu1 }
 0x327   :  { %v5666_v20 = vpop.f32.mrf.mxu0  ;;  %v5694_v38 = vpop.f32.mrf.mxu1 }
 0x328   :  { %v3409_v18 = vadd.f32 %v5666_v20, %v3111_v25  ;;  %v3417_v48 = vadd.f32 %v5694_v38, %v3119_v52 }
 0x329   :  { %v3235_v60 = vpop.f32.mrf.mxu0  ;;  %v3376_v26 = vpop.f32.mrf.mxu1 }
 0x32a   :  { %v3415_v45 = vadd.f32 %v3376_v26, %v7793_v29 }
 0x32b   :  { %v7811_v32 = vpop.f32.mrf.mxu0  ;;  %v7813_v46 = vpop.f32.mrf.mxu1 }
 0x32d   :  { %v3238_v7 = vpop.f32.mrf.mxu0  ;;  %v3379_v33 = vpop.f32.mrf.mxu1 }
 0x32e   :  { %v3408_v61 = vadd.f32 %v3238_v7, %v3110_v4  ;;  %v3416_v13 = vadd.f32 %v3379_v33, %v3118_v49  ;;  %v3407_v4 = vadd.f32 %v3235_v60, %v7791_v2 }
 0x32f   :  { %v7815_v50 = vpop.f32.mrf.mxu0  ;;  %v7817_v21 = vpop.f32.mrf.mxu1 }
 0x331   :  { %v7819_v10 = vpop.f32.mrf.mxu0  ;;  %v7821_v12 = vpop.f32.mrf.mxu1 }
 0x333   :  { %v5671_v6 = vpop.f32.mrf.mxu0  ;;  %v5699_v1 = vpop.f32.mrf.mxu1 }
 0x334   :  { %v7840_v6 = vld [vmem:[%s7946_s4] ss:$0 sm:$0xff] }
 0x335   :  { %v3254_v40 = vpop.f32.mrf.mxu0  ;;  %v3395_v15 = vpop.f32.mrf.mxu1 }
 0x336   :  { %v3412_v22 = vadd.f32 %v3254_v40, %v7803_v47  ;;  %v3420_v38 = vadd.f32 %v3395_v15, %v7805_v19 }
 0x340   :  { %v5718_v53 = vpop.f32.mrf.mxu0  ;;  %v5746_v43 = vpop.f32.mrf.mxu1 }
 0x342   :  { %v3520_v31 = vpop.f32.mrf.mxu0  ;;  %v3661_v57 = vpop.f32.mrf.mxu1 }
 0x344   :  { %v5719_v14 = vpop.f32.mrf.mxu0  ;;  %v5747_v24 = vpop.f32.mrf.mxu1 }
 0x345   :  { %v3410_v24 = vadd.f32 %v7811_v32, %v7795_v58 }
 0x346   :  { %v3522_v51 = vpop.f32.mrf.mxu0  ;;  %v3663_v17 = vpop.f32.mrf.mxu1 }
 0x347   :  { %v3418_v51 = vadd.f32 %v7813_v46, %v7797_v54  ;;  %v3413_v17 = vadd.f32 %v7815_v50, %v7807_v3 }
 0x348   :  { %v5722_v27 = vpop.f32.mrf.mxu0  ;;  %v5750_v59 = vpop.f32.mrf.mxu1 }
 0x349   :  { %v3706_v34 = vadd.f32 %v5722_v27, %v3408_v61  ;;  %v3714_v63 = vadd.f32 %v5750_v59, %v3416_v13  ;;  %v3421_v61 = vadd.f32 %v7817_v21, %v7809_v28  ;;  %v3411_v13 = vadd.f32 %v7819_v10, %v7799_v5 }
 0x34a   :  { %v3532_v42 = vpop.f32.mrf.mxu0  ;;  %v3673_v8 = vpop.f32.mrf.mxu1  ;;  %v3419_v27 = vadd.f32 %v7821_v12, %v7801_v30 }
 0x34b   :  { %v3704_v49 = vadd.f32 %v3532_v42, %v3406_v62  ;;  %v3712_v41 = vadd.f32 %v3673_v8, %v3414_v35  ;;  %v3724_v56 = vsel %vm3720_vm5, %v3706_v34, -inf  ;;  %v3736_v11 = vsel %vm3720_vm5, %v3714_v63, -inf  ;;  %v5961_v42 = vld [vmem:[%s7945_s5 + $0x70] sm:$0xff]  }
 0x34c   :  { %v5723_v55 = vpop.f32.mrf.mxu0  ;;  %v5751_v44 = vpop.f32.mrf.mxu1 }
 0x34d   :  { %v3707_v37 = vadd.f32 %v5723_v55, %v3409_v18  ;;  %v3715_v23 = vadd.f32 %v5751_v44, %v3417_v48  ;;  %v3721_v29 = vsel %vm3720_vm5, %v3704_v49, -inf  ;;  %v3733_v33 = vsel %vm3720_vm5, %v3712_v41, -inf }
 0x34e   :  { %v3535_v16 = vpop.f32.mrf.mxu0  ;;  %v3676_v0 = vpop.f32.mrf.mxu1 }
 0x34f   :  { %v3725_v39 = vsel %vm3720_vm5, %v3707_v37, -inf  ;;  %v3737_v2 = vsel %vm3720_vm5, %v3715_v23, -inf  ;;  %v3705_v9 = vadd.f32 %v3535_v16, %v3407_v4  ;;  %v3713_v20 = vadd.f32 %v3676_v0, %v3415_v45  ;;  %v5962_v45 = vld [vmem:[%s7945_s5 + $0x98] sm:$0xff]   ;;  %v5964_v16 = vld [vmem:[%s7945_s5 + $0x90] sm:$0xff]   ;;  %v5965_v0 = vld [vmem:[%s7945_s5 + $0x60] sm:$0xff]  }
 0x350   :  { %v3726_v60 = vmax.f32 %v3724_v56, %v3725_v39  ;;  %v3738_v26 = vmax.f32 %v3736_v11, %v3737_v2  ;;  %v5726_v7 = vpop.f32.mrf.mxu0  ;;  %v5754_v47 = vpop.f32.mrf.mxu1  ;;  %v5963_v56 = vld [vmem:[%s7945_s5 + $0x68] sm:$0xff]   ;;  %v5967_v2 = vld [vmem:[%s7945_s5 + $0x58] sm:$0xff]  }
 0x351   :  { %v3722_v1 = vsel %vm3720_vm5, %v3705_v9, -inf  ;;  %v3734_v40 = vsel %vm3720_vm5, %v3713_v20, -inf  ;;  %v3710_v53 = vadd.f32 %v5726_v7, %v3412_v22  ;;  %v3718_v31 = vadd.f32 %v5754_v47, %v3420_v38  ;;  %v5966_v39 = vld [vmem:[%s7945_s5 + $0x88] sm:$0xff]   ;;  %v5968_v20 = vld [vmem:[%s7945_s5 + $0x80] sm:$0xff]  }
 0x352   :  { %v3746_v43 = vmax.f32 %v3726_v60, %v3738_v26  ;;  %v3723_v19 = vmax.f32 %v3721_v29, %v3722_v1  ;;  %v3735_v15 = vmax.f32 %v3733_v33, %v3734_v40  ;;  %v3548_v57 = vpop.f32.mrf.mxu0  ;;  %v3689_v14 = vpop.f32.mrf.mxu1  ;;  %v5969_v29 = vld [vmem:[%s7945_s5 + $0x50] sm:$0xff]   ;;  %v5970_v26 = vld [vmem:[%s7945_s5 + $0x78] sm:$0xff]  }
 0x353   :  { %v3708_v32 = vadd.f32 %v3548_v57, %v3410_v24  ;;  %v3716_v62 = vadd.f32 %v3689_v14, %v3418_v51  ;;  %v3730_v28 = vsel %vm3720_vm5, %v3710_v53, -inf  ;;  %v3742_v50 = vsel %vm3720_vm5, %v3718_v31, -inf  ;;  %v5972_v40 = vld [vmem:[%s7947_s7 + $0x10] sm:$0xff]   ;;  %v5973_v53 = vld [vmem:[%s7947_s7 + $0x8] sm:$0xff]  }
 0x354   :  { %v3757_v59 = vadd.f32 %v7840_v6, %v3746_v43  ;;  %v3745_v25 = vmax.f32 %v3723_v19, %v3735_v15  ;;  %v5727_v52 = vpop.f32.mrf.mxu0  ;;  %v5755_v58 = vpop.f32.mrf.mxu1  ;;  %v5974_v43 = vld [vmem:[%s7947_s7] sm:$0xff]  }
 0x355   :  { %v3711_v54 = vadd.f32 %v5727_v52, %v3413_v17  ;;  %v3719_v46 = vadd.f32 %v5755_v58, %v3421_v61  ;;  %v3727_v4 = vsel %vm3720_vm5, %v3708_v32, -inf  ;;  %v3739_v49 = vsel %vm3720_vm5, %v3716_v62, -inf }
 0x356   :  { %v3761_v34 = vmax.f32 %v3757_v59, 0.0  ;;  %v3756_v3 = vadd.f32 %v7840_v6, %v3745_v25  ;;  %v3551_v5 = vpop.f32.mrf.mxu0  ;;  %v3692_v21 = vpop.f32.mrf.mxu1 }
 0x357   :  { %v3731_v30 = vsel %vm3720_vm5, %v3711_v54, -inf  ;;  %v3743_v10 = vsel %vm3720_vm5, %v3719_v46, -inf  ;;  %v3709_v12 = vadd.f32 %v3551_v5, %v3411_v13  ;;  %v3717_v63 = vadd.f32 %v3692_v21, %v3419_v27 }
 0x358   :  { %v3775_v8 = vpack.c.bf16 %v3761_v34, %v3761_v34  ;;  %v3760_v35 = vmax.f32 %v3756_v3, 0.0  ;;  %v3732_v18 = vmax.f32 %v3730_v28, %v3731_v30  ;;  %v3744_v48 = vmax.f32 %v3742_v50, %v3743_v10  ;;  %v4761_v50 = vld [vmem:[%s7949_s8] ss:$0 sm:$0xff] }
 0x359   :  { %v3728_v55 = vsel %vm3720_vm5, %v3709_v12, -inf  ;;  %v3740_v44 = vsel %vm3720_vm5, %v3717_v63, -inf }
 0x35a   :  { %v3764_v41 = vpack.c.bf16 %v3760_v35, %v3760_v35  ;;  %v3748_v37 = vmax.f32 %v3732_v18, %v3744_v48  ;;  %v3729_v23 = vmax.f32 %v3727_v4, %v3728_v55  ;;  %v3741_v22 = vmax.f32 %v3739_v49, %v3740_v44  ;;  %5767 = vmatmul.mubr.msk.bf16.vlgmr.msra.gmra.mxu0 %vm3720_vm5, %v3775_v8 }
 0x35b   :  { %5785 = vmatpush3.bf16.msra.mxu0 %v5961_v42  ;;  %5794 = vmatprep.mubr.msk.bf16.mxu0 %vm5980_vm4, %v5979_v36 }
 0x35c   :  { %v3747_v11 = vmax.f32 %v3729_v23, %v3741_v22  ;;  %5781 = vmatmul.mubr.msk.bf16.vlgmr.msra.gmra.mxu1 %vm3720_vm5, %v3764_v41  ;;  %5786 = vmatprep.subr.bf16.mxu0 %v5979_v36  ;;  %v3759_v38 = vadd.f32 %v7840_v6, %v3748_v37 }
 0x35d   :  { %5799 = vmatpush3.bf16.msra.mxu1 %v5962_v45  ;;  %5808 = vmatprep.mubr.msk.bf16.mxu1 %vm5980_vm4, %v5979_v36 }
 0x35e   :  { %5800 = vmatprep.subr.bf16.mxu1 %v5979_v36  ;;  %v3758_v9 = vadd.f32 %v7840_v6, %v3747_v11  ;;  %v3763_v7 = vmax.f32 %v3759_v38, 0.0  ;;  %v5971_v6 = vld [vmem:[%s7947_s7 + $0x18] ss:$0 sps:$4 sm:$0x11]  }
 0x35f   :  { %5787 = vmatpush3.bf16.msra.mxu0 %v5963_v56  ;;  %v4156_v1 = vsel %vm4154_vm6, %v5971_v6, 0 }
 0x360   :  { %5788 = vmatprep.subr.bf16.mxu0 %v5979_v36  ;;  %v3762_v60 = vmax.f32 %v3758_v9, 0.0  ;;  %v4019_v33 = vpack.c.bf16 %v3763_v7, %v3763_v7 }
 0x361   :  { %5801 = vmatpush3.bf16.msra.mxu1 %v5964_v16 }
 0x362   :  { %5802 = vmatprep.subr.bf16.mxu1 %v5979_v36  ;;  %v3933_v47 = vpack.c.bf16 %v3762_v60, %v3762_v60 }
 0x363   :  { %5789 = vmatpush3.bf16.msra.mxu0 %v5965_v0 }
 0x364   :  { %5790 = vmatprep.subr.bf16.mxu0 %v5979_v36 }
 0x365   :  { %5803 = vmatpush3.bf16.msra.mxu1 %v5966_v39 }
 0x366   :  { %5804 = vmatprep.subr.bf16.mxu1 %v5979_v36 }
 0x367   :  { %5791 = vmatpush3.bf16.msra.mxu0 %v5967_v2 }
 0x368   :  { %5792 = vmatprep.subr.bf16.mxu0 %v5979_v36 }
 0x369   :  { %5805 = vmatpush3.bf16.msra.mxu1 %v5968_v20 }
 0x36a   :  { %5806 = vmatprep.subr.bf16.mxu1 %v5979_v36 }
 0x36b   :  { %5793 = vmatpush3.bf16.msra.mxu0 %v5969_v29 }
 0x36c   :  { %5812 = vmatprep.subr.bf16.mxu0 %v5979_v36 }
 0x36d   :  { %5807 = vmatpush3.bf16.msra.mxu1 %v5970_v26 }
 0x36e   :  { %5795 = vmatmul.mubr.msk.bf16.vlgmr.msra.gmra.mxu0 %vm3720_vm5, %v3933_v47 }
 0x36f   :  { %5820 = vmatprep.mubr.msk.bf16.mxu0 %vm5980_vm4, %v5979_v36  ;;  %5813 = vmatpush3.bf16.msra.mxu0 %v4156_v1 }
 0x370   :  { %5809 = vmatmul.mubr.msk.bf16.vlgmr.msra.gmra.mxu1 %vm3720_vm5, %v4019_v33  ;;  %5814 = vmatprep.subr.bf16.mxu0 %v5979_v36 }
 0x373   :  { %5815 = vmatpush3.bf16.msra.mxu0 %v5972_v40 }
 0x374   :  { %5816 = vmatprep.subr.bf16.mxu0 %v5979_v36 }
 0x377   :  { %5817 = vmatpush3.bf16.msra.mxu0 %v5973_v53 }
 0x378   :  { %5818 = vmatprep.subr.bf16.mxu0 %v5979_v36  ;;  %v4760_v36 = vld [vmem:[%s7948_s6] ss:$0 sm:$0xff] }
 0x37b   :  { %5819 = vmatpush3.bf16.msra.mxu0 %v5974_v43 }
 0x41a   :  { %v3854_v19 = vpop.f32.mrf.mxu0 }
 0x41c   :  { %v5768_v15 = vpop.f32.mrf.mxu0  ;;  %v3927_v31 = vpop.f32.mrf.mxu1 }
 0x41d   :  { %v3928_v61 = vadd.f32 %v3927_v31, %v3854_v19 }
 0x41e   :  { %v3857_v57 = vpop.f32.mrf.mxu0  ;;  %v5782_v14 = vpop.f32.mrf.mxu1 }
 0x420   :  { %v5769_v24 = vpop.f32.mrf.mxu0  ;;  %v3930_v51 = vpop.f32.mrf.mxu1 }
 0x422   :  { %v5783_v17 = vpop.f32.mrf.mxu1 }
 0x42e   :  { %v4012_v13 = vpop.f32.mrf.mxu0 }
 0x42f   :  { %v4018_v27 = vadd.f32 %v4012_v13, %v3928_v61 }
 0x430   :  { %v5796_v59 = vpop.f32.mrf.mxu0  ;;  %v4098_v25 = vpop.f32.mrf.mxu1 }
 0x431   :  { %v4104_v52 = vadd.f32 %v4098_v25, %v4018_v27 }
 0x432   :  { %v4015_v58 = vpop.f32.mrf.mxu0  ;;  %v5810_v32 = vpop.f32.mrf.mxu1 }
 0x433   :  { %v4112_v62 = vadd.f32 %v4760_v36, %v4104_v52 }
 0x434   :  { %v5797_v54 = vpop.f32.mrf.mxu0  ;;  %v4101_v46 = vpop.f32.mrf.mxu1 }
 0x435   :  { %v4113_v34 = vmax.f32 %v4112_v62, 0.0 }
 0x436   :  { %v5811_v3 = vpop.f32.mrf.mxu1 }
 0x437   :  { %v4114_v28 = vpack.c.bf16 %v4113_v34, %v4113_v34 }
 0x439   :  { %5821 = vmatmul.mubr.msk.bf16.vlgmr.msra.gmra.mxu0 %vm4150_vm7, %v4114_v28 }
 0x4f9   :  { %v4192_v5 = vpop.f32.mrf.mxu0 }
 0x4fa   :  { %v4193_v21 = vadd.f32 %v4761_v50, %v4192_v5 }
 0x4fb   :  { %v5822_v30 = vpop.f32.mrf.mxu0 }
 0x4fc   :  { %4198 = vmax.xlane.f32.xlu0 %v4193_v21 }
 0x4fd   :  { %v4195_v10 = vpop.f32.mrf.mxu0 }
 0x4ff   :  { %v5823_v12 = vpop.f32.mrf.mxu0 }
 0x585   :  { %v4199_v63 = vpop.xlane.xlu0 %4198 }
 0x586   :  { %v4200_v42 = vsub.f32 %v4193_v21, %v4199_v63 }
 0x588   :  { %v4201_v8 = vmul.f32 1.442695, %v4200_v42 }
 0x58a   :  { %5975 = vpow2.f32 %v4201_v8 }
 0x597   :  { %v5976_v35 = vpop.eup %5975 }
 0x598   :  { %4203 = vadd.xlane.f32.xlu0 %v5976_v35 }
 0x621   :  { %v4204_v18 = vpop.xlane.xlu0 %4203 }
 0x622   :  { %5977 = vlog2.f32 %v4204_v18 }
 0x62f   :  { %v5978_v48 = vpop.eup %5977 }
 0x630   :  { %v4206_v4 = vmul.f32 0.6931472, %v5978_v48 }
 0x632   :  { %v4207_v49 = vsub.f32 %v4200_v42, %v4206_v4 }
 0x634   :  { %4208 = vst [vmem:[%s7950_s9] sm:$0xff] %v4207_v49 }

</bundles_post_ra>
